<compile_context>
chip_gen: v6e
topology: v6e:2x2x1
jax: 0.10.0
libtpu: 0.0.40
codegen_flags: <defaults>
</compile_context>

<pallas_src>
import functools
import math

import jax
import jax.numpy as jnp
import numpy as np
from jax import lax
from jax.experimental import pallas as pl
from jax.experimental.pallas import tpu as pltpu

BN_EPS = 1e-5


# ----------------------- bilinear (align_corners=True) --------------------- #
def _interp_weights(n_in, n_out):
    """Static (idx0, idx1, frac) per output position, PyTorch align_corners."""
    if n_in == 1 or n_out == 1:
        return [0] * n_out, [0] * n_out, [0.0] * n_out
    i0s, i1s, fs = [], [], []
    for o in range(n_out):
        src = o * (n_in - 1) / (n_out - 1)
        i0 = min(int(math.floor(src)), n_in - 1)
        i1 = min(i0 + 1, n_in - 1)
        i0s.append(i0)
        i1s.append(i1)
        fs.append(float(src - i0))
    return i0s, i1s, fs


def _interp_matrix(n_in, n_out):
    i0s, i1s, fs = _interp_weights(n_in, n_out)
    a = np.zeros((n_out, n_in), np.float32)
    for o in range(n_out):
        a[o, i0s[o]] += 1.0 - fs[o]
        a[o, i1s[o]] += fs[o]
    return a


# ----------------------------- Pallas kernel ------------------------------- #
def _decoder_block_kernel(xcol_ref, w3_ref, g1_ref, b1_ref, aw_ref,
                          w1_ref, g2_ref, b2_ref, o_ref, y_scr,
                          *, N, H, W, Cin, Cout, Ho, Wo, h_i0, h_i1, h_f):
    HW, OP = H * W, Ho * Wo
    inv1 = 1.0 / (N * HW)
    inv2 = 1.0 / (N * OP)

    # ---- pass 1: 3x3 conv as a single K=9*Cin matmul per image + BN1 sums --
    s1 = jnp.zeros((1, Cin), jnp.float32)
    for n in range(N):
        y_n = jnp.dot(xcol_ref[n], w3_ref[...],
                      preferred_element_type=jnp.float32)            # (HW, Cin)
        y_scr[n] = y_n
        s1 = s1 + jnp.sum(y_n, axis=0, keepdims=True)
    mean1 = s1 * inv1

    v1 = jnp.zeros((1, Cin), jnp.float32)
    for n in range(N):
        d = y_scr[n] - mean1
        v1 = v1 + jnp.sum(d * d, axis=0, keepdims=True)
    scale1 = g1_ref[...] * lax.rsqrt(v1 * inv1 + BN_EPS)
    shift1 = b1_ref[...] - mean1 * scale1

    # Width-interp matrix broadcast once over the H rows (batched-matmul lhs).
    aw_b = jnp.broadcast_to(aw_ref[...], (H, Wo, W))                  # bf16

    # ---- pass 2: BN1+ReLU, separable upsample, 1x1 conv, BN2 sums ----------
    s2 = jnp.zeros((Cout, 1), jnp.float32)
    for n in range(N):
        yb = jnp.maximum(y_scr[n] * scale1 + shift1, 0.0)             # (HW, Cin)
        yb3 = yb.reshape(H, W, Cin).astype(jnp.bfloat16)              # (H, W, Cin)

        # Width upsample: per-row (Wo, W) @ (W, Cin), batched over H.
        t = lax.dot_general(
            aw_b, yb3,
            dimension_numbers=(((2,), (1,)), ((0,), (0,))),
            preferred_element_type=jnp.float32)                       # (H, Wo, Cin)

        # Height upsample: bilinear rows have <=2 taps -> static row lerps.
        rows = []
        for ho in range(Ho):
            i0, i1, f = h_i0[ho], h_i1[ho], h_f[ho]
            if f == 0.0 or i0 == i1:
                rows.append(t[i0])
            else:
                rows.append(t[i0] * (1.0 - f) + t[i1] * f)
        u = jnp.stack(rows, axis=0).reshape(OP, Cin)                  # (OP, Cin)

        # 1x1 conv as W1 @ u^T -> lane-dense (Cout, OP) on the MXU.
        z = lax.dot_general(
            w1_ref[...], u.astype(jnp.bfloat16),
            dimension_numbers=(((1,), (1,)), ((), ())),
            preferred_element_type=jnp.float32)                       # (Cout, OP)
        o_ref[n] = z
        s2 = s2 + jnp.sum(z, axis=1, keepdims=True)
    mean2 = s2 * inv2

    v2 = jnp.zeros((Cout, 1), jnp.float32)
    for n in range(N):
        d = o_ref[n] - mean2
        v2 = v2 + jnp.sum(d * d, axis=1, keepdims=True)
    scale2 = g2_ref[...] * lax.rsqrt(v2 * inv2 + BN_EPS)
    shift2 = b2_ref[...] - mean2 * scale2

    # ---- pass 3: BN2 + ReLU in place on the lane-dense output block --------
    for n in range(N):
        o_ref[n] = jnp.maximum(o_ref[n] * scale2 + shift2, 0.0)


# ------------------------------- JAX glue ---------------------------------- #
def _full_spec(shape):
    return pl.BlockSpec(shape, lambda i: (0,) * len(shape))


@functools.partial(jax.jit, static_argnames=("scale",))
def decoder_block_forward(x_nchw, w3, g1, b1, w1, g2, b2, scale=2):
    N, Cin, H, W = x_nchw.shape
    Cout = w1.shape[0]
    Ho, Wo = H * scale, W * scale
    HW, OP = H * W, Ho * Wo

    # NCHW -> NHWC, zero-pad, im2col-pack the 9 taps on the channel (lane) axis.
    x = jnp.transpose(x_nchw, (0, 2, 3, 1)).astype(jnp.float32)
    xp = jnp.pad(x, ((0, 0), (1, 1), (1, 1), (0, 0)))
    taps = [xp[:, kh:kh + H, kw:kw + W, :] for kh in range(3) for kw in range(3)]
    xcol = jnp.concatenate(taps, axis=3).reshape(N, HW, 9 * Cin)
    xcol = xcol.astype(jnp.bfloat16)

    # PyTorch OIHW weights -> matmul layouts (bf16 MXU operands).
    w3s = jnp.transpose(w3, (2, 3, 1, 0)).reshape(9 * Cin, Cin).astype(jnp.bfloat16)
    w1c = w1[:, :, 0, 0].astype(jnp.bfloat16)                          # (Cout, Cin)

    # Separable bilinear interpolation (align_corners=True).
    aw = jnp.asarray(_interp_matrix(W, Wo), jnp.bfloat16)              # (Wo, W)
    h_i0, h_i1, h_f = _interp_weights(H, Ho)                           # static

    g1r = g1.reshape(1, Cin).astype(jnp.float32)
    b1r = b1.reshape(1, Cin).astype(jnp.float32)
    g2r = g2.reshape(Cout, 1).astype(jnp.float32)
    b2r = b2.reshape(Cout, 1).astype(jnp.float32)

    kernel = functools.partial(
        _decoder_block_kernel, N=N, H=H, W=W, Cin=Cin, Cout=Cout,
        Ho=Ho, Wo=Wo, h_i0=tuple(h_i0), h_i1=tuple(h_i1), h_f=tuple(h_f))

    out = pl.pallas_call(
        kernel,
        out_shape=jax.ShapeDtypeStruct((N, Cout, OP), jnp.float32),
        grid=(1,),
        in_specs=[_full_spec(xcol.shape), _full_spec(w3s.shape),
                  _full_spec(g1r.shape), _full_spec(b1r.shape),
                  _full_spec(aw.shape), _full_spec(w1c.shape),
                  _full_spec(g2r.shape), _full_spec(b2r.shape)],
        out_specs=_full_spec((N, Cout, OP)),
        scratch_shapes=[pltpu.VMEM((N, HW, Cin), jnp.float32)],
        compiler_params=pltpu.CompilerParams(
            dimension_semantics=("arbitrary",),
            vmem_limit_bytes=8 << 20),
    )(xcol, w3s, g1r, b1r, aw, w1c, g2r, b2r)

    # (N, Cout, Ho*Wo) -> NCHW (free metadata reshape outside the kernel).
    return out.reshape(N, Cout, Ho, Wo)


# --------------------------- pure-JAX reference ----------------------------- #
def reference_forward(x, w3, g1, b1, w1, g2, b2, scale=2):
    y = lax.conv_general_dilated(x, w3, (1, 1), ((1, 1), (1, 1)),
                                 dimension_numbers=('NCHW', 'OIHW', 'NCHW'))
    m = jnp.mean(y, axis=(0, 2, 3), keepdims=True)
    v = jnp.mean((y - m) ** 2, axis=(0, 2, 3), keepdims=True)
    y = jnp.maximum((y - m) * lax.rsqrt(v + BN_EPS) * g1.reshape(1, -1, 1, 1)
                    + b1.reshape(1, -1, 1, 1), 0.0)
    H, W = y.shape[2], y.shape[3]
    ah = jnp.asarray(_interp_matrix(H, H * scale))
    aw = jnp.asarray(_interp_matrix(W, W * scale))
    up = jnp.einsum('oh,pw,nchw->ncop', ah, aw, y)
    z = jnp.einsum('nchw,dc->ndhw', up, w1[:, :, 0, 0])
    m2 = jnp.mean(z, axis=(0, 2, 3), keepdims=True)
    v2 = jnp.mean((z - m2) ** 2, axis=(0, 2, 3), keepdims=True)
    z = jnp.maximum((z - m2) * lax.rsqrt(v2 + BN_EPS) * g2.reshape(1, -1, 1, 1)
                    + b2.reshape(1, -1, 1, 1), 0.0)
    return z


# ------------------------ deterministic parameter init ---------------------- #
def kaiming_uniform(key, shape):
    fan_in = shape[1] * shape[2] * shape[3]
    bound = math.sqrt(6.0 / fan_in)
    return jax.random.uniform(key, shape, jnp.float32, -bound, bound)


if __name__ == "__main__":
    N, Cin, H, W, Cout, scale = 2, 8, 16, 16, 16, 2

    key = jax.random.PRNGKey(0)
    kx, kw3, kg1, kw1, kg2 = jax.random.split(key, 5)

    x = jax.random.normal(kx, (N, Cin, H, W), jnp.float32)
    w3 = kaiming_uniform(kw3, (Cin, Cin, 3, 3))                 # conv_3x3 weight
    g1 = 1.0 + 0.02 * jax.random.normal(kg1, (Cin,), jnp.float32)
    b1 = jnp.zeros((Cin,), jnp.float32)
    w1 = kaiming_uniform(kw1, (Cout, Cin, 1, 1))                # conv_1x1 weight
    g2 = 1.0 + 0.02 * jax.random.normal(kg2, (Cout,), jnp.float32)
    b2 = jnp.zeros((Cout,), jnp.float32)

    out = decoder_block_forward(x, w3, g1, b1, w1, g2, b2, scale=scale)
    out = jax.block_until_ready(out)
    assert out.shape == (N, Cout, H * scale, W * scale), out.shape

    ref = reference_forward(x, w3, g1, b1, w1, g2, b2, scale=scale)
    # bf16 MXU operands (f32 accumulation) -> slightly looser tolerance than f32.
    np.testing.assert_allclose(np.asarray(out), np.asarray(ref),
                               rtol=5e-2, atol=5e-2)
    print("KERNEL_OK")
</pallas_src>

<mosaic_0001>
module attributes {stable_mosaic.version = 11 : i64} {
  func.func @_decoder_block_kernel(%arg0: i32, %arg1: memref<2x256x72xbf16, #tpu.memory_space<vmem>>, %arg2: memref<72x8xbf16, #tpu.memory_space<vmem>>, %arg3: memref<1x8xf32, #tpu.memory_space<vmem>>, %arg4: memref<1x8xf32, #tpu.memory_space<vmem>>, %arg5: memref<32x16xbf16, #tpu.memory_space<vmem>>, %arg6: memref<16x8xbf16, #tpu.memory_space<vmem>>, %arg7: memref<16x1xf32, #tpu.memory_space<vmem>>, %arg8: memref<16x1xf32, #tpu.memory_space<vmem>>, %arg9: memref<2x16x1024xf32, #tpu.memory_space<vmem>>, %arg10: memref<2x256x8xf32, #tpu.memory_space<vmem>>) attributes {dimension_semantics = [#tpu.dimension_semantics<arbitrary>], iteration_bounds = array<i64: 1>, scalar_prefetch = 0 : i64, scratch_operands = 1 : i64, tpu.core_type = #tpu.core_type<tc>, window_params = [{pipeline_mode = #tpu.pipeline_mode<synchronous>, transform_indices = @transform_0, window_bounds = array<i64: 2, 256, 72>}, {pipeline_mode = #tpu.pipeline_mode<synchronous>, transform_indices = @transform_1, window_bounds = array<i64: 72, 8>}, {pipeline_mode = #tpu.pipeline_mode<synchronous>, transform_indices = @transform_2, window_bounds = array<i64: 1, 8>}, {pipeline_mode = #tpu.pipeline_mode<synchronous>, transform_indices = @transform_3, window_bounds = array<i64: 1, 8>}, {pipeline_mode = #tpu.pipeline_mode<synchronous>, transform_indices = @transform_4, window_bounds = array<i64: 32, 16>}, {pipeline_mode = #tpu.pipeline_mode<synchronous>, transform_indices = @transform_5, window_bounds = array<i64: 16, 8>}, {pipeline_mode = #tpu.pipeline_mode<synchronous>, transform_indices = @transform_6, window_bounds = array<i64: 16, 1>}, {pipeline_mode = #tpu.pipeline_mode<synchronous>, transform_indices = @transform_7, window_bounds = array<i64: 16, 1>}, {pipeline_mode = #tpu.pipeline_mode<synchronous>, transform_indices = @transform_8, window_bounds = array<i64: 2, 16, 1024>}]} {
    %cst = arith.constant 0.000000e+00 : f32
    %0 = vector.broadcast %cst : f32 to vector<1x8xf32>
    %c0 = arith.constant 0 : index
    %c0_0 = arith.constant 0 : index
    %c0_1 = arith.constant 0 : index
    %1 = vector.load %arg1[%c0, %c0_0, %c0_1] : memref<2x256x72xbf16, #tpu.memory_space<vmem>>, vector<1x256x72xbf16>
    %2 = vector.shape_cast %1 : vector<1x256x72xbf16> to vector<256x72xbf16>
    %c0_2 = arith.constant 0 : index
    %c0_3 = arith.constant 0 : index
    %3 = vector.load %arg2[%c0_2, %c0_3] : memref<72x8xbf16, #tpu.memory_space<vmem>>, vector<72x8xbf16>
    %cst_4 = arith.constant dense<0.000000e+00> : vector<256x8xf32>
    %4 = tpu.matmul %2, %3, %cst_4 {dimension_numbers = #tpu.dot_dimension_numbers<[1], [0], [0], [1], [0, 0, 1, 1], [], []>} : vector<256x72xbf16>, vector<72x8xbf16>, vector<256x8xf32> -> vector<256x8xf32>
    %c0_5 = arith.constant 0 : index
    %c0_6 = arith.constant 0 : index
    %c0_7 = arith.constant 0 : index
    %5 = vector.load %arg10[%c0_5, %c0_6, %c0_7] : memref<2x256x8xf32, #tpu.memory_space<vmem>>, vector<1x256x8xf32>
    %6 = vector.shape_cast %5 : vector<1x256x8xf32> to vector<256x8xf32>
    %7 = vector.shape_cast %4 : vector<256x8xf32> to vector<1x256x8xf32>
    tpu.vector_store %arg10[%c0_5, %c0_6, %c0_7], %7 {strides = array<i32>} : memref<2x256x8xf32, #tpu.memory_space<vmem>>, vector<1x256x8xf32>,
    %cst_8 = arith.constant dense<0.000000e+00> : vector<8xf32>
    %8 = vector.multi_reduction <add>, %4, %cst_8 [0] : vector<256x8xf32> to vector<8xf32>
    %9 = vector.shape_cast %8 : vector<8xf32> to vector<1x8xf32>
    %10 = arith.addf %0, %9 : vector<1x8xf32>
    %c1 = arith.constant 1 : index
    %c0_9 = arith.constant 0 : index
    %c0_10 = arith.constant 0 : index
    %11 = vector.load %arg1[%c1, %c0_9, %c0_10] : memref<2x256x72xbf16, #tpu.memory_space<vmem>>, vector<1x256x72xbf16>
    %12 = vector.shape_cast %11 : vector<1x256x72xbf16> to vector<256x72xbf16>
    %c0_11 = arith.constant 0 : index
    %c0_12 = arith.constant 0 : index
    %13 = vector.load %arg2[%c0_11, %c0_12] : memref<72x8xbf16, #tpu.memory_space<vmem>>, vector<72x8xbf16>
    %cst_13 = arith.constant dense<0.000000e+00> : vector<256x8xf32>
    %14 = tpu.matmul %12, %13, %cst_13 {dimension_numbers = #tpu.dot_dimension_numbers<[1], [0], [0], [1], [0, 0, 1, 1], [], []>} : vector<256x72xbf16>, vector<72x8xbf16>, vector<256x8xf32> -> vector<256x8xf32>
    %c1_14 = arith.constant 1 : index
    %c0_15 = arith.constant 0 : index
    %c0_16 = arith.constant 0 : index
    %15 = vector.load %arg10[%c1_14, %c0_15, %c0_16] : memref<2x256x8xf32, #tpu.memory_space<vmem>>, vector<1x256x8xf32>
    %16 = vector.shape_cast %15 : vector<1x256x8xf32> to vector<256x8xf32>
    %17 = vector.shape_cast %14 : vector<256x8xf32> to vector<1x256x8xf32>
    tpu.vector_store %arg10[%c1_14, %c0_15, %c0_16], %17 {strides = array<i32>} : memref<2x256x8xf32, #tpu.memory_space<vmem>>, vector<1x256x8xf32>,
    %cst_17 = arith.constant dense<0.000000e+00> : vector<8xf32>
    %18 = vector.multi_reduction <add>, %14, %cst_17 [0] : vector<256x8xf32> to vector<8xf32>
    %19 = vector.shape_cast %18 : vector<8xf32> to vector<1x8xf32>
    %20 = arith.addf %10, %19 : vector<1x8xf32>
    %cst_18 = arith.constant 0.001953125 : f32
    %21 = vector.broadcast %cst_18 : f32 to vector<1x8xf32>
    %22 = arith.mulf %20, %21 : vector<1x8xf32>
    %cst_19 = arith.constant 0.000000e+00 : f32
    %23 = vector.broadcast %cst_19 : f32 to vector<1x8xf32>
    %c0_20 = arith.constant 0 : index
    %c0_21 = arith.constant 0 : index
    %c0_22 = arith.constant 0 : index
    %24 = vector.load %arg10[%c0_20, %c0_21, %c0_22] : memref<2x256x8xf32, #tpu.memory_space<vmem>>, vector<1x256x8xf32>
    %25 = vector.shape_cast %24 : vector<1x256x8xf32> to vector<256x8xf32>
    %26 = vector.broadcast %22 : vector<1x8xf32> to vector<256x8xf32>
    %27 = arith.subf %25, %26 : vector<256x8xf32>
    %28 = arith.mulf %27, %27 : vector<256x8xf32>
    %cst_23 = arith.constant dense<0.000000e+00> : vector<8xf32>
    %29 = vector.multi_reduction <add>, %28, %cst_23 [0] : vector<256x8xf32> to vector<8xf32>
    %30 = vector.shape_cast %29 : vector<8xf32> to vector<1x8xf32>
    %31 = arith.addf %23, %30 : vector<1x8xf32>
    %c1_24 = arith.constant 1 : index
    %c0_25 = arith.constant 0 : index
    %c0_26 = arith.constant 0 : index
    %32 = vector.load %arg10[%c1_24, %c0_25, %c0_26] : memref<2x256x8xf32, #tpu.memory_space<vmem>>, vector<1x256x8xf32>
    %33 = vector.shape_cast %32 : vector<1x256x8xf32> to vector<256x8xf32>
    %34 = vector.broadcast %22 : vector<1x8xf32> to vector<256x8xf32>
    %35 = arith.subf %33, %34 : vector<256x8xf32>
    %36 = arith.mulf %35, %35 : vector<256x8xf32>
    %cst_27 = arith.constant dense<0.000000e+00> : vector<8xf32>
    %37 = vector.multi_reduction <add>, %36, %cst_27 [0] : vector<256x8xf32> to vector<8xf32>
    %38 = vector.shape_cast %37 : vector<8xf32> to vector<1x8xf32>
    %39 = arith.addf %31, %38 : vector<1x8xf32>
    %c0_28 = arith.constant 0 : index
    %c0_29 = arith.constant 0 : index
    %40 = vector.load %arg3[%c0_28, %c0_29] : memref<1x8xf32, #tpu.memory_space<vmem>>, vector<1x8xf32>
    %cst_30 = arith.constant 0.001953125 : f32
    %41 = vector.broadcast %cst_30 : f32 to vector<1x8xf32>
    %42 = arith.mulf %39, %41 : vector<1x8xf32>
    %cst_31 = arith.constant 9.99999974E-6 : f32
    %43 = vector.broadcast %cst_31 : f32 to vector<1x8xf32>
    %44 = arith.addf %42, %43 : vector<1x8xf32>
    %45 = math.rsqrt %44 : vector<1x8xf32>
    %46 = arith.mulf %40, %45 : vector<1x8xf32>
    %c0_32 = arith.constant 0 : index
    %c0_33 = arith.constant 0 : index
    %47 = vector.load %arg4[%c0_32, %c0_33] : memref<1x8xf32, #tpu.memory_space<vmem>>, vector<1x8xf32>
    %48 = arith.mulf %22, %46 : vector<1x8xf32>
    %49 = arith.subf %47, %48 : vector<1x8xf32>
    %c0_34 = arith.constant 0 : index
    %c0_35 = arith.constant 0 : index
    %50 = vector.load %arg5[%c0_34, %c0_35] : memref<32x16xbf16, #tpu.memory_space<vmem>>, vector<32x16xbf16>
    %51 = vector.shape_cast %50 : vector<32x16xbf16> to vector<1x32x16xbf16>
    %52 = vector.broadcast %51 : vector<1x32x16xbf16> to vector<16x32x16xbf16>
    %cst_36 = arith.constant 0.000000e+00 : f32
    %53 = vector.broadcast %cst_36 : f32 to vector<16x1xf32>
    %c0_37 = arith.constant 0 : index
    %c0_38 = arith.constant 0 : index
    %c0_39 = arith.constant 0 : index
    %54 = vector.load %arg10[%c0_37, %c0_38, %c0_39] : memref<2x256x8xf32, #tpu.memory_space<vmem>>, vector<1x256x8xf32>
    %55 = vector.shape_cast %54 : vector<1x256x8xf32> to vector<256x8xf32>
    %56 = vector.broadcast %46 : vector<1x8xf32> to vector<256x8xf32>
    %57 = arith.mulf %55, %56 : vector<256x8xf32>
    %58 = vector.broadcast %49 : vector<1x8xf32> to vector<256x8xf32>
    %59 = arith.addf %57, %58 : vector<256x8xf32>
    %cst_40 = arith.constant 0.000000e+00 : f32
    %60 = vector.broadcast %cst_40 : f32 to vector<256x8xf32>
    %61 = arith.maximumf %59, %60 : vector<256x8xf32>
    %62 = vector.shape_cast %61 : vector<256x8xf32> to vector<16x16x8xf32>
    %63 = arith.truncf %62 : vector<16x16x8xf32> to vector<16x16x8xbf16>
    %cst_41 = arith.constant dense<0.000000e+00> : vector<16x32x8xf32>
    %64 = tpu.matmul %52, %63, %cst_41 {dimension_numbers = #tpu.dot_dimension_numbers<[2], [1], [1], [2], [0, 0, 0, 1, 1, 2], [0], [0]>} : vector<16x32x16xbf16>, vector<16x16x8xbf16>, vector<16x32x8xf32> -> vector<16x32x8xf32>
    %65 = vector.extract_strided_slice %64 {offsets = [0, 0, 0], sizes = [1, 32, 8], strides = [1, 1, 1]} : vector<16x32x8xf32> to vector<1x32x8xf32>
    %66 = vector.shape_cast %65 : vector<1x32x8xf32> to vector<32x8xf32>
    %67 = vector.extract_strided_slice %64 {offsets = [0, 0, 0], sizes = [1, 32, 8], strides = [1, 1, 1]} : vector<16x32x8xf32> to vector<1x32x8xf32>
    %68 = vector.shape_cast %67 : vector<1x32x8xf32> to vector<32x8xf32>
    %cst_42 = arith.constant 5.161290e-01 : f32
    %69 = vector.broadcast %cst_42 : f32 to vector<32x8xf32>
    %70 = arith.mulf %68, %69 : vector<32x8xf32>
    %71 = vector.extract_strided_slice %64 {offsets = [1, 0, 0], sizes = [1, 32, 8], strides = [1, 1, 1]} : vector<16x32x8xf32> to vector<1x32x8xf32>
    %72 = vector.shape_cast %71 : vector<1x32x8xf32> to vector<32x8xf32>
    %cst_43 = arith.constant 0.483870953 : f32
    %73 = vector.broadcast %cst_43 : f32 to vector<32x8xf32>
    %74 = arith.mulf %72, %73 : vector<32x8xf32>
    %75 = arith.addf %70, %74 : vector<32x8xf32>
    %76 = vector.extract_strided_slice %64 {offsets = [0, 0, 0], sizes = [1, 32, 8], strides = [1, 1, 1]} : vector<16x32x8xf32> to vector<1x32x8xf32>
    %77 = vector.shape_cast %76 : vector<1x32x8xf32> to vector<32x8xf32>
    %cst_44 = arith.constant 0.0322580636 : f32
    %78 = vector.broadcast %cst_44 : f32 to vector<32x8xf32>
    %79 = arith.mulf %77, %78 : vector<32x8xf32>
    %80 = vector.extract_strided_slice %64 {offsets = [1, 0, 0], sizes = [1, 32, 8], strides = [1, 1, 1]} : vector<16x32x8xf32> to vector<1x32x8xf32>
    %81 = vector.shape_cast %80 : vector<1x32x8xf32> to vector<32x8xf32>
    %cst_45 = arith.constant 0.967741906 : f32
    %82 = vector.broadcast %cst_45 : f32 to vector<32x8xf32>
    %83 = arith.mulf %81, %82 : vector<32x8xf32>
    %84 = arith.addf %79, %83 : vector<32x8xf32>
    %85 = vector.extract_strided_slice %64 {offsets = [1, 0, 0], sizes = [1, 32, 8], strides = [1, 1, 1]} : vector<16x32x8xf32> to vector<1x32x8xf32>
    %86 = vector.shape_cast %85 : vector<1x32x8xf32> to vector<32x8xf32>
    %cst_46 = arith.constant 0.54838711 : f32
    %87 = vector.broadcast %cst_46 : f32 to vector<32x8xf32>
    %88 = arith.mulf %86, %87 : vector<32x8xf32>
    %89 = vector.extract_strided_slice %64 {offsets = [2, 0, 0], sizes = [1, 32, 8], strides = [1, 1, 1]} : vector<16x32x8xf32> to vector<1x32x8xf32>
    %90 = vector.shape_cast %89 : vector<1x32x8xf32> to vector<32x8xf32>
    %cst_47 = arith.constant 0.45161289 : f32
    %91 = vector.broadcast %cst_47 : f32 to vector<32x8xf32>
    %92 = arith.mulf %90, %91 : vector<32x8xf32>
    %93 = arith.addf %88, %92 : vector<32x8xf32>
    %94 = vector.extract_strided_slice %64 {offsets = [1, 0, 0], sizes = [1, 32, 8], strides = [1, 1, 1]} : vector<16x32x8xf32> to vector<1x32x8xf32>
    %95 = vector.shape_cast %94 : vector<1x32x8xf32> to vector<32x8xf32>
    %cst_48 = arith.constant 0.0645161271 : f32
    %96 = vector.broadcast %cst_48 : f32 to vector<32x8xf32>
    %97 = arith.mulf %95, %96 : vector<32x8xf32>
    %98 = vector.extract_strided_slice %64 {offsets = [2, 0, 0], sizes = [1, 32, 8], strides = [1, 1, 1]} : vector<16x32x8xf32> to vector<1x32x8xf32>
    %99 = vector.shape_cast %98 : vector<1x32x8xf32> to vector<32x8xf32>
    %cst_49 = arith.constant 0.935483872 : f32
    %100 = vector.broadcast %cst_49 : f32 to vector<32x8xf32>
    %101 = arith.mulf %99, %100 : vector<32x8xf32>
    %102 = arith.addf %97, %101 : vector<32x8xf32>
    %103 = vector.extract_strided_slice %64 {offsets = [2, 0, 0], sizes = [1, 32, 8], strides = [1, 1, 1]} : vector<16x32x8xf32> to vector<1x32x8xf32>
    %104 = vector.shape_cast %103 : vector<1x32x8xf32> to vector<32x8xf32>
    %cst_50 = arith.constant 0.580645144 : f32
    %105 = vector.broadcast %cst_50 : f32 to vector<32x8xf32>
    %106 = arith.mulf %104, %105 : vector<32x8xf32>
    %107 = vector.extract_strided_slice %64 {offsets = [3, 0, 0], sizes = [1, 32, 8], strides = [1, 1, 1]} : vector<16x32x8xf32> to vector<1x32x8xf32>
    %108 = vector.shape_cast %107 : vector<1x32x8xf32> to vector<32x8xf32>
    %cst_51 = arith.constant 0.419354826 : f32
    %109 = vector.broadcast %cst_51 : f32 to vector<32x8xf32>
    %110 = arith.mulf %108, %109 : vector<32x8xf32>
    %111 = arith.addf %106, %110 : vector<32x8xf32>
    %112 = vector.extract_strided_slice %64 {offsets = [2, 0, 0], sizes = [1, 32, 8], strides = [1, 1, 1]} : vector<16x32x8xf32> to vector<1x32x8xf32>
    %113 = vector.shape_cast %112 : vector<1x32x8xf32> to vector<32x8xf32>
    %cst_52 = arith.constant 0.0967741906 : f32
    %114 = vector.broadcast %cst_52 : f32 to vector<32x8xf32>
    %115 = arith.mulf %113, %114 : vector<32x8xf32>
    %116 = vector.extract_strided_slice %64 {offsets = [3, 0, 0], sizes = [1, 32, 8], strides = [1, 1, 1]} : vector<16x32x8xf32> to vector<1x32x8xf32>
    %117 = vector.shape_cast %116 : vector<1x32x8xf32> to vector<32x8xf32>
    %cst_53 = arith.constant 0.903225779 : f32
    %118 = vector.broadcast %cst_53 : f32 to vector<32x8xf32>
    %119 = arith.mulf %117, %118 : vector<32x8xf32>
    %120 = arith.addf %115, %119 : vector<32x8xf32>
    %121 = vector.extract_strided_slice %64 {offsets = [3, 0, 0], sizes = [1, 32, 8], strides = [1, 1, 1]} : vector<16x32x8xf32> to vector<1x32x8xf32>
    %122 = vector.shape_cast %121 : vector<1x32x8xf32> to vector<32x8xf32>
    %cst_54 = arith.constant 0.612903237 : f32
    %123 = vector.broadcast %cst_54 : f32 to vector<32x8xf32>
    %124 = arith.mulf %122, %123 : vector<32x8xf32>
    %125 = vector.extract_strided_slice %64 {offsets = [4, 0, 0], sizes = [1, 32, 8], strides = [1, 1, 1]} : vector<16x32x8xf32> to vector<1x32x8xf32>
    %126 = vector.shape_cast %125 : vector<1x32x8xf32> to vector<32x8xf32>
    %cst_55 = arith.constant 0.387096763 : f32
    %127 = vector.broadcast %cst_55 : f32 to vector<32x8xf32>
    %128 = arith.mulf %126, %127 : vector<32x8xf32>
    %129 = arith.addf %124, %128 : vector<32x8xf32>
    %130 = vector.extract_strided_slice %64 {offsets = [3, 0, 0], sizes = [1, 32, 8], strides = [1, 1, 1]} : vector<16x32x8xf32> to vector<1x32x8xf32>
    %131 = vector.shape_cast %130 : vector<1x32x8xf32> to vector<32x8xf32>
    %cst_56 = arith.constant 0.129032254 : f32
    %132 = vector.broadcast %cst_56 : f32 to vector<32x8xf32>
    %133 = arith.mulf %131, %132 : vector<32x8xf32>
    %134 = vector.extract_strided_slice %64 {offsets = [4, 0, 0], sizes = [1, 32, 8], strides = [1, 1, 1]} : vector<16x32x8xf32> to vector<1x32x8xf32>
    %135 = vector.shape_cast %134 : vector<1x32x8xf32> to vector<32x8xf32>
    %cst_57 = arith.constant 0.870967745 : f32
    %136 = vector.broadcast %cst_57 : f32 to vector<32x8xf32>
    %137 = arith.mulf %135, %136 : vector<32x8xf32>
    %138 = arith.addf %133, %137 : vector<32x8xf32>
    %139 = vector.extract_strided_slice %64 {offsets = [4, 0, 0], sizes = [1, 32, 8], strides = [1, 1, 1]} : vector<16x32x8xf32> to vector<1x32x8xf32>
    %140 = vector.shape_cast %139 : vector<1x32x8xf32> to vector<32x8xf32>
    %cst_58 = arith.constant 0.645161271 : f32
    %141 = vector.broadcast %cst_58 : f32 to vector<32x8xf32>
    %142 = arith.mulf %140, %141 : vector<32x8xf32>
    %143 = vector.extract_strided_slice %64 {offsets = [5, 0, 0], sizes = [1, 32, 8], strides = [1, 1, 1]} : vector<16x32x8xf32> to vector<1x32x8xf32>
    %144 = vector.shape_cast %143 : vector<1x32x8xf32> to vector<32x8xf32>
    %cst_59 = arith.constant 0.354838699 : f32
    %145 = vector.broadcast %cst_59 : f32 to vector<32x8xf32>
    %146 = arith.mulf %144, %145 : vector<32x8xf32>
    %147 = arith.addf %142, %146 : vector<32x8xf32>
    %148 = vector.extract_strided_slice %64 {offsets = [4, 0, 0], sizes = [1, 32, 8], strides = [1, 1, 1]} : vector<16x32x8xf32> to vector<1x32x8xf32>
    %149 = vector.shape_cast %148 : vector<1x32x8xf32> to vector<32x8xf32>
    %cst_60 = arith.constant 0.161290318 : f32
    %150 = vector.broadcast %cst_60 : f32 to vector<32x8xf32>
    %151 = arith.mulf %149, %150 : vector<32x8xf32>
    %152 = vector.extract_strided_slice %64 {offsets = [5, 0, 0], sizes = [1, 32, 8], strides = [1, 1, 1]} : vector<16x32x8xf32> to vector<1x32x8xf32>
    %153 = vector.shape_cast %152 : vector<1x32x8xf32> to vector<32x8xf32>
    %cst_61 = arith.constant 0.838709652 : f32
    %154 = vector.broadcast %cst_61 : f32 to vector<32x8xf32>
    %155 = arith.mulf %153, %154 : vector<32x8xf32>
    %156 = arith.addf %151, %155 : vector<32x8xf32>
    %157 = vector.extract_strided_slice %64 {offsets = [5, 0, 0], sizes = [1, 32, 8], strides = [1, 1, 1]} : vector<16x32x8xf32> to vector<1x32x8xf32>
    %158 = vector.shape_cast %157 : vector<1x32x8xf32> to vector<32x8xf32>
    %cst_62 = arith.constant 0.677419364 : f32
    %159 = vector.broadcast %cst_62 : f32 to vector<32x8xf32>
    %160 = arith.mulf %158, %159 : vector<32x8xf32>
    %161 = vector.extract_strided_slice %64 {offsets = [6, 0, 0], sizes = [1, 32, 8], strides = [1, 1, 1]} : vector<16x32x8xf32> to vector<1x32x8xf32>
    %162 = vector.shape_cast %161 : vector<1x32x8xf32> to vector<32x8xf32>
    %cst_63 = arith.constant 0.322580636 : f32
    %163 = vector.broadcast %cst_63 : f32 to vector<32x8xf32>
    %164 = arith.mulf %162, %163 : vector<32x8xf32>
    %165 = arith.addf %160, %164 : vector<32x8xf32>
    %166 = vector.extract_strided_slice %64 {offsets = [5, 0, 0], sizes = [1, 32, 8], strides = [1, 1, 1]} : vector<16x32x8xf32> to vector<1x32x8xf32>
    %167 = vector.shape_cast %166 : vector<1x32x8xf32> to vector<32x8xf32>
    %cst_64 = arith.constant 0.193548381 : f32
    %168 = vector.broadcast %cst_64 : f32 to vector<32x8xf32>
    %169 = arith.mulf %167, %168 : vector<32x8xf32>
    %170 = vector.extract_strided_slice %64 {offsets = [6, 0, 0], sizes = [1, 32, 8], strides = [1, 1, 1]} : vector<16x32x8xf32> to vector<1x32x8xf32>
    %171 = vector.shape_cast %170 : vector<1x32x8xf32> to vector<32x8xf32>
    %cst_65 = arith.constant 0.806451618 : f32
    %172 = vector.broadcast %cst_65 : f32 to vector<32x8xf32>
    %173 = arith.mulf %171, %172 : vector<32x8xf32>
    %174 = arith.addf %169, %173 : vector<32x8xf32>
    %175 = vector.extract_strided_slice %64 {offsets = [6, 0, 0], sizes = [1, 32, 8], strides = [1, 1, 1]} : vector<16x32x8xf32> to vector<1x32x8xf32>
    %176 = vector.shape_cast %175 : vector<1x32x8xf32> to vector<32x8xf32>
    %cst_66 = arith.constant 0.709677398 : f32
    %177 = vector.broadcast %cst_66 : f32 to vector<32x8xf32>
    %178 = arith.mulf %176, %177 : vector<32x8xf32>
    %179 = vector.extract_strided_slice %64 {offsets = [7, 0, 0], sizes = [1, 32, 8], strides = [1, 1, 1]} : vector<16x32x8xf32> to vector<1x32x8xf32>
    %180 = vector.shape_cast %179 : vector<1x32x8xf32> to vector<32x8xf32>
    %cst_67 = arith.constant 0.290322572 : f32
    %181 = vector.broadcast %cst_67 : f32 to vector<32x8xf32>
    %182 = arith.mulf %180, %181 : vector<32x8xf32>
    %183 = arith.addf %178, %182 : vector<32x8xf32>
    %184 = vector.extract_strided_slice %64 {offsets = [6, 0, 0], sizes = [1, 32, 8], strides = [1, 1, 1]} : vector<16x32x8xf32> to vector<1x32x8xf32>
    %185 = vector.shape_cast %184 : vector<1x32x8xf32> to vector<32x8xf32>
    %cst_68 = arith.constant 0.225806445 : f32
    %186 = vector.broadcast %cst_68 : f32 to vector<32x8xf32>
    %187 = arith.mulf %185, %186 : vector<32x8xf32>
    %188 = vector.extract_strided_slice %64 {offsets = [7, 0, 0], sizes = [1, 32, 8], strides = [1, 1, 1]} : vector<16x32x8xf32> to vector<1x32x8xf32>
    %189 = vector.shape_cast %188 : vector<1x32x8xf32> to vector<32x8xf32>
    %cst_69 = arith.constant 0.774193525 : f32
    %190 = vector.broadcast %cst_69 : f32 to vector<32x8xf32>
    %191 = arith.mulf %189, %190 : vector<32x8xf32>
    %192 = arith.addf %187, %191 : vector<32x8xf32>
    %193 = vector.extract_strided_slice %64 {offsets = [7, 0, 0], sizes = [1, 32, 8], strides = [1, 1, 1]} : vector<16x32x8xf32> to vector<1x32x8xf32>
    %194 = vector.shape_cast %193 : vector<1x32x8xf32> to vector<32x8xf32>
    %cst_70 = arith.constant 0.741935492 : f32
    %195 = vector.broadcast %cst_70 : f32 to vector<32x8xf32>
    %196 = arith.mulf %194, %195 : vector<32x8xf32>
    %197 = vector.extract_strided_slice %64 {offsets = [8, 0, 0], sizes = [1, 32, 8], strides = [1, 1, 1]} : vector<16x32x8xf32> to vector<1x32x8xf32>
    %198 = vector.shape_cast %197 : vector<1x32x8xf32> to vector<32x8xf32>
    %cst_71 = arith.constant 0.258064508 : f32
    %199 = vector.broadcast %cst_71 : f32 to vector<32x8xf32>
    %200 = arith.mulf %198, %199 : vector<32x8xf32>
    %201 = arith.addf %196, %200 : vector<32x8xf32>
    %202 = vector.extract_strided_slice %64 {offsets = [7, 0, 0], sizes = [1, 32, 8], strides = [1, 1, 1]} : vector<16x32x8xf32> to vector<1x32x8xf32>
    %203 = vector.shape_cast %202 : vector<1x32x8xf32> to vector<32x8xf32>
    %cst_72 = arith.constant 0.258064508 : f32
    %204 = vector.broadcast %cst_72 : f32 to vector<32x8xf32>
    %205 = arith.mulf %203, %204 : vector<32x8xf32>
    %206 = vector.extract_strided_slice %64 {offsets = [8, 0, 0], sizes = [1, 32, 8], strides = [1, 1, 1]} : vector<16x32x8xf32> to vector<1x32x8xf32>
    %207 = vector.shape_cast %206 : vector<1x32x8xf32> to vector<32x8xf32>
    %cst_73 = arith.constant 0.741935492 : f32
    %208 = vector.broadcast %cst_73 : f32 to vector<32x8xf32>
    %209 = arith.mulf %207, %208 : vector<32x8xf32>
    %210 = arith.addf %205, %209 : vector<32x8xf32>
    %211 = vector.extract_strided_slice %64 {offsets = [8, 0, 0], sizes = [1, 32, 8], strides = [1, 1, 1]} : vector<16x32x8xf32> to vector<1x32x8xf32>
    %212 = vector.shape_cast %211 : vector<1x32x8xf32> to vector<32x8xf32>
    %cst_74 = arith.constant 0.774193525 : f32
    %213 = vector.broadcast %cst_74 : f32 to vector<32x8xf32>
    %214 = arith.mulf %212, %213 : vector<32x8xf32>
    %215 = vector.extract_strided_slice %64 {offsets = [9, 0, 0], sizes = [1, 32, 8], strides = [1, 1, 1]} : vector<16x32x8xf32> to vector<1x32x8xf32>
    %216 = vector.shape_cast %215 : vector<1x32x8xf32> to vector<32x8xf32>
    %cst_75 = arith.constant 0.225806445 : f32
    %217 = vector.broadcast %cst_75 : f32 to vector<32x8xf32>
    %218 = arith.mulf %216, %217 : vector<32x8xf32>
    %219 = arith.addf %214, %218 : vector<32x8xf32>
    %220 = vector.extract_strided_slice %64 {offsets = [8, 0, 0], sizes = [1, 32, 8], strides = [1, 1, 1]} : vector<16x32x8xf32> to vector<1x32x8xf32>
    %221 = vector.shape_cast %220 : vector<1x32x8xf32> to vector<32x8xf32>
    %cst_76 = arith.constant 0.290322572 : f32
    %222 = vector.broadcast %cst_76 : f32 to vector<32x8xf32>
    %223 = arith.mulf %221, %222 : vector<32x8xf32>
    %224 = vector.extract_strided_slice %64 {offsets = [9, 0, 0], sizes = [1, 32, 8], strides = [1, 1, 1]} : vector<16x32x8xf32> to vector<1x32x8xf32>
    %225 = vector.shape_cast %224 : vector<1x32x8xf32> to vector<32x8xf32>
    %cst_77 = arith.constant 0.709677398 : f32
    %226 = vector.broadcast %cst_77 : f32 to vector<32x8xf32>
    %227 = arith.mulf %225, %226 : vector<32x8xf32>
    %228 = arith.addf %223, %227 : vector<32x8xf32>
    %229 = vector.extract_strided_slice %64 {offsets = [9, 0, 0], sizes = [1, 32, 8], strides = [1, 1, 1]} : vector<16x32x8xf32> to vector<1x32x8xf32>
    %230 = vector.shape_cast %229 : vector<1x32x8xf32> to vector<32x8xf32>
    %cst_78 = arith.constant 0.806451618 : f32
    %231 = vector.broadcast %cst_78 : f32 to vector<32x8xf32>
    %232 = arith.mulf %230, %231 : vector<32x8xf32>
    %233 = vector.extract_strided_slice %64 {offsets = [10, 0, 0], sizes = [1, 32, 8], strides = [1, 1, 1]} : vector<16x32x8xf32> to vector<1x32x8xf32>
    %234 = vector.shape_cast %233 : vector<1x32x8xf32> to vector<32x8xf32>
    %cst_79 = arith.constant 0.193548381 : f32
    %235 = vector.broadcast %cst_79 : f32 to vector<32x8xf32>
    %236 = arith.mulf %234, %235 : vector<32x8xf32>
    %237 = arith.addf %232, %236 : vector<32x8xf32>
    %238 = vector.extract_strided_slice %64 {offsets = [9, 0, 0], sizes = [1, 32, 8], strides = [1, 1, 1]} : vector<16x32x8xf32> to vector<1x32x8xf32>
    %239 = vector.shape_cast %238 : vector<1x32x8xf32> to vector<32x8xf32>
    %cst_80 = arith.constant 0.322580636 : f32
    %240 = vector.broadcast %cst_80 : f32 to vector<32x8xf32>
    %241 = arith.mulf %239, %240 : vector<32x8xf32>
    %242 = vector.extract_strided_slice %64 {offsets = [10, 0, 0], sizes = [1, 32, 8], strides = [1, 1, 1]} : vector<16x32x8xf32> to vector<1x32x8xf32>
    %243 = vector.shape_cast %242 : vector<1x32x8xf32> to vector<32x8xf32>
    %cst_81 = arith.constant 0.677419364 : f32
    %244 = vector.broadcast %cst_81 : f32 to vector<32x8xf32>
    %245 = arith.mulf %243, %244 : vector<32x8xf32>
    %246 = arith.addf %241, %245 : vector<32x8xf32>
    %247 = vector.extract_strided_slice %64 {offsets = [10, 0, 0], sizes = [1, 32, 8], strides = [1, 1, 1]} : vector<16x32x8xf32> to vector<1x32x8xf32>
    %248 = vector.shape_cast %247 : vector<1x32x8xf32> to vector<32x8xf32>
    %cst_82 = arith.constant 0.838709652 : f32
    %249 = vector.broadcast %cst_82 : f32 to vector<32x8xf32>
    %250 = arith.mulf %248, %249 : vector<32x8xf32>
    %251 = vector.extract_strided_slice %64 {offsets = [11, 0, 0], sizes = [1, 32, 8], strides = [1, 1, 1]} : vector<16x32x8xf32> to vector<1x32x8xf32>
    %252 = vector.shape_cast %251 : vector<1x32x8xf32> to vector<32x8xf32>
    %cst_83 = arith.constant 0.161290318 : f32
    %253 = vector.broadcast %cst_83 : f32 to vector<32x8xf32>
    %254 = arith.mulf %252, %253 : vector<32x8xf32>
    %255 = arith.addf %250, %254 : vector<32x8xf32>
    %256 = vector.extract_strided_slice %64 {offsets = [10, 0, 0], sizes = [1, 32, 8], strides = [1, 1, 1]} : vector<16x32x8xf32> to vector<1x32x8xf32>
    %257 = vector.shape_cast %256 : vector<1x32x8xf32> to vector<32x8xf32>
    %cst_84 = arith.constant 0.354838699 : f32
    %258 = vector.broadcast %cst_84 : f32 to vector<32x8xf32>
    %259 = arith.mulf %257, %258 : vector<32x8xf32>
    %260 = vector.extract_strided_slice %64 {offsets = [11, 0, 0], sizes = [1, 32, 8], strides = [1, 1, 1]} : vector<16x32x8xf32> to vector<1x32x8xf32>
    %261 = vector.shape_cast %260 : vector<1x32x8xf32> to vector<32x8xf32>
    %cst_85 = arith.constant 0.645161271 : f32
    %262 = vector.broadcast %cst_85 : f32 to vector<32x8xf32>
    %263 = arith.mulf %261, %262 : vector<32x8xf32>
    %264 = arith.addf %259, %263 : vector<32x8xf32>
    %265 = vector.extract_strided_slice %64 {offsets = [11, 0, 0], sizes = [1, 32, 8], strides = [1, 1, 1]} : vector<16x32x8xf32> to vector<1x32x8xf32>
    %266 = vector.shape_cast %265 : vector<1x32x8xf32> to vector<32x8xf32>
    %cst_86 = arith.constant 0.870967745 : f32
    %267 = vector.broadcast %cst_86 : f32 to vector<32x8xf32>
    %268 = arith.mulf %266, %267 : vector<32x8xf32>
    %269 = vector.extract_strided_slice %64 {offsets = [12, 0, 0], sizes = [1, 32, 8], strides = [1, 1, 1]} : vector<16x32x8xf32> to vector<1x32x8xf32>
    %270 = vector.shape_cast %269 : vector<1x32x8xf32> to vector<32x8xf32>
    %cst_87 = arith.constant 0.129032254 : f32
    %271 = vector.broadcast %cst_87 : f32 to vector<32x8xf32>
    %272 = arith.mulf %270, %271 : vector<32x8xf32>
    %273 = arith.addf %268, %272 : vector<32x8xf32>
    %274 = vector.extract_strided_slice %64 {offsets = [11, 0, 0], sizes = [1, 32, 8], strides = [1, 1, 1]} : vector<16x32x8xf32> to vector<1x32x8xf32>
    %275 = vector.shape_cast %274 : vector<1x32x8xf32> to vector<32x8xf32>
    %cst_88 = arith.constant 0.387096763 : f32
    %276 = vector.broadcast %cst_88 : f32 to vector<32x8xf32>
    %277 = arith.mulf %275, %276 : vector<32x8xf32>
    %278 = vector.extract_strided_slice %64 {offsets = [12, 0, 0], sizes = [1, 32, 8], strides = [1, 1, 1]} : vector<16x32x8xf32> to vector<1x32x8xf32>
    %279 = vector.shape_cast %278 : vector<1x32x8xf32> to vector<32x8xf32>
    %cst_89 = arith.constant 0.612903237 : f32
    %280 = vector.broadcast %cst_89 : f32 to vector<32x8xf32>
    %281 = arith.mulf %279, %280 : vector<32x8xf32>
    %282 = arith.addf %277, %281 : vector<32x8xf32>
    %283 = vector.extract_strided_slice %64 {offsets = [12, 0, 0], sizes = [1, 32, 8], strides = [1, 1, 1]} : vector<16x32x8xf32> to vector<1x32x8xf32>
    %284 = vector.shape_cast %283 : vector<1x32x8xf32> to vector<32x8xf32>
    %cst_90 = arith.constant 0.903225779 : f32
    %285 = vector.broadcast %cst_90 : f32 to vector<32x8xf32>
    %286 = arith.mulf %284, %285 : vector<32x8xf32>
    %287 = vector.extract_strided_slice %64 {offsets = [13, 0, 0], sizes = [1, 32, 8], strides = [1, 1, 1]} : vector<16x32x8xf32> to vector<1x32x8xf32>
    %288 = vector.shape_cast %287 : vector<1x32x8xf32> to vector<32x8xf32>
    %cst_91 = arith.constant 0.0967741906 : f32
    %289 = vector.broadcast %cst_91 : f32 to vector<32x8xf32>
    %290 = arith.mulf %288, %289 : vector<32x8xf32>
    %291 = arith.addf %286, %290 : vector<32x8xf32>
    %292 = vector.extract_strided_slice %64 {offsets = [12, 0, 0], sizes = [1, 32, 8], strides = [1, 1, 1]} : vector<16x32x8xf32> to vector<1x32x8xf32>
    %293 = vector.shape_cast %292 : vector<1x32x8xf32> to vector<32x8xf32>
    %cst_92 = arith.constant 0.419354826 : f32
    %294 = vector.broadcast %cst_92 : f32 to vector<32x8xf32>
    %295 = arith.mulf %293, %294 : vector<32x8xf32>
    %296 = vector.extract_strided_slice %64 {offsets = [13, 0, 0], sizes = [1, 32, 8], strides = [1, 1, 1]} : vector<16x32x8xf32> to vector<1x32x8xf32>
    %297 = vector.shape_cast %296 : vector<1x32x8xf32> to vector<32x8xf32>
    %cst_93 = arith.constant 0.580645144 : f32
    %298 = vector.broadcast %cst_93 : f32 to vector<32x8xf32>
    %299 = arith.mulf %297, %298 : vector<32x8xf32>
    %300 = arith.addf %295, %299 : vector<32x8xf32>
    %301 = vector.extract_strided_slice %64 {offsets = [13, 0, 0], sizes = [1, 32, 8], strides = [1, 1, 1]} : vector<16x32x8xf32> to vector<1x32x8xf32>
    %302 = vector.shape_cast %301 : vector<1x32x8xf32> to vector<32x8xf32>
    %cst_94 = arith.constant 0.935483872 : f32
    %303 = vector.broadcast %cst_94 : f32 to vector<32x8xf32>
    %304 = arith.mulf %302, %303 : vector<32x8xf32>
    %305 = vector.extract_strided_slice %64 {offsets = [14, 0, 0], sizes = [1, 32, 8], strides = [1, 1, 1]} : vector<16x32x8xf32> to vector<1x32x8xf32>
    %306 = vector.shape_cast %305 : vector<1x32x8xf32> to vector<32x8xf32>
    %cst_95 = arith.constant 0.0645161271 : f32
    %307 = vector.broadcast %cst_95 : f32 to vector<32x8xf32>
    %308 = arith.mulf %306, %307 : vector<32x8xf32>
    %309 = arith.addf %304, %308 : vector<32x8xf32>
    %310 = vector.extract_strided_slice %64 {offsets = [13, 0, 0], sizes = [1, 32, 8], strides = [1, 1, 1]} : vector<16x32x8xf32> to vector<1x32x8xf32>
    %311 = vector.shape_cast %310 : vector<1x32x8xf32> to vector<32x8xf32>
    %cst_96 = arith.constant 0.45161289 : f32
    %312 = vector.broadcast %cst_96 : f32 to vector<32x8xf32>
    %313 = arith.mulf %311, %312 : vector<32x8xf32>
    %314 = vector.extract_strided_slice %64 {offsets = [14, 0, 0], sizes = [1, 32, 8], strides = [1, 1, 1]} : vector<16x32x8xf32> to vector<1x32x8xf32>
    %315 = vector.shape_cast %314 : vector<1x32x8xf32> to vector<32x8xf32>
    %cst_97 = arith.constant 0.54838711 : f32
    %316 = vector.broadcast %cst_97 : f32 to vector<32x8xf32>
    %317 = arith.mulf %315, %316 : vector<32x8xf32>
    %318 = arith.addf %313, %317 : vector<32x8xf32>
    %319 = vector.extract_strided_slice %64 {offsets = [14, 0, 0], sizes = [1, 32, 8], strides = [1, 1, 1]} : vector<16x32x8xf32> to vector<1x32x8xf32>
    %320 = vector.shape_cast %319 : vector<1x32x8xf32> to vector<32x8xf32>
    %cst_98 = arith.constant 0.967741906 : f32
    %321 = vector.broadcast %cst_98 : f32 to vector<32x8xf32>
    %322 = arith.mulf %320, %321 : vector<32x8xf32>
    %323 = vector.extract_strided_slice %64 {offsets = [15, 0, 0], sizes = [1, 32, 8], strides = [1, 1, 1]} : vector<16x32x8xf32> to vector<1x32x8xf32>
    %324 = vector.shape_cast %323 : vector<1x32x8xf32> to vector<32x8xf32>
    %cst_99 = arith.constant 0.0322580636 : f32
    %325 = vector.broadcast %cst_99 : f32 to vector<32x8xf32>
    %326 = arith.mulf %324, %325 : vector<32x8xf32>
    %327 = arith.addf %322, %326 : vector<32x8xf32>
    %328 = vector.extract_strided_slice %64 {offsets = [14, 0, 0], sizes = [1, 32, 8], strides = [1, 1, 1]} : vector<16x32x8xf32> to vector<1x32x8xf32>
    %329 = vector.shape_cast %328 : vector<1x32x8xf32> to vector<32x8xf32>
    %cst_100 = arith.constant 0.483870953 : f32
    %330 = vector.broadcast %cst_100 : f32 to vector<32x8xf32>
    %331 = arith.mulf %329, %330 : vector<32x8xf32>
    %332 = vector.extract_strided_slice %64 {offsets = [15, 0, 0], sizes = [1, 32, 8], strides = [1, 1, 1]} : vector<16x32x8xf32> to vector<1x32x8xf32>
    %333 = vector.shape_cast %332 : vector<1x32x8xf32> to vector<32x8xf32>
    %cst_101 = arith.constant 5.161290e-01 : f32
    %334 = vector.broadcast %cst_101 : f32 to vector<32x8xf32>
    %335 = arith.mulf %333, %334 : vector<32x8xf32>
    %336 = arith.addf %331, %335 : vector<32x8xf32>
    %337 = vector.extract_strided_slice %64 {offsets = [15, 0, 0], sizes = [1, 32, 8], strides = [1, 1, 1]} : vector<16x32x8xf32> to vector<1x32x8xf32>
    %338 = vector.shape_cast %337 : vector<1x32x8xf32> to vector<32x8xf32>
    %339 = vector.shape_cast %66 : vector<32x8xf32> to vector<1x32x8xf32>
    %340 = vector.shape_cast %75 : vector<32x8xf32> to vector<1x32x8xf32>
    %341 = vector.shape_cast %84 : vector<32x8xf32> to vector<1x32x8xf32>
    %342 = vector.shape_cast %93 : vector<32x8xf32> to vector<1x32x8xf32>
    %343 = vector.shape_cast %102 : vector<32x8xf32> to vector<1x32x8xf32>
    %344 = vector.shape_cast %111 : vector<32x8xf32> to vector<1x32x8xf32>
    %345 = vector.shape_cast %120 : vector<32x8xf32> to vector<1x32x8xf32>
    %346 = vector.shape_cast %129 : vector<32x8xf32> to vector<1x32x8xf32>
    %347 = vector.shape_cast %138 : vector<32x8xf32> to vector<1x32x8xf32>
    %348 = vector.shape_cast %147 : vector<32x8xf32> to vector<1x32x8xf32>
    %349 = vector.shape_cast %156 : vector<32x8xf32> to vector<1x32x8xf32>
    %350 = vector.shape_cast %165 : vector<32x8xf32> to vector<1x32x8xf32>
    %351 = vector.shape_cast %174 : vector<32x8xf32> to vector<1x32x8xf32>
    %352 = vector.shape_cast %183 : vector<32x8xf32> to vector<1x32x8xf32>
    %353 = vector.shape_cast %192 : vector<32x8xf32> to vector<1x32x8xf32>
    %354 = vector.shape_cast %201 : vector<32x8xf32> to vector<1x32x8xf32>
    %355 = vector.shape_cast %210 : vector<32x8xf32> to vector<1x32x8xf32>
    %356 = vector.shape_cast %219 : vector<32x8xf32> to vector<1x32x8xf32>
    %357 = vector.shape_cast %228 : vector<32x8xf32> to vector<1x32x8xf32>
    %358 = vector.shape_cast %237 : vector<32x8xf32> to vector<1x32x8xf32>
    %359 = vector.shape_cast %246 : vector<32x8xf32> to vector<1x32x8xf32>
    %360 = vector.shape_cast %255 : vector<32x8xf32> to vector<1x32x8xf32>
    %361 = vector.shape_cast %264 : vector<32x8xf32> to vector<1x32x8xf32>
    %362 = vector.shape_cast %273 : vector<32x8xf32> to vector<1x32x8xf32>
    %363 = vector.shape_cast %282 : vector<32x8xf32> to vector<1x32x8xf32>
    %364 = vector.shape_cast %291 : vector<32x8xf32> to vector<1x32x8xf32>
    %365 = vector.shape_cast %300 : vector<32x8xf32> to vector<1x32x8xf32>
    %366 = vector.shape_cast %309 : vector<32x8xf32> to vector<1x32x8xf32>
    %367 = vector.shape_cast %318 : vector<32x8xf32> to vector<1x32x8xf32>
    %368 = vector.shape_cast %327 : vector<32x8xf32> to vector<1x32x8xf32>
    %369 = vector.shape_cast %336 : vector<32x8xf32> to vector<1x32x8xf32>
    %370 = vector.shape_cast %338 : vector<32x8xf32> to vector<1x32x8xf32>
    %371 = tpu.concatenate %339, %340, %341, %342, %343, %344, %345, %346, %347, %348, %349, %350, %351, %352, %353, %354 in 0 : vector<1x32x8xf32>, vector<1x32x8xf32>, vector<1x32x8xf32>, vector<1x32x8xf32>, vector<1x32x8xf32>, vector<1x32x8xf32>, vector<1x32x8xf32>, vector<1x32x8xf32>, vector<1x32x8xf32>, vector<1x32x8xf32>, vector<1x32x8xf32>, vector<1x32x8xf32>, vector<1x32x8xf32>, vector<1x32x8xf32>, vector<1x32x8xf32>, vector<1x32x8xf32> -> vector<16x32x8xf32>
    %372 = tpu.concatenate %355, %356, %357, %358, %359, %360, %361, %362, %363, %364, %365, %366, %367, %368, %369, %370 in 0 : vector<1x32x8xf32>, vector<1x32x8xf32>, vector<1x32x8xf32>, vector<1x32x8xf32>, vector<1x32x8xf32>, vector<1x32x8xf32>, vector<1x32x8xf32>, vector<1x32x8xf32>, vector<1x32x8xf32>, vector<1x32x8xf32>, vector<1x32x8xf32>, vector<1x32x8xf32>, vector<1x32x8xf32>, vector<1x32x8xf32>, vector<1x32x8xf32>, vector<1x32x8xf32> -> vector<16x32x8xf32>
    %373 = tpu.concatenate %371, %372 in 0 : vector<16x32x8xf32>, vector<16x32x8xf32> -> vector<32x32x8xf32>
    %374 = vector.shape_cast %373 : vector<32x32x8xf32> to vector<1024x8xf32>
    %c0_102 = arith.constant 0 : index
    %c0_103 = arith.constant 0 : index
    %375 = vector.load %arg6[%c0_102, %c0_103] : memref<16x8xbf16, #tpu.memory_space<vmem>>, vector<16x8xbf16>
    %376 = arith.truncf %374 : vector<1024x8xf32> to vector<1024x8xbf16>
    %cst_104 = arith.constant dense<0.000000e+00> : vector<16x1024xf32>
    %377 = tpu.matmul %375, %376, %cst_104 {dimension_numbers = #tpu.dot_dimension_numbers<[1], [1], [0], [0], [0, 0, 1, 0], [], []>} : vector<16x8xbf16>, vector<1024x8xbf16>, vector<16x1024xf32> -> vector<16x1024xf32>
    %c0_105 = arith.constant 0 : index
    %c0_106 = arith.constant 0 : index
    %c0_107 = arith.constant 0 : index
    %378 = vector.load %arg9[%c0_105, %c0_106, %c0_107] : memref<2x16x1024xf32, #tpu.memory_space<vmem>>, vector<1x16x1024xf32>
    %379 = vector.shape_cast %378 : vector<1x16x1024xf32> to vector<16x1024xf32>
    %380 = vector.shape_cast %377 : vector<16x1024xf32> to vector<1x16x1024xf32>
    tpu.vector_store %arg9[%c0_105, %c0_106, %c0_107], %380 {strides = array<i32>} : memref<2x16x1024xf32, #tpu.memory_space<vmem>>, vector<1x16x1024xf32>,
    %cst_108 = arith.constant dense<0.000000e+00> : vector<16xf32>
    %381 = vector.multi_reduction <add>, %377, %cst_108 [1] : vector<16x1024xf32> to vector<16xf32>
    %382 = vector.shape_cast %381 : vector<16xf32> to vector<16x1xf32>
    %383 = arith.addf %53, %382 : vector<16x1xf32>
    %c1_109 = arith.constant 1 : index
    %c0_110 = arith.constant 0 : index
    %c0_111 = arith.constant 0 : index
    %384 = vector.load %arg10[%c1_109, %c0_110, %c0_111] : memref<2x256x8xf32, #tpu.memory_space<vmem>>, vector<1x256x8xf32>
    %385 = vector.shape_cast %384 : vector<1x256x8xf32> to vector<256x8xf32>
    %386 = vector.broadcast %46 : vector<1x8xf32> to vector<256x8xf32>
    %387 = arith.mulf %385, %386 : vector<256x8xf32>
    %388 = vector.broadcast %49 : vector<1x8xf32> to vector<256x8xf32>
    %389 = arith.addf %387, %388 : vector<256x8xf32>
    %cst_112 = arith.constant 0.000000e+00 : f32
    %390 = vector.broadcast %cst_112 : f32 to vector<256x8xf32>
    %391 = arith.maximumf %389, %390 : vector<256x8xf32>
    %392 = vector.shape_cast %391 : vector<256x8xf32> to vector<16x16x8xf32>
    %393 = arith.truncf %392 : vector<16x16x8xf32> to vector<16x16x8xbf16>
    %cst_113 = arith.constant dense<0.000000e+00> : vector<16x32x8xf32>
    %394 = tpu.matmul %52, %393, %cst_113 {dimension_numbers = #tpu.dot_dimension_numbers<[2], [1], [1], [2], [0, 0, 0, 1, 1, 2], [0], [0]>} : vector<16x32x16xbf16>, vector<16x16x8xbf16>, vector<16x32x8xf32> -> vector<16x32x8xf32>
    %395 = vector.extract_strided_slice %394 {offsets = [0, 0, 0], sizes = [1, 32, 8], strides = [1, 1, 1]} : vector<16x32x8xf32> to vector<1x32x8xf32>
    %396 = vector.shape_cast %395 : vector<1x32x8xf32> to vector<32x8xf32>
    %397 = vector.extract_strided_slice %394 {offsets = [0, 0, 0], sizes = [1, 32, 8], strides = [1, 1, 1]} : vector<16x32x8xf32> to vector<1x32x8xf32>
    %398 = vector.shape_cast %397 : vector<1x32x8xf32> to vector<32x8xf32>
    %cst_114 = arith.constant 5.161290e-01 : f32
    %399 = vector.broadcast %cst_114 : f32 to vector<32x8xf32>
    %400 = arith.mulf %398, %399 : vector<32x8xf32>
    %401 = vector.extract_strided_slice %394 {offsets = [1, 0, 0], sizes = [1, 32, 8], strides = [1, 1, 1]} : vector<16x32x8xf32> to vector<1x32x8xf32>
    %402 = vector.shape_cast %401 : vector<1x32x8xf32> to vector<32x8xf32>
    %cst_115 = arith.constant 0.483870953 : f32
    %403 = vector.broadcast %cst_115 : f32 to vector<32x8xf32>
    %404 = arith.mulf %402, %403 : vector<32x8xf32>
    %405 = arith.addf %400, %404 : vector<32x8xf32>
    %406 = vector.extract_strided_slice %394 {offsets = [0, 0, 0], sizes = [1, 32, 8], strides = [1, 1, 1]} : vector<16x32x8xf32> to vector<1x32x8xf32>
    %407 = vector.shape_cast %406 : vector<1x32x8xf32> to vector<32x8xf32>
    %cst_116 = arith.constant 0.0322580636 : f32
    %408 = vector.broadcast %cst_116 : f32 to vector<32x8xf32>
    %409 = arith.mulf %407, %408 : vector<32x8xf32>
    %410 = vector.extract_strided_slice %394 {offsets = [1, 0, 0], sizes = [1, 32, 8], strides = [1, 1, 1]} : vector<16x32x8xf32> to vector<1x32x8xf32>
    %411 = vector.shape_cast %410 : vector<1x32x8xf32> to vector<32x8xf32>
    %cst_117 = arith.constant 0.967741906 : f32
    %412 = vector.broadcast %cst_117 : f32 to vector<32x8xf32>
    %413 = arith.mulf %411, %412 : vector<32x8xf32>
    %414 = arith.addf %409, %413 : vector<32x8xf32>
    %415 = vector.extract_strided_slice %394 {offsets = [1, 0, 0], sizes = [1, 32, 8], strides = [1, 1, 1]} : vector<16x32x8xf32> to vector<1x32x8xf32>
    %416 = vector.shape_cast %415 : vector<1x32x8xf32> to vector<32x8xf32>
    %cst_118 = arith.constant 0.54838711 : f32
    %417 = vector.broadcast %cst_118 : f32 to vector<32x8xf32>
    %418 = arith.mulf %416, %417 : vector<32x8xf32>
    %419 = vector.extract_strided_slice %394 {offsets = [2, 0, 0], sizes = [1, 32, 8], strides = [1, 1, 1]} : vector<16x32x8xf32> to vector<1x32x8xf32>
    %420 = vector.shape_cast %419 : vector<1x32x8xf32> to vector<32x8xf32>
    %cst_119 = arith.constant 0.45161289 : f32
    %421 = vector.broadcast %cst_119 : f32 to vector<32x8xf32>
    %422 = arith.mulf %420, %421 : vector<32x8xf32>
    %423 = arith.addf %418, %422 : vector<32x8xf32>
    %424 = vector.extract_strided_slice %394 {offsets = [1, 0, 0], sizes = [1, 32, 8], strides = [1, 1, 1]} : vector<16x32x8xf32> to vector<1x32x8xf32>
    %425 = vector.shape_cast %424 : vector<1x32x8xf32> to vector<32x8xf32>
    %cst_120 = arith.constant 0.0645161271 : f32
    %426 = vector.broadcast %cst_120 : f32 to vector<32x8xf32>
    %427 = arith.mulf %425, %426 : vector<32x8xf32>
    %428 = vector.extract_strided_slice %394 {offsets = [2, 0, 0], sizes = [1, 32, 8], strides = [1, 1, 1]} : vector<16x32x8xf32> to vector<1x32x8xf32>
    %429 = vector.shape_cast %428 : vector<1x32x8xf32> to vector<32x8xf32>
    %cst_121 = arith.constant 0.935483872 : f32
    %430 = vector.broadcast %cst_121 : f32 to vector<32x8xf32>
    %431 = arith.mulf %429, %430 : vector<32x8xf32>
    %432 = arith.addf %427, %431 : vector<32x8xf32>
    %433 = vector.extract_strided_slice %394 {offsets = [2, 0, 0], sizes = [1, 32, 8], strides = [1, 1, 1]} : vector<16x32x8xf32> to vector<1x32x8xf32>
    %434 = vector.shape_cast %433 : vector<1x32x8xf32> to vector<32x8xf32>
    %cst_122 = arith.constant 0.580645144 : f32
    %435 = vector.broadcast %cst_122 : f32 to vector<32x8xf32>
    %436 = arith.mulf %434, %435 : vector<32x8xf32>
    %437 = vector.extract_strided_slice %394 {offsets = [3, 0, 0], sizes = [1, 32, 8], strides = [1, 1, 1]} : vector<16x32x8xf32> to vector<1x32x8xf32>
    %438 = vector.shape_cast %437 : vector<1x32x8xf32> to vector<32x8xf32>
    %cst_123 = arith.constant 0.419354826 : f32
    %439 = vector.broadcast %cst_123 : f32 to vector<32x8xf32>
    %440 = arith.mulf %438, %439 : vector<32x8xf32>
    %441 = arith.addf %436, %440 : vector<32x8xf32>
    %442 = vector.extract_strided_slice %394 {offsets = [2, 0, 0], sizes = [1, 32, 8], strides = [1, 1, 1]} : vector<16x32x8xf32> to vector<1x32x8xf32>
    %443 = vector.shape_cast %442 : vector<1x32x8xf32> to vector<32x8xf32>
    %cst_124 = arith.constant 0.0967741906 : f32
    %444 = vector.broadcast %cst_124 : f32 to vector<32x8xf32>
    %445 = arith.mulf %443, %444 : vector<32x8xf32>
    %446 = vector.extract_strided_slice %394 {offsets = [3, 0, 0], sizes = [1, 32, 8], strides = [1, 1, 1]} : vector<16x32x8xf32> to vector<1x32x8xf32>
    %447 = vector.shape_cast %446 : vector<1x32x8xf32> to vector<32x8xf32>
    %cst_125 = arith.constant 0.903225779 : f32
    %448 = vector.broadcast %cst_125 : f32 to vector<32x8xf32>
    %449 = arith.mulf %447, %448 : vector<32x8xf32>
    %450 = arith.addf %445, %449 : vector<32x8xf32>
    %451 = vector.extract_strided_slice %394 {offsets = [3, 0, 0], sizes = [1, 32, 8], strides = [1, 1, 1]} : vector<16x32x8xf32> to vector<1x32x8xf32>
    %452 = vector.shape_cast %451 : vector<1x32x8xf32> to vector<32x8xf32>
    %cst_126 = arith.constant 0.612903237 : f32
    %453 = vector.broadcast %cst_126 : f32 to vector<32x8xf32>
    %454 = arith.mulf %452, %453 : vector<32x8xf32>
    %455 = vector.extract_strided_slice %394 {offsets = [4, 0, 0], sizes = [1, 32, 8], strides = [1, 1, 1]} : vector<16x32x8xf32> to vector<1x32x8xf32>
    %456 = vector.shape_cast %455 : vector<1x32x8xf32> to vector<32x8xf32>
    %cst_127 = arith.constant 0.387096763 : f32
    %457 = vector.broadcast %cst_127 : f32 to vector<32x8xf32>
    %458 = arith.mulf %456, %457 : vector<32x8xf32>
    %459 = arith.addf %454, %458 : vector<32x8xf32>
    %460 = vector.extract_strided_slice %394 {offsets = [3, 0, 0], sizes = [1, 32, 8], strides = [1, 1, 1]} : vector<16x32x8xf32> to vector<1x32x8xf32>
    %461 = vector.shape_cast %460 : vector<1x32x8xf32> to vector<32x8xf32>
    %cst_128 = arith.constant 0.129032254 : f32
    %462 = vector.broadcast %cst_128 : f32 to vector<32x8xf32>
    %463 = arith.mulf %461, %462 : vector<32x8xf32>
    %464 = vector.extract_strided_slice %394 {offsets = [4, 0, 0], sizes = [1, 32, 8], strides = [1, 1, 1]} : vector<16x32x8xf32> to vector<1x32x8xf32>
    %465 = vector.shape_cast %464 : vector<1x32x8xf32> to vector<32x8xf32>
    %cst_129 = arith.constant 0.870967745 : f32
    %466 = vector.broadcast %cst_129 : f32 to vector<32x8xf32>
    %467 = arith.mulf %465, %466 : vector<32x8xf32>
    %468 = arith.addf %463, %467 : vector<32x8xf32>
    %469 = vector.extract_strided_slice %394 {offsets = [4, 0, 0], sizes = [1, 32, 8], strides = [1, 1, 1]} : vector<16x32x8xf32> to vector<1x32x8xf32>
    %470 = vector.shape_cast %469 : vector<1x32x8xf32> to vector<32x8xf32>
    %cst_130 = arith.constant 0.645161271 : f32
    %471 = vector.broadcast %cst_130 : f32 to vector<32x8xf32>
    %472 = arith.mulf %470, %471 : vector<32x8xf32>
    %473 = vector.extract_strided_slice %394 {offsets = [5, 0, 0], sizes = [1, 32, 8], strides = [1, 1, 1]} : vector<16x32x8xf32> to vector<1x32x8xf32>
    %474 = vector.shape_cast %473 : vector<1x32x8xf32> to vector<32x8xf32>
    %cst_131 = arith.constant 0.354838699 : f32
    %475 = vector.broadcast %cst_131 : f32 to vector<32x8xf32>
    %476 = arith.mulf %474, %475 : vector<32x8xf32>
    %477 = arith.addf %472, %476 : vector<32x8xf32>
    %478 = vector.extract_strided_slice %394 {offsets = [4, 0, 0], sizes = [1, 32, 8], strides = [1, 1, 1]} : vector<16x32x8xf32> to vector<1x32x8xf32>
    %479 = vector.shape_cast %478 : vector<1x32x8xf32> to vector<32x8xf32>
    %cst_132 = arith.constant 0.161290318 : f32
    %480 = vector.broadcast %cst_132 : f32 to vector<32x8xf32>
    %481 = arith.mulf %479, %480 : vector<32x8xf32>
    %482 = vector.extract_strided_slice %394 {offsets = [5, 0, 0], sizes = [1, 32, 8], strides = [1, 1, 1]} : vector<16x32x8xf32> to vector<1x32x8xf32>
    %483 = vector.shape_cast %482 : vector<1x32x8xf32> to vector<32x8xf32>
    %cst_133 = arith.constant 0.838709652 : f32
    %484 = vector.broadcast %cst_133 : f32 to vector<32x8xf32>
    %485 = arith.mulf %483, %484 : vector<32x8xf32>
    %486 = arith.addf %481, %485 : vector<32x8xf32>
    %487 = vector.extract_strided_slice %394 {offsets = [5, 0, 0], sizes = [1, 32, 8], strides = [1, 1, 1]} : vector<16x32x8xf32> to vector<1x32x8xf32>
    %488 = vector.shape_cast %487 : vector<1x32x8xf32> to vector<32x8xf32>
    %cst_134 = arith.constant 0.677419364 : f32
    %489 = vector.broadcast %cst_134 : f32 to vector<32x8xf32>
    %490 = arith.mulf %488, %489 : vector<32x8xf32>
    %491 = vector.extract_strided_slice %394 {offsets = [6, 0, 0], sizes = [1, 32, 8], strides = [1, 1, 1]} : vector<16x32x8xf32> to vector<1x32x8xf32>
    %492 = vector.shape_cast %491 : vector<1x32x8xf32> to vector<32x8xf32>
    %cst_135 = arith.constant 0.322580636 : f32
    %493 = vector.broadcast %cst_135 : f32 to vector<32x8xf32>
    %494 = arith.mulf %492, %493 : vector<32x8xf32>
    %495 = arith.addf %490, %494 : vector<32x8xf32>
    %496 = vector.extract_strided_slice %394 {offsets = [5, 0, 0], sizes = [1, 32, 8], strides = [1, 1, 1]} : vector<16x32x8xf32> to vector<1x32x8xf32>
    %497 = vector.shape_cast %496 : vector<1x32x8xf32> to vector<32x8xf32>
    %cst_136 = arith.constant 0.193548381 : f32
    %498 = vector.broadcast %cst_136 : f32 to vector<32x8xf32>
    %499 = arith.mulf %497, %498 : vector<32x8xf32>
    %500 = vector.extract_strided_slice %394 {offsets = [6, 0, 0], sizes = [1, 32, 8], strides = [1, 1, 1]} : vector<16x32x8xf32> to vector<1x32x8xf32>
    %501 = vector.shape_cast %500 : vector<1x32x8xf32> to vector<32x8xf32>
    %cst_137 = arith.constant 0.806451618 : f32
    %502 = vector.broadcast %cst_137 : f32 to vector<32x8xf32>
    %503 = arith.mulf %501, %502 : vector<32x8xf32>
    %504 = arith.addf %499, %503 : vector<32x8xf32>
    %505 = vector.extract_strided_slice %394 {offsets = [6, 0, 0], sizes = [1, 32, 8], strides = [1, 1, 1]} : vector<16x32x8xf32> to vector<1x32x8xf32>
    %506 = vector.shape_cast %505 : vector<1x32x8xf32> to vector<32x8xf32>
    %cst_138 = arith.constant 0.709677398 : f32
    %507 = vector.broadcast %cst_138 : f32 to vector<32x8xf32>
    %508 = arith.mulf %506, %507 : vector<32x8xf32>
    %509 = vector.extract_strided_slice %394 {offsets = [7, 0, 0], sizes = [1, 32, 8], strides = [1, 1, 1]} : vector<16x32x8xf32> to vector<1x32x8xf32>
    %510 = vector.shape_cast %509 : vector<1x32x8xf32> to vector<32x8xf32>
    %cst_139 = arith.constant 0.290322572 : f32
    %511 = vector.broadcast %cst_139 : f32 to vector<32x8xf32>
    %512 = arith.mulf %510, %511 : vector<32x8xf32>
    %513 = arith.addf %508, %512 : vector<32x8xf32>
    %514 = vector.extract_strided_slice %394 {offsets = [6, 0, 0], sizes = [1, 32, 8], strides = [1, 1, 1]} : vector<16x32x8xf32> to vector<1x32x8xf32>
    %515 = vector.shape_cast %514 : vector<1x32x8xf32> to vector<32x8xf32>
    %cst_140 = arith.constant 0.225806445 : f32
    %516 = vector.broadcast %cst_140 : f32 to vector<32x8xf32>
    %517 = arith.mulf %515, %516 : vector<32x8xf32>
    %518 = vector.extract_strided_slice %394 {offsets = [7, 0, 0], sizes = [1, 32, 8], strides = [1, 1, 1]} : vector<16x32x8xf32> to vector<1x32x8xf32>
    %519 = vector.shape_cast %518 : vector<1x32x8xf32> to vector<32x8xf32>
    %cst_141 = arith.constant 0.774193525 : f32
    %520 = vector.broadcast %cst_141 : f32 to vector<32x8xf32>
    %521 = arith.mulf %519, %520 : vector<32x8xf32>
    %522 = arith.addf %517, %521 : vector<32x8xf32>
    %523 = vector.extract_strided_slice %394 {offsets = [7, 0, 0], sizes = [1, 32, 8], strides = [1, 1, 1]} : vector<16x32x8xf32> to vector<1x32x8xf32>
    %524 = vector.shape_cast %523 : vector<1x32x8xf32> to vector<32x8xf32>
    %cst_142 = arith.constant 0.741935492 : f32
    %525 = vector.broadcast %cst_142 : f32 to vector<32x8xf32>
    %526 = arith.mulf %524, %525 : vector<32x8xf32>
    %527 = vector.extract_strided_slice %394 {offsets = [8, 0, 0], sizes = [1, 32, 8], strides = [1, 1, 1]} : vector<16x32x8xf32> to vector<1x32x8xf32>
    %528 = vector.shape_cast %527 : vector<1x32x8xf32> to vector<32x8xf32>
    %cst_143 = arith.constant 0.258064508 : f32
    %529 = vector.broadcast %cst_143 : f32 to vector<32x8xf32>
    %530 = arith.mulf %528, %529 : vector<32x8xf32>
    %531 = arith.addf %526, %530 : vector<32x8xf32>
    %532 = vector.extract_strided_slice %394 {offsets = [7, 0, 0], sizes = [1, 32, 8], strides = [1, 1, 1]} : vector<16x32x8xf32> to vector<1x32x8xf32>
    %533 = vector.shape_cast %532 : vector<1x32x8xf32> to vector<32x8xf32>
    %cst_144 = arith.constant 0.258064508 : f32
    %534 = vector.broadcast %cst_144 : f32 to vector<32x8xf32>
    %535 = arith.mulf %533, %534 : vector<32x8xf32>
    %536 = vector.extract_strided_slice %394 {offsets = [8, 0, 0], sizes = [1, 32, 8], strides = [1, 1, 1]} : vector<16x32x8xf32> to vector<1x32x8xf32>
    %537 = vector.shape_cast %536 : vector<1x32x8xf32> to vector<32x8xf32>
    %cst_145 = arith.constant 0.741935492 : f32
    %538 = vector.broadcast %cst_145 : f32 to vector<32x8xf32>
    %539 = arith.mulf %537, %538 : vector<32x8xf32>
    %540 = arith.addf %535, %539 : vector<32x8xf32>
    %541 = vector.extract_strided_slice %394 {offsets = [8, 0, 0], sizes = [1, 32, 8], strides = [1, 1, 1]} : vector<16x32x8xf32> to vector<1x32x8xf32>
    %542 = vector.shape_cast %541 : vector<1x32x8xf32> to vector<32x8xf32>
    %cst_146 = arith.constant 0.774193525 : f32
    %543 = vector.broadcast %cst_146 : f32 to vector<32x8xf32>
    %544 = arith.mulf %542, %543 : vector<32x8xf32>
    %545 = vector.extract_strided_slice %394 {offsets = [9, 0, 0], sizes = [1, 32, 8], strides = [1, 1, 1]} : vector<16x32x8xf32> to vector<1x32x8xf32>
    %546 = vector.shape_cast %545 : vector<1x32x8xf32> to vector<32x8xf32>
    %cst_147 = arith.constant 0.225806445 : f32
    %547 = vector.broadcast %cst_147 : f32 to vector<32x8xf32>
    %548 = arith.mulf %546, %547 : vector<32x8xf32>
    %549 = arith.addf %544, %548 : vector<32x8xf32>
    %550 = vector.extract_strided_slice %394 {offsets = [8, 0, 0], sizes = [1, 32, 8], strides = [1, 1, 1]} : vector<16x32x8xf32> to vector<1x32x8xf32>
    %551 = vector.shape_cast %550 : vector<1x32x8xf32> to vector<32x8xf32>
    %cst_148 = arith.constant 0.290322572 : f32
    %552 = vector.broadcast %cst_148 : f32 to vector<32x8xf32>
    %553 = arith.mulf %551, %552 : vector<32x8xf32>
    %554 = vector.extract_strided_slice %394 {offsets = [9, 0, 0], sizes = [1, 32, 8], strides = [1, 1, 1]} : vector<16x32x8xf32> to vector<1x32x8xf32>
    %555 = vector.shape_cast %554 : vector<1x32x8xf32> to vector<32x8xf32>
    %cst_149 = arith.constant 0.709677398 : f32
    %556 = vector.broadcast %cst_149 : f32 to vector<32x8xf32>
    %557 = arith.mulf %555, %556 : vector<32x8xf32>
    %558 = arith.addf %553, %557 : vector<32x8xf32>
    %559 = vector.extract_strided_slice %394 {offsets = [9, 0, 0], sizes = [1, 32, 8], strides = [1, 1, 1]} : vector<16x32x8xf32> to vector<1x32x8xf32>
    %560 = vector.shape_cast %559 : vector<1x32x8xf32> to vector<32x8xf32>
    %cst_150 = arith.constant 0.806451618 : f32
    %561 = vector.broadcast %cst_150 : f32 to vector<32x8xf32>
    %562 = arith.mulf %560, %561 : vector<32x8xf32>
    %563 = vector.extract_strided_slice %394 {offsets = [10, 0, 0], sizes = [1, 32, 8], strides = [1, 1, 1]} : vector<16x32x8xf32> to vector<1x32x8xf32>
    %564 = vector.shape_cast %563 : vector<1x32x8xf32> to vector<32x8xf32>
    %cst_151 = arith.constant 0.193548381 : f32
    %565 = vector.broadcast %cst_151 : f32 to vector<32x8xf32>
    %566 = arith.mulf %564, %565 : vector<32x8xf32>
    %567 = arith.addf %562, %566 : vector<32x8xf32>
    %568 = vector.extract_strided_slice %394 {offsets = [9, 0, 0], sizes = [1, 32, 8], strides = [1, 1, 1]} : vector<16x32x8xf32> to vector<1x32x8xf32>
    %569 = vector.shape_cast %568 : vector<1x32x8xf32> to vector<32x8xf32>
    %cst_152 = arith.constant 0.322580636 : f32
    %570 = vector.broadcast %cst_152 : f32 to vector<32x8xf32>
    %571 = arith.mulf %569, %570 : vector<32x8xf32>
    %572 = vector.extract_strided_slice %394 {offsets = [10, 0, 0], sizes = [1, 32, 8], strides = [1, 1, 1]} : vector<16x32x8xf32> to vector<1x32x8xf32>
    %573 = vector.shape_cast %572 : vector<1x32x8xf32> to vector<32x8xf32>
    %cst_153 = arith.constant 0.677419364 : f32
    %574 = vector.broadcast %cst_153 : f32 to vector<32x8xf32>
    %575 = arith.mulf %573, %574 : vector<32x8xf32>
    %576 = arith.addf %571, %575 : vector<32x8xf32>
    %577 = vector.extract_strided_slice %394 {offsets = [10, 0, 0], sizes = [1, 32, 8], strides = [1, 1, 1]} : vector<16x32x8xf32> to vector<1x32x8xf32>
    %578 = vector.shape_cast %577 : vector<1x32x8xf32> to vector<32x8xf32>
    %cst_154 = arith.constant 0.838709652 : f32
    %579 = vector.broadcast %cst_154 : f32 to vector<32x8xf32>
    %580 = arith.mulf %578, %579 : vector<32x8xf32>
    %581 = vector.extract_strided_slice %394 {offsets = [11, 0, 0], sizes = [1, 32, 8], strides = [1, 1, 1]} : vector<16x32x8xf32> to vector<1x32x8xf32>
    %582 = vector.shape_cast %581 : vector<1x32x8xf32> to vector<32x8xf32>
    %cst_155 = arith.constant 0.161290318 : f32
    %583 = vector.broadcast %cst_155 : f32 to vector<32x8xf32>
    %584 = arith.mulf %582, %583 : vector<32x8xf32>
    %585 = arith.addf %580, %584 : vector<32x8xf32>
    %586 = vector.extract_strided_slice %394 {offsets = [10, 0, 0], sizes = [1, 32, 8], strides = [1, 1, 1]} : vector<16x32x8xf32> to vector<1x32x8xf32>
    %587 = vector.shape_cast %586 : vector<1x32x8xf32> to vector<32x8xf32>
    %cst_156 = arith.constant 0.354838699 : f32
    %588 = vector.broadcast %cst_156 : f32 to vector<32x8xf32>
    %589 = arith.mulf %587, %588 : vector<32x8xf32>
    %590 = vector.extract_strided_slice %394 {offsets = [11, 0, 0], sizes = [1, 32, 8], strides = [1, 1, 1]} : vector<16x32x8xf32> to vector<1x32x8xf32>
    %591 = vector.shape_cast %590 : vector<1x32x8xf32> to vector<32x8xf32>
    %cst_157 = arith.constant 0.645161271 : f32
    %592 = vector.broadcast %cst_157 : f32 to vector<32x8xf32>
    %593 = arith.mulf %591, %592 : vector<32x8xf32>
    %594 = arith.addf %589, %593 : vector<32x8xf32>
    %595 = vector.extract_strided_slice %394 {offsets = [11, 0, 0], sizes = [1, 32, 8], strides = [1, 1, 1]} : vector<16x32x8xf32> to vector<1x32x8xf32>
    %596 = vector.shape_cast %595 : vector<1x32x8xf32> to vector<32x8xf32>
    %cst_158 = arith.constant 0.870967745 : f32
    %597 = vector.broadcast %cst_158 : f32 to vector<32x8xf32>
    %598 = arith.mulf %596, %597 : vector<32x8xf32>
    %599 = vector.extract_strided_slice %394 {offsets = [12, 0, 0], sizes = [1, 32, 8], strides = [1, 1, 1]} : vector<16x32x8xf32> to vector<1x32x8xf32>
    %600 = vector.shape_cast %599 : vector<1x32x8xf32> to vector<32x8xf32>
    %cst_159 = arith.constant 0.129032254 : f32
    %601 = vector.broadcast %cst_159 : f32 to vector<32x8xf32>
    %602 = arith.mulf %600, %601 : vector<32x8xf32>
    %603 = arith.addf %598, %602 : vector<32x8xf32>
    %604 = vector.extract_strided_slice %394 {offsets = [11, 0, 0], sizes = [1, 32, 8], strides = [1, 1, 1]} : vector<16x32x8xf32> to vector<1x32x8xf32>
    %605 = vector.shape_cast %604 : vector<1x32x8xf32> to vector<32x8xf32>
    %cst_160 = arith.constant 0.387096763 : f32
    %606 = vector.broadcast %cst_160 : f32 to vector<32x8xf32>
    %607 = arith.mulf %605, %606 : vector<32x8xf32>
    %608 = vector.extract_strided_slice %394 {offsets = [12, 0, 0], sizes = [1, 32, 8], strides = [1, 1, 1]} : vector<16x32x8xf32> to vector<1x32x8xf32>
    %609 = vector.shape_cast %608 : vector<1x32x8xf32> to vector<32x8xf32>
    %cst_161 = arith.constant 0.612903237 : f32
    %610 = vector.broadcast %cst_161 : f32 to vector<32x8xf32>
    %611 = arith.mulf %609, %610 : vector<32x8xf32>
    %612 = arith.addf %607, %611 : vector<32x8xf32>
    %613 = vector.extract_strided_slice %394 {offsets = [12, 0, 0], sizes = [1, 32, 8], strides = [1, 1, 1]} : vector<16x32x8xf32> to vector<1x32x8xf32>
    %614 = vector.shape_cast %613 : vector<1x32x8xf32> to vector<32x8xf32>
    %cst_162 = arith.constant 0.903225779 : f32
    %615 = vector.broadcast %cst_162 : f32 to vector<32x8xf32>
    %616 = arith.mulf %614, %615 : vector<32x8xf32>
    %617 = vector.extract_strided_slice %394 {offsets = [13, 0, 0], sizes = [1, 32, 8], strides = [1, 1, 1]} : vector<16x32x8xf32> to vector<1x32x8xf32>
    %618 = vector.shape_cast %617 : vector<1x32x8xf32> to vector<32x8xf32>
    %cst_163 = arith.constant 0.0967741906 : f32
    %619 = vector.broadcast %cst_163 : f32 to vector<32x8xf32>
    %620 = arith.mulf %618, %619 : vector<32x8xf32>
    %621 = arith.addf %616, %620 : vector<32x8xf32>
    %622 = vector.extract_strided_slice %394 {offsets = [12, 0, 0], sizes = [1, 32, 8], strides = [1, 1, 1]} : vector<16x32x8xf32> to vector<1x32x8xf32>
    %623 = vector.shape_cast %622 : vector<1x32x8xf32> to vector<32x8xf32>
    %cst_164 = arith.constant 0.419354826 : f32
    %624 = vector.broadcast %cst_164 : f32 to vector<32x8xf32>
    %625 = arith.mulf %623, %624 : vector<32x8xf32>
    %626 = vector.extract_strided_slice %394 {offsets = [13, 0, 0], sizes = [1, 32, 8], strides = [1, 1, 1]} : vector<16x32x8xf32> to vector<1x32x8xf32>
    %627 = vector.shape_cast %626 : vector<1x32x8xf32> to vector<32x8xf32>
    %cst_165 = arith.constant 0.580645144 : f32
    %628 = vector.broadcast %cst_165 : f32 to vector<32x8xf32>
    %629 = arith.mulf %627, %628 : vector<32x8xf32>
    %630 = arith.addf %625, %629 : vector<32x8xf32>
    %631 = vector.extract_strided_slice %394 {offsets = [13, 0, 0], sizes = [1, 32, 8], strides = [1, 1, 1]} : vector<16x32x8xf32> to vector<1x32x8xf32>
    %632 = vector.shape_cast %631 : vector<1x32x8xf32> to vector<32x8xf32>
    %cst_166 = arith.constant 0.935483872 : f32
    %633 = vector.broadcast %cst_166 : f32 to vector<32x8xf32>
    %634 = arith.mulf %632, %633 : vector<32x8xf32>
    %635 = vector.extract_strided_slice %394 {offsets = [14, 0, 0], sizes = [1, 32, 8], strides = [1, 1, 1]} : vector<16x32x8xf32> to vector<1x32x8xf32>
    %636 = vector.shape_cast %635 : vector<1x32x8xf32> to vector<32x8xf32>
    %cst_167 = arith.constant 0.0645161271 : f32
    %637 = vector.broadcast %cst_167 : f32 to vector<32x8xf32>
    %638 = arith.mulf %636, %637 : vector<32x8xf32>
    %639 = arith.addf %634, %638 : vector<32x8xf32>
    %640 = vector.extract_strided_slice %394 {offsets = [13, 0, 0], sizes = [1, 32, 8], strides = [1, 1, 1]} : vector<16x32x8xf32> to vector<1x32x8xf32>
    %641 = vector.shape_cast %640 : vector<1x32x8xf32> to vector<32x8xf32>
    %cst_168 = arith.constant 0.45161289 : f32
    %642 = vector.broadcast %cst_168 : f32 to vector<32x8xf32>
    %643 = arith.mulf %641, %642 : vector<32x8xf32>
    %644 = vector.extract_strided_slice %394 {offsets = [14, 0, 0], sizes = [1, 32, 8], strides = [1, 1, 1]} : vector<16x32x8xf32> to vector<1x32x8xf32>
    %645 = vector.shape_cast %644 : vector<1x32x8xf32> to vector<32x8xf32>
    %cst_169 = arith.constant 0.54838711 : f32
    %646 = vector.broadcast %cst_169 : f32 to vector<32x8xf32>
    %647 = arith.mulf %645, %646 : vector<32x8xf32>
    %648 = arith.addf %643, %647 : vector<32x8xf32>
    %649 = vector.extract_strided_slice %394 {offsets = [14, 0, 0], sizes = [1, 32, 8], strides = [1, 1, 1]} : vector<16x32x8xf32> to vector<1x32x8xf32>
    %650 = vector.shape_cast %649 : vector<1x32x8xf32> to vector<32x8xf32>
    %cst_170 = arith.constant 0.967741906 : f32
    %651 = vector.broadcast %cst_170 : f32 to vector<32x8xf32>
    %652 = arith.mulf %650, %651 : vector<32x8xf32>
    %653 = vector.extract_strided_slice %394 {offsets = [15, 0, 0], sizes = [1, 32, 8], strides = [1, 1, 1]} : vector<16x32x8xf32> to vector<1x32x8xf32>
    %654 = vector.shape_cast %653 : vector<1x32x8xf32> to vector<32x8xf32>
    %cst_171 = arith.constant 0.0322580636 : f32
    %655 = vector.broadcast %cst_171 : f32 to vector<32x8xf32>
    %656 = arith.mulf %654, %655 : vector<32x8xf32>
    %657 = arith.addf %652, %656 : vector<32x8xf32>
    %658 = vector.extract_strided_slice %394 {offsets = [14, 0, 0], sizes = [1, 32, 8], strides = [1, 1, 1]} : vector<16x32x8xf32> to vector<1x32x8xf32>
    %659 = vector.shape_cast %658 : vector<1x32x8xf32> to vector<32x8xf32>
    %cst_172 = arith.constant 0.483870953 : f32
    %660 = vector.broadcast %cst_172 : f32 to vector<32x8xf32>
    %661 = arith.mulf %659, %660 : vector<32x8xf32>
    %662 = vector.extract_strided_slice %394 {offsets = [15, 0, 0], sizes = [1, 32, 8], strides = [1, 1, 1]} : vector<16x32x8xf32> to vector<1x32x8xf32>
    %663 = vector.shape_cast %662 : vector<1x32x8xf32> to vector<32x8xf32>
    %cst_173 = arith.constant 5.161290e-01 : f32
    %664 = vector.broadcast %cst_173 : f32 to vector<32x8xf32>
    %665 = arith.mulf %663, %664 : vector<32x8xf32>
    %666 = arith.addf %661, %665 : vector<32x8xf32>
    %667 = vector.extract_strided_slice %394 {offsets = [15, 0, 0], sizes = [1, 32, 8], strides = [1, 1, 1]} : vector<16x32x8xf32> to vector<1x32x8xf32>
    %668 = vector.shape_cast %667 : vector<1x32x8xf32> to vector<32x8xf32>
    %669 = vector.shape_cast %396 : vector<32x8xf32> to vector<1x32x8xf32>
    %670 = vector.shape_cast %405 : vector<32x8xf32> to vector<1x32x8xf32>
    %671 = vector.shape_cast %414 : vector<32x8xf32> to vector<1x32x8xf32>
    %672 = vector.shape_cast %423 : vector<32x8xf32> to vector<1x32x8xf32>
    %673 = vector.shape_cast %432 : vector<32x8xf32> to vector<1x32x8xf32>
    %674 = vector.shape_cast %441 : vector<32x8xf32> to vector<1x32x8xf32>
    %675 = vector.shape_cast %450 : vector<32x8xf32> to vector<1x32x8xf32>
    %676 = vector.shape_cast %459 : vector<32x8xf32> to vector<1x32x8xf32>
    %677 = vector.shape_cast %468 : vector<32x8xf32> to vector<1x32x8xf32>
    %678 = vector.shape_cast %477 : vector<32x8xf32> to vector<1x32x8xf32>
    %679 = vector.shape_cast %486 : vector<32x8xf32> to vector<1x32x8xf32>
    %680 = vector.shape_cast %495 : vector<32x8xf32> to vector<1x32x8xf32>
    %681 = vector.shape_cast %504 : vector<32x8xf32> to vector<1x32x8xf32>
    %682 = vector.shape_cast %513 : vector<32x8xf32> to vector<1x32x8xf32>
    %683 = vector.shape_cast %522 : vector<32x8xf32> to vector<1x32x8xf32>
    %684 = vector.shape_cast %531 : vector<32x8xf32> to vector<1x32x8xf32>
    %685 = vector.shape_cast %540 : vector<32x8xf32> to vector<1x32x8xf32>
    %686 = vector.shape_cast %549 : vector<32x8xf32> to vector<1x32x8xf32>
    %687 = vector.shape_cast %558 : vector<32x8xf32> to vector<1x32x8xf32>
    %688 = vector.shape_cast %567 : vector<32x8xf32> to vector<1x32x8xf32>
    %689 = vector.shape_cast %576 : vector<32x8xf32> to vector<1x32x8xf32>
    %690 = vector.shape_cast %585 : vector<32x8xf32> to vector<1x32x8xf32>
    %691 = vector.shape_cast %594 : vector<32x8xf32> to vector<1x32x8xf32>
    %692 = vector.shape_cast %603 : vector<32x8xf32> to vector<1x32x8xf32>
    %693 = vector.shape_cast %612 : vector<32x8xf32> to vector<1x32x8xf32>
    %694 = vector.shape_cast %621 : vector<32x8xf32> to vector<1x32x8xf32>
    %695 = vector.shape_cast %630 : vector<32x8xf32> to vector<1x32x8xf32>
    %696 = vector.shape_cast %639 : vector<32x8xf32> to vector<1x32x8xf32>
    %697 = vector.shape_cast %648 : vector<32x8xf32> to vector<1x32x8xf32>
    %698 = vector.shape_cast %657 : vector<32x8xf32> to vector<1x32x8xf32>
    %699 = vector.shape_cast %666 : vector<32x8xf32> to vector<1x32x8xf32>
    %700 = vector.shape_cast %668 : vector<32x8xf32> to vector<1x32x8xf32>
    %701 = tpu.concatenate %669, %670, %671, %672, %673, %674, %675, %676, %677, %678, %679, %680, %681, %682, %683, %684 in 0 : vector<1x32x8xf32>, vector<1x32x8xf32>, vector<1x32x8xf32>, vector<1x32x8xf32>, vector<1x32x8xf32>, vector<1x32x8xf32>, vector<1x32x8xf32>, vector<1x32x8xf32>, vector<1x32x8xf32>, vector<1x32x8xf32>, vector<1x32x8xf32>, vector<1x32x8xf32>, vector<1x32x8xf32>, vector<1x32x8xf32>, vector<1x32x8xf32>, vector<1x32x8xf32> -> vector<16x32x8xf32>
    %702 = tpu.concatenate %685, %686, %687, %688, %689, %690, %691, %692, %693, %694, %695, %696, %697, %698, %699, %700 in 0 : vector<1x32x8xf32>, vector<1x32x8xf32>, vector<1x32x8xf32>, vector<1x32x8xf32>, vector<1x32x8xf32>, vector<1x32x8xf32>, vector<1x32x8xf32>, vector<1x32x8xf32>, vector<1x32x8xf32>, vector<1x32x8xf32>, vector<1x32x8xf32>, vector<1x32x8xf32>, vector<1x32x8xf32>, vector<1x32x8xf32>, vector<1x32x8xf32>, vector<1x32x8xf32> -> vector<16x32x8xf32>
    %703 = tpu.concatenate %701, %702 in 0 : vector<16x32x8xf32>, vector<16x32x8xf32> -> vector<32x32x8xf32>
    %704 = vector.shape_cast %703 : vector<32x32x8xf32> to vector<1024x8xf32>
    %c0_174 = arith.constant 0 : index
    %c0_175 = arith.constant 0 : index
    %705 = vector.load %arg6[%c0_174, %c0_175] : memref<16x8xbf16, #tpu.memory_space<vmem>>, vector<16x8xbf16>
    %706 = arith.truncf %704 : vector<1024x8xf32> to vector<1024x8xbf16>
    %cst_176 = arith.constant dense<0.000000e+00> : vector<16x1024xf32>
    %707 = tpu.matmul %705, %706, %cst_176 {dimension_numbers = #tpu.dot_dimension_numbers<[1], [1], [0], [0], [0, 0, 1, 0], [], []>} : vector<16x8xbf16>, vector<1024x8xbf16>, vector<16x1024xf32> -> vector<16x1024xf32>
    %c1_177 = arith.constant 1 : index
    %c0_178 = arith.constant 0 : index
    %c0_179 = arith.constant 0 : index
    %708 = vector.load %arg9[%c1_177, %c0_178, %c0_179] : memref<2x16x1024xf32, #tpu.memory_space<vmem>>, vector<1x16x1024xf32>
    %709 = vector.shape_cast %708 : vector<1x16x1024xf32> to vector<16x1024xf32>
    %710 = vector.shape_cast %707 : vector<16x1024xf32> to vector<1x16x1024xf32>
    tpu.vector_store %arg9[%c1_177, %c0_178, %c0_179], %710 {strides = array<i32>} : memref<2x16x1024xf32, #tpu.memory_space<vmem>>, vector<1x16x1024xf32>,
    %cst_180 = arith.constant dense<0.000000e+00> : vector<16xf32>
    %711 = vector.multi_reduction <add>, %707, %cst_180 [1] : vector<16x1024xf32> to vector<16xf32>
    %712 = vector.shape_cast %711 : vector<16xf32> to vector<16x1xf32>
    %713 = arith.addf %383, %712 : vector<16x1xf32>
    %cst_181 = arith.constant 4.8828125E-4 : f32
    %714 = vector.broadcast %cst_181 : f32 to vector<16x1xf32>
    %715 = arith.mulf %713, %714 : vector<16x1xf32>
    %cst_182 = arith.constant 0.000000e+00 : f32
    %716 = vector.broadcast %cst_182 : f32 to vector<16x1xf32>
    %c0_183 = arith.constant 0 : index
    %c0_184 = arith.constant 0 : index
    %c0_185 = arith.constant 0 : index
    %717 = vector.load %arg9[%c0_183, %c0_184, %c0_185] : memref<2x16x1024xf32, #tpu.memory_space<vmem>>, vector<1x16x1024xf32>
    %718 = vector.shape_cast %717 : vector<1x16x1024xf32> to vector<16x1024xf32>
    %719 = vector.broadcast %715 : vector<16x1xf32> to vector<16x1024xf32>
    %720 = arith.subf %718, %719 : vector<16x1024xf32>
    %721 = arith.mulf %720, %720 : vector<16x1024xf32>
    %cst_186 = arith.constant dense<0.000000e+00> : vector<16xf32>
    %722 = vector.multi_reduction <add>, %721, %cst_186 [1] : vector<16x1024xf32> to vector<16xf32>
    %723 = vector.shape_cast %722 : vector<16xf32> to vector<16x1xf32>
    %724 = arith.addf %716, %723 : vector<16x1xf32>
    %c1_187 = arith.constant 1 : index
    %c0_188 = arith.constant 0 : index
    %c0_189 = arith.constant 0 : index
    %725 = vector.load %arg9[%c1_187, %c0_188, %c0_189] : memref<2x16x1024xf32, #tpu.memory_space<vmem>>, vector<1x16x1024xf32>
    %726 = vector.shape_cast %725 : vector<1x16x1024xf32> to vector<16x1024xf32>
    %727 = vector.broadcast %715 : vector<16x1xf32> to vector<16x1024xf32>
    %728 = arith.subf %726, %727 : vector<16x1024xf32>
    %729 = arith.mulf %728, %728 : vector<16x1024xf32>
    %cst_190 = arith.constant dense<0.000000e+00> : vector<16xf32>
    %730 = vector.multi_reduction <add>, %729, %cst_190 [1] : vector<16x1024xf32> to vector<16xf32>
    %731 = vector.shape_cast %730 : vector<16xf32> to vector<16x1xf32>
    %732 = arith.addf %724, %731 : vector<16x1xf32>
    %c0_191 = arith.constant 0 : index
    %c0_192 = arith.constant 0 : index
    %733 = vector.load %arg7[%c0_191, %c0_192] : memref<16x1xf32, #tpu.memory_space<vmem>>, vector<16x1xf32>
    %cst_193 = arith.constant 4.8828125E-4 : f32
    %734 = vector.broadcast %cst_193 : f32 to vector<16x1xf32>
    %735 = arith.mulf %732, %734 : vector<16x1xf32>
    %cst_194 = arith.constant 9.99999974E-6 : f32
    %736 = vector.broadcast %cst_194 : f32 to vector<16x1xf32>
    %737 = arith.addf %735, %736 : vector<16x1xf32>
    %738 = math.rsqrt %737 : vector<16x1xf32>
    %739 = arith.mulf %733, %738 : vector<16x1xf32>
    %c0_195 = arith.constant 0 : index
    %c0_196 = arith.constant 0 : index
    %740 = vector.load %arg8[%c0_195, %c0_196] : memref<16x1xf32, #tpu.memory_space<vmem>>, vector<16x1xf32>
    %741 = arith.mulf %715, %739 : vector<16x1xf32>
    %742 = arith.subf %740, %741 : vector<16x1xf32>
    %c0_197 = arith.constant 0 : index
    %c0_198 = arith.constant 0 : index
    %c0_199 = arith.constant 0 : index
    %743 = vector.load %arg9[%c0_197, %c0_198, %c0_199] : memref<2x16x1024xf32, #tpu.memory_space<vmem>>, vector<1x16x1024xf32>
    %744 = vector.shape_cast %743 : vector<1x16x1024xf32> to vector<16x1024xf32>
    %745 = vector.broadcast %739 : vector<16x1xf32> to vector<16x1024xf32>
    %746 = arith.mulf %744, %745 : vector<16x1024xf32>
    %747 = vector.broadcast %742 : vector<16x1xf32> to vector<16x1024xf32>
    %748 = arith.addf %746, %747 : vector<16x1024xf32>
    %cst_200 = arith.constant 0.000000e+00 : f32
    %749 = vector.broadcast %cst_200 : f32 to vector<16x1024xf32>
    %750 = arith.maximumf %748, %749 : vector<16x1024xf32>
    %c0_201 = arith.constant 0 : index
    %c0_202 = arith.constant 0 : index
    %c0_203 = arith.constant 0 : index
    %751 = vector.load %arg9[%c0_201, %c0_202, %c0_203] : memref<2x16x1024xf32, #tpu.memory_space<vmem>>, vector<1x16x1024xf32>
    %752 = vector.shape_cast %751 : vector<1x16x1024xf32> to vector<16x1024xf32>
    %753 = vector.shape_cast %750 : vector<16x1024xf32> to vector<1x16x1024xf32>
    tpu.vector_store %arg9[%c0_201, %c0_202, %c0_203], %753 {strides = array<i32>} : memref<2x16x1024xf32, #tpu.memory_space<vmem>>, vector<1x16x1024xf32>,
    %c1_204 = arith.constant 1 : index
    %c0_205 = arith.constant 0 : index
    %c0_206 = arith.constant 0 : index
    %754 = vector.load %arg9[%c1_204, %c0_205, %c0_206] : memref<2x16x1024xf32, #tpu.memory_space<vmem>>, vector<1x16x1024xf32>
    %755 = vector.shape_cast %754 : vector<1x16x1024xf32> to vector<16x1024xf32>
    %756 = vector.broadcast %739 : vector<16x1xf32> to vector<16x1024xf32>
    %757 = arith.mulf %755, %756 : vector<16x1024xf32>
    %758 = vector.broadcast %742 : vector<16x1xf32> to vector<16x1024xf32>
    %759 = arith.addf %757, %758 : vector<16x1024xf32>
    %cst_207 = arith.constant 0.000000e+00 : f32
    %760 = vector.broadcast %cst_207 : f32 to vector<16x1024xf32>
    %761 = arith.maximumf %759, %760 : vector<16x1024xf32>
    %c1_208 = arith.constant 1 : index
    %c0_209 = arith.constant 0 : index
    %c0_210 = arith.constant 0 : index
    %762 = vector.load %arg9[%c1_208, %c0_209, %c0_210] : memref<2x16x1024xf32, #tpu.memory_space<vmem>>, vector<1x16x1024xf32>
    %763 = vector.shape_cast %762 : vector<1x16x1024xf32> to vector<16x1024xf32>
    %764 = vector.shape_cast %761 : vector<16x1024xf32> to vector<1x16x1024xf32>
    tpu.vector_store %arg9[%c1_208, %c0_209, %c0_210], %764 {strides = array<i32>} : memref<2x16x1024xf32, #tpu.memory_space<vmem>>, vector<1x16x1024xf32>,
    return
  }
  func.func @transform_0(%arg0: i32) -> (i32, i32, i32) {
    %c0_i32 = arith.constant 0 : i32
    %c0_i32_0 = arith.constant 0 : i32
    %c0_i32_1 = arith.constant 0 : i32
    %c0_i32_2 = arith.constant 0 : i32
    return %c0_i32, %c0_i32_0, %c0_i32_1 : i32, i32, i32
  }
  func.func @transform_1(%arg0: i32) -> (i32, i32) {
    %c0_i32 = arith.constant 0 : i32
    %c0_i32_0 = arith.constant 0 : i32
    %c0_i32_1 = arith.constant 0 : i32
    return %c0_i32, %c0_i32_0 : i32, i32
  }
  func.func @transform_2(%arg0: i32) -> (i32, i32) {
    %c0_i32 = arith.constant 0 : i32
    %c0_i32_0 = arith.constant 0 : i32
    %c0_i32_1 = arith.constant 0 : i32
    return %c0_i32, %c0_i32_0 : i32, i32
  }
  func.func @transform_3(%arg0: i32) -> (i32, i32) {
    %c0_i32 = arith.constant 0 : i32
    %c0_i32_0 = arith.constant 0 : i32
    %c0_i32_1 = arith.constant 0 : i32
    return %c0_i32, %c0_i32_0 : i32, i32
  }
  func.func @transform_4(%arg0: i32) -> (i32, i32) {
    %c0_i32 = arith.constant 0 : i32
    %c0_i32_0 = arith.constant 0 : i32
    %c0_i32_1 = arith.constant 0 : i32
    return %c0_i32, %c0_i32_0 : i32, i32
  }
  func.func @transform_5(%arg0: i32) -> (i32, i32) {
    %c0_i32 = arith.constant 0 : i32
    %c0_i32_0 = arith.constant 0 : i32
    %c0_i32_1 = arith.constant 0 : i32
    return %c0_i32, %c0_i32_0 : i32, i32
  }
  func.func @transform_6(%arg0: i32) -> (i32, i32) {
    %c0_i32 = arith.constant 0 : i32
    %c0_i32_0 = arith.constant 0 : i32
    %c0_i32_1 = arith.constant 0 : i32
    return %c0_i32, %c0_i32_0 : i32, i32
  }
  func.func @transform_7(%arg0: i32) -> (i32, i32) {
    %c0_i32 = arith.constant 0 : i32
    %c0_i32_0 = arith.constant 0 : i32
    %c0_i32_1 = arith.constant 0 : i32
    return %c0_i32, %c0_i32_0 : i32, i32
  }
  func.func @transform_8(%arg0: i32) -> (i32, i32, i32) {
    %c0_i32 = arith.constant 0 : i32
    %c0_i32_0 = arith.constant 0 : i32
    %c0_i32_1 = arith.constant 0 : i32
    %c0_i32_2 = arith.constant 0 : i32
    return %c0_i32, %c0_i32_0, %c0_i32_1 : i32, i32, i32
  }
}

</mosaic_0001>

<bundles_post_ra>
// kernel: decoder_block_forward.1
= control target key start
LH: loop header
LB: loop body
LE: loop exit
PB: predicated region body
PF: predicated region fallthrough
CT: control target
= control target key end

     0   :  { %vm227_vm0 = vcmask 1043456   ;;  %vm178_vm1 = vcmask 588800   ;;  %vm392_vm2 = vcmask 64512   ;;  %vm1438_vm3 = vcmask 130048   ;;  %s8893_s1 = inlined_call_operand.vmem [shape: bf16[72,8], index: 1, kind: input, shape index: {}]   ;;  %s8894_s0 = inlined_call_operand.vmem [shape: bf16[2,256,72], index: 0, kind: input, shape index: {}]   ;;  %s8895_s4 = inlined_call_operand.vmem [shape: bf16[32,16], index: 4, kind: input, shape index: {}]   ;;  %s8896_s2 = inlined_call_operand.vmem [shape: f32[1,8], index: 2, kind: input, shape index: {}]   ;;  %s8897_s3 = inlined_call_operand.vmem [shape: f32[1,8], index: 3, kind: input, shape index: {}]   ;;  %s8898_s5 = inlined_call_operand.vmem [shape: bf16[16,8], index: 5, kind: input, shape index: {}]   ;;  %s8899_s8 = inlined_call_operand.vmem [shape: f32[2,16,1024], index: 8, kind: output, shape index: {}]   ;;  %s8900_s6 = inlined_call_operand.vmem [shape: f32[16,1], index: 6, kind: input, shape index: {}]   ;;  %s8901_s7 = inlined_call_operand.vmem [shape: f32[16,1], index: 7, kind: input, shape index: {}]  }
   0x1   :  { %v6021_v0 = vld [vmem:[%s8893_s1 + $0x20] ss:$0 sps:$4 sm:$0xff]   ;;  %v6023_v3 = vld [vmem:[%s8893_s1 + $0x18] sm:$0xff]   ;;  %v6025_v6 = vld [vmem:[%s8893_s1 + $0x10] sm:$0xff]  }
   0x2   :  { %v6022_v1 = vld [vmem:[%s8893_s1 + $0x20] ss:$0 sps:$4 sm:$0xff]   ;;  %5952 = vmatprep.subr.msk.bf16.mxu0 %vm227_vm0, %v6021_v0  ;;  %v229_v2 = vsel %vm227_vm0, %v6021_v0, 0  ;;  %v6024_v5 = vld [vmem:[%s8893_s1 + $0x18] sm:$0xff]   ;;  %v6026_v7 = vld [vmem:[%s8893_s1 + $0x10] sm:$0xff]  }
   0x3   :  { %5953 = vmatprep.subr.msk.bf16.mxu1 %vm227_vm0, %v6022_v1  ;;  %5677 = vmatpush3.bf16.msra.mxu0 %v229_v2  ;;  %v693_v4 = vsel %vm227_vm0, %v6022_v1, 0  ;;  %v6027_v8 = vld [vmem:[%s8893_s1 + $0x8] sm:$0xff]   ;;  %v6031_v10 = vld [vmem:[%s8894_s0] sm:$0xff]   ;;  %v6035_v16 = vld [vmem:[%s8894_s0 + $0x10] sm:$0xff]  }
   0x4   :  { %5719 = vmatpush3.bf16.msra.mxu1 %v693_v4  ;;  %5678 = vmatprep.subr.bf16.mxu0 %v6023_v3  ;;  %v6028_v9 = vld [vmem:[%s8893_s1 + $0x8] sm:$0xff]   ;;  %v6032_v11 = vld [vmem:[%s8894_s0 + $0x80] sm:$0xff]   ;;  %v6036_v17 = vld [vmem:[%s8894_s0 + $0x90] sm:$0xff]  }
   0x5   :  { %5720 = vmatprep.subr.bf16.mxu1 %v6024_v5  ;;  %v6029_v12 = vld [vmem:[%s8893_s1] sm:$0xff]   ;;  %5686 = vmatprep.mubr.msk.bf16.mxu0 %vm178_vm1, %v6031_v10  ;;  %v6033_v14 = vld [vmem:[%s8894_s0 + $0x8] sm:$0xff]   ;;  %v6037_v18 = vld [vmem:[%s8894_s0 + $0x18] sm:$0xff]  }
   0x6   :  { %v6030_v13 = vld [vmem:[%s8893_s1] sm:$0xff]   ;;  %5728 = vmatprep.mubr.msk.bf16.mxu1 %vm178_vm1, %v6032_v11  ;;  %v6034_v15 = vld [vmem:[%s8894_s0 + $0x88] sm:$0xff]   ;;  %v6038_v19 = vld [vmem:[%s8894_s0 + $0x98] sm:$0xff]  }
   0x7   :  { %5679 = vmatpush3.bf16.msra.mxu0 %v6023_v3  ;;  %v6039_v20 = vld [vmem:[%s8894_s0 + $0x20] sm:$0xff]   ;;  %v6041_v22 = vld [vmem:[%s8894_s0 + $0x28] sm:$0xff]   ;;  %v6043_v24 = vld [vmem:[%s8894_s0 + $0x30] sm:$0xff]  }
   0x8   :  { %5721 = vmatpush3.bf16.msra.mxu1 %v6024_v5  ;;  %5680 = vmatprep.subr.bf16.mxu0 %v6025_v6  ;;  %v6040_v21 = vld [vmem:[%s8894_s0 + $0xa0] sm:$0xff]   ;;  %v6042_v23 = vld [vmem:[%s8894_s0 + $0xa8] sm:$0xff]   ;;  %v6044_v25 = vld [vmem:[%s8894_s0 + $0xb0] sm:$0xff]  }
   0x9   :  { %5722 = vmatprep.subr.bf16.mxu1 %v6026_v7  ;;  %v6045_v26 = vld [vmem:[%s8894_s0 + $0x38] sm:$0xff]   ;;  %v6047_v28 = vld [vmem:[%s8894_s0 + $0x40] sm:$0xff]   ;;  %v6049_v30 = vld [vmem:[%s8894_s0 + $0x48] sm:$0xff]  }
   0xa   :  { %v6046_v27 = vld [vmem:[%s8894_s0 + $0xb8] sm:$0xff]   ;;  %v6048_v29 = vld [vmem:[%s8894_s0 + $0xc0] sm:$0xff]   ;;  %v6050_v31 = vld [vmem:[%s8894_s0 + $0xc8] sm:$0xff]  }
   0xb   :  { %5681 = vmatpush3.bf16.msra.mxu0 %v6025_v6  ;;  %v6051_v32 = vld [vmem:[%s8894_s0 + $0x50] sm:$0xff]   ;;  %v6053_v34 = vld [vmem:[%s8894_s0 + $0x58] sm:$0xff]   ;;  %v6055_v36 = vld [vmem:[%s8894_s0 + $0x60] sm:$0xff]  }
   0xc   :  { %5723 = vmatpush3.bf16.msra.mxu1 %v6026_v7  ;;  %5682 = vmatprep.subr.bf16.mxu0 %v6027_v8  ;;  %v6052_v33 = vld [vmem:[%s8894_s0 + $0xd0] sm:$0xff]   ;;  %v6054_v35 = vld [vmem:[%s8894_s0 + $0xd8] sm:$0xff]   ;;  %v6056_v37 = vld [vmem:[%s8894_s0 + $0xe0] sm:$0xff]  }
   0xd   :  { %5724 = vmatprep.subr.bf16.mxu1 %v6028_v9  ;;  %v6057_v38 = vld [vmem:[%s8894_s0 + $0x68] sm:$0xff]   ;;  %v6059_v40 = vld [vmem:[%s8894_s0 + $0x70] sm:$0xff]   ;;  %v6061_v42 = vld [vmem:[%s8894_s0 + $0x78] sm:$0xff]  }
   0xe   :  { %v6058_v39 = vld [vmem:[%s8894_s0 + $0xe8] sm:$0xff]   ;;  %v6060_v41 = vld [vmem:[%s8894_s0 + $0xf0] sm:$0xff]   ;;  %v6062_v43 = vld [vmem:[%s8894_s0 + $0xf8] sm:$0xff]  }
   0xf   :  { %5683 = vmatpush3.bf16.msra.mxu0 %v6027_v8 }
  0x10   :  { %5725 = vmatpush3.bf16.msra.mxu1 %v6028_v9  ;;  %5684 = vmatprep.subr.bf16.mxu0 %v6029_v12 }
  0x11   :  { %5726 = vmatprep.subr.bf16.mxu1 %v6030_v13 }
  0x13   :  { %5685 = vmatpush3.bf16.msra.mxu0 %v6029_v12 }
  0x14   :  { %5727 = vmatpush3.bf16.msra.mxu1 %v6030_v13 }
  0x16   :  { %5687 = vmatmul.mubr.msk.bf16.vlgmr.msra.gmra.mxu0 %vm178_vm1, %v6033_v14 }
  0x17   :  { %5729 = vmatmul.mubr.msk.bf16.vlgmr.msra.gmra.mxu1 %vm178_vm1, %v6034_v15  ;;  %5690 = vmatprep.mubr.msk.bf16.mxu0 %vm178_vm1, %v6035_v16 }
  0x18   :  { %5732 = vmatprep.mubr.msk.bf16.mxu1 %vm178_vm1, %v6036_v17 }
  0x1e   :  { %5691 = vmatmul.mubr.msk.bf16.gmra.mxu0 %vm178_vm1, %v6037_v18 }
  0x1f   :  { %5733 = vmatmul.mubr.msk.bf16.gmra.mxu1 %vm178_vm1, %v6038_v19  ;;  %5694 = vmatprep.mubr.msk.bf16.mxu0 %vm178_vm1, %v6039_v20 }
  0x20   :  { %5736 = vmatprep.mubr.msk.bf16.mxu1 %vm178_vm1, %v6040_v21 }
  0x26   :  { %5695 = vmatmul.mubr.msk.bf16.gmra.mxu0 %vm178_vm1, %v6041_v22 }
  0x27   :  { %5737 = vmatmul.mubr.msk.bf16.gmra.mxu1 %vm178_vm1, %v6042_v23  ;;  %5698 = vmatprep.mubr.msk.bf16.mxu0 %vm178_vm1, %v6043_v24 }
  0x28   :  { %5740 = vmatprep.mubr.msk.bf16.mxu1 %vm178_vm1, %v6044_v25 }
  0x2e   :  { %5699 = vmatmul.mubr.msk.bf16.gmra.mxu0 %vm178_vm1, %v6045_v26 }
  0x2f   :  { %5741 = vmatmul.mubr.msk.bf16.gmra.mxu1 %vm178_vm1, %v6046_v27  ;;  %5702 = vmatprep.mubr.msk.bf16.mxu0 %vm178_vm1, %v6047_v28 }
  0x30   :  { %5744 = vmatprep.mubr.msk.bf16.mxu1 %vm178_vm1, %v6048_v29 }
  0x36   :  { %5703 = vmatmul.mubr.msk.bf16.gmra.mxu0 %vm178_vm1, %v6049_v30 }
  0x37   :  { %5745 = vmatmul.mubr.msk.bf16.gmra.mxu1 %vm178_vm1, %v6050_v31  ;;  %5706 = vmatprep.mubr.msk.bf16.mxu0 %vm178_vm1, %v6051_v32 }
  0x38   :  { %5748 = vmatprep.mubr.msk.bf16.mxu1 %vm178_vm1, %v6052_v33 }
  0x3e   :  { %5707 = vmatmul.mubr.msk.bf16.gmra.mxu0 %vm178_vm1, %v6053_v34 }
  0x3f   :  { %5749 = vmatmul.mubr.msk.bf16.gmra.mxu1 %vm178_vm1, %v6054_v35  ;;  %5710 = vmatprep.mubr.msk.bf16.mxu0 %vm178_vm1, %v6055_v36 }
  0x40   :  { %5752 = vmatprep.mubr.msk.bf16.mxu1 %vm178_vm1, %v6056_v37 }
  0x46   :  { %5711 = vmatmul.mubr.msk.bf16.gmra.mxu0 %vm178_vm1, %v6057_v38 }
  0x47   :  { %5753 = vmatmul.mubr.msk.bf16.gmra.mxu1 %vm178_vm1, %v6058_v39  ;;  %5714 = vmatprep.mubr.msk.bf16.mxu0 %vm178_vm1, %v6059_v40 }
  0x48   :  { %5756 = vmatprep.mubr.msk.bf16.mxu1 %vm178_vm1, %v6060_v41 }
  0x4e   :  { %5715 = vmatmul.mubr.msk.bf16.gmra.mxu0 %vm178_vm1, %v6061_v42 }
  0x4f   :  { %5757 = vmatmul.mubr.msk.bf16.gmra.mxu1 %vm178_vm1, %v6062_v43 }
  0xd6   :  { %v5688_v44 = vpop.f32.mrf.mxu0 }
  0xd7   :  { %395 = vst.msk [vmem:[#allocation2 + $0x10] sm:$0xff] %vm392_vm2, %v5688_v44  ;;  %v5730_v45 = vpop.f32.mrf.mxu1  ;;  %v428_v58 = vsel %vm392_vm2, %v5688_v44, 0.0 }
  0xd8   :  { %859 = vst.msk [vmem:[#allocation2 + $0x110] sm:$0xff] %vm392_vm2, %v5730_v45  ;;  %v265_v46 = vpop.f32.mrf.mxu0  ;;  %v892_v61 = vsel %vm392_vm2, %v5730_v45, 0.0 }
  0xd9   :  { %393 = vst.msk [vmem:[#allocation2] sm:$0xff] %vm392_vm2, %v265_v46  ;;  %v729_v47 = vpop.f32.mrf.mxu1  ;;  %v425_v51 = vsel %vm392_vm2, %v265_v46, 0.0 }
  0xda   :  { %857 = vst.msk [vmem:[#allocation2 + $0x100] sm:$0xff] %vm392_vm2, %v729_v47  ;;  %v5689_v48 = vpop.f32.mrf.mxu0  ;;  %v889_v54 = vsel %vm392_vm2, %v729_v47, 0.0 }
  0xdb   :  { %396 = vst.msk [vmem:[#allocation2 + $0x18] sm:$0xff] %vm392_vm2, %v5689_v48  ;;  %v5731_v49 = vpop.f32.mrf.mxu1  ;;  %v430_v0 = vsel %vm392_vm2, %v5689_v48, 0.0 }
  0xdc   :  { %860 = vst.msk [vmem:[#allocation2 + $0x118] sm:$0xff] %vm392_vm2, %v5731_v49  ;;  %v268_v50 = vpop.f32.mrf.mxu0  ;;  %v894_v3 = vsel %vm392_vm2, %v5731_v49, 0.0 }
  0xdd   :  { %394 = vst.msk [vmem:[#allocation2 + $0x8] sm:$0xff] %vm392_vm2, %v268_v50  ;;  %v426_v52 = vsel %vm392_vm2, %v268_v50, 0.0  ;;  %v732_v53 = vpop.f32.mrf.mxu1 }
  0xde   :  { %v427_v55 = vadd.f32 %v426_v52, %v425_v51  ;;  %858 = vst.msk [vmem:[#allocation2 + $0x108] sm:$0xff] %vm392_vm2, %v732_v53  ;;  %v890_v56 = vsel %vm392_vm2, %v732_v53, 0.0  ;;  %v5692_v57 = vpop.f32.mrf.mxu0 }
  0xdf   :  { %v891_v59 = vadd.f32 %v890_v56, %v889_v54  ;;  %399 = vst.msk [vmem:[#allocation2 + $0x30] sm:$0xff] %vm392_vm2, %v5692_v57  ;;  %v5734_v60 = vpop.f32.mrf.mxu1  ;;  %v436_v18 = vsel %vm392_vm2, %v5692_v57, 0.0 }
  0xe0   :  { %v429_v62 = vadd.f32 %v428_v58, %v427_v55  ;;  %863 = vst.msk [vmem:[#allocation2 + $0x130] sm:$0xff] %vm392_vm2, %v5734_v60  ;;  %v281_v63 = vpop.f32.mrf.mxu0  ;;  %v900_v21 = vsel %vm392_vm2, %v5734_v60, 0.0 }
  0xe1   :  { %v893_v1 = vadd.f32 %v892_v61, %v891_v59  ;;  %397 = vst.msk [vmem:[#allocation2 + $0x20] sm:$0xff] %vm392_vm2, %v281_v63  ;;  %v745_v2 = vpop.f32.mrf.mxu1  ;;  %v432_v6 = vsel %vm392_vm2, %v281_v63, 0.0 }
  0xe2   :  { %v431_v4 = vadd.f32 %v430_v0, %v429_v62  ;;  %861 = vst.msk [vmem:[#allocation2 + $0x120] sm:$0xff] %vm392_vm2, %v745_v2  ;;  %v5693_v5 = vpop.f32.mrf.mxu0  ;;  %v896_v10 = vsel %vm392_vm2, %v745_v2, 0.0 }
  0xe3   :  { %v895_v7 = vadd.f32 %v894_v3, %v893_v1  ;;  %400 = vst.msk [vmem:[#allocation2 + $0x38] sm:$0xff] %vm392_vm2, %v5693_v5  ;;  %v5735_v8 = vpop.f32.mrf.mxu1  ;;  %v438_v24 = vsel %vm392_vm2, %v5693_v5, 0.0 }
  0xe4   :  { %v433_v9 = vadd.f32 %v432_v6, %v431_v4  ;;  %864 = vst.msk [vmem:[#allocation2 + $0x138] sm:$0xff] %vm392_vm2, %v5735_v8  ;;  %v284_v11 = vpop.f32.mrf.mxu0  ;;  %v902_v27 = vsel %vm392_vm2, %v5735_v8, 0.0 }
  0xe5   :  { %v897_v12 = vadd.f32 %v896_v10, %v895_v7  ;;  %398 = vst.msk [vmem:[#allocation2 + $0x28] sm:$0xff] %vm392_vm2, %v284_v11  ;;  %v434_v13 = vsel %vm392_vm2, %v284_v11, 0.0  ;;  %v748_v14 = vpop.f32.mrf.mxu1 }
  0xe6   :  { %v435_v15 = vadd.f32 %v434_v13, %v433_v9  ;;  %862 = vst.msk [vmem:[#allocation2 + $0x128] sm:$0xff] %vm392_vm2, %v748_v14  ;;  %v898_v16 = vsel %vm392_vm2, %v748_v14, 0.0  ;;  %v5696_v17 = vpop.f32.mrf.mxu0 }
  0xe7   :  { %v899_v19 = vadd.f32 %v898_v16, %v897_v12  ;;  %403 = vst.msk [vmem:[#allocation2 + $0x50] sm:$0xff] %vm392_vm2, %v5696_v17  ;;  %v5738_v20 = vpop.f32.mrf.mxu1  ;;  %v444_v42 = vsel %vm392_vm2, %v5696_v17, 0.0 }
  0xe8   :  { %v437_v22 = vadd.f32 %v436_v18, %v435_v15  ;;  %867 = vst.msk [vmem:[#allocation2 + $0x150] sm:$0xff] %vm392_vm2, %v5738_v20  ;;  %v297_v23 = vpop.f32.mrf.mxu0  ;;  %v908_v45 = vsel %vm392_vm2, %v5738_v20, 0.0 }
  0xe9   :  { %v901_v25 = vadd.f32 %v900_v21, %v899_v19  ;;  %401 = vst.msk [vmem:[#allocation2 + $0x40] sm:$0xff] %vm392_vm2, %v297_v23  ;;  %v761_v26 = vpop.f32.mrf.mxu1  ;;  %v440_v30 = vsel %vm392_vm2, %v297_v23, 0.0 }
  0xea   :  { %v439_v28 = vadd.f32 %v438_v24, %v437_v22  ;;  %865 = vst.msk [vmem:[#allocation2 + $0x140] sm:$0xff] %vm392_vm2, %v761_v26  ;;  %v5697_v29 = vpop.f32.mrf.mxu0  ;;  %v904_v34 = vsel %vm392_vm2, %v761_v26, 0.0 }
  0xeb   :  { %v903_v31 = vadd.f32 %v902_v27, %v901_v25  ;;  %404 = vst.msk [vmem:[#allocation2 + $0x58] sm:$0xff] %vm392_vm2, %v5697_v29  ;;  %v5739_v32 = vpop.f32.mrf.mxu1  ;;  %v446_v48 = vsel %vm392_vm2, %v5697_v29, 0.0 }
  0xec   :  { %v441_v33 = vadd.f32 %v440_v30, %v439_v28  ;;  %868 = vst.msk [vmem:[#allocation2 + $0x158] sm:$0xff] %vm392_vm2, %v5739_v32  ;;  %v300_v35 = vpop.f32.mrf.mxu0  ;;  %v910_v51 = vsel %vm392_vm2, %v5739_v32, 0.0 }
  0xed   :  { %v905_v36 = vadd.f32 %v904_v34, %v903_v31  ;;  %402 = vst.msk [vmem:[#allocation2 + $0x48] sm:$0xff] %vm392_vm2, %v300_v35  ;;  %v442_v37 = vsel %vm392_vm2, %v300_v35, 0.0  ;;  %v764_v38 = vpop.f32.mrf.mxu1 }
  0xee   :  { %v443_v39 = vadd.f32 %v442_v37, %v441_v33  ;;  %866 = vst.msk [vmem:[#allocation2 + $0x148] sm:$0xff] %vm392_vm2, %v764_v38  ;;  %v906_v40 = vsel %vm392_vm2, %v764_v38, 0.0  ;;  %v5700_v41 = vpop.f32.mrf.mxu0 }
  0xef   :  { %v907_v43 = vadd.f32 %v906_v40, %v905_v36  ;;  %407 = vst.msk [vmem:[#allocation2 + $0x70] sm:$0xff] %vm392_vm2, %v5700_v41  ;;  %v5742_v44 = vpop.f32.mrf.mxu1  ;;  %v452_v2 = vsel %vm392_vm2, %v5700_v41, 0.0 }
  0xf0   :  { %v445_v46 = vadd.f32 %v444_v42, %v443_v39  ;;  %871 = vst.msk [vmem:[#allocation2 + $0x170] sm:$0xff] %vm392_vm2, %v5742_v44  ;;  %v313_v47 = vpop.f32.mrf.mxu0  ;;  %v916_v5 = vsel %vm392_vm2, %v5742_v44, 0.0 }
  0xf1   :  { %v909_v49 = vadd.f32 %v908_v45, %v907_v43  ;;  %405 = vst.msk [vmem:[#allocation2 + $0x60] sm:$0xff] %vm392_vm2, %v313_v47  ;;  %v777_v50 = vpop.f32.mrf.mxu1  ;;  %v448_v54 = vsel %vm392_vm2, %v313_v47, 0.0 }
  0xf2   :  { %v447_v52 = vadd.f32 %v446_v48, %v445_v46  ;;  %869 = vst.msk [vmem:[#allocation2 + $0x160] sm:$0xff] %vm392_vm2, %v777_v50  ;;  %v5701_v53 = vpop.f32.mrf.mxu0  ;;  %v912_v58 = vsel %vm392_vm2, %v777_v50, 0.0 }
  0xf3   :  { %v911_v55 = vadd.f32 %v910_v51, %v909_v49  ;;  %408 = vst.msk [vmem:[#allocation2 + $0x78] sm:$0xff] %vm392_vm2, %v5701_v53  ;;  %v5743_v56 = vpop.f32.mrf.mxu1  ;;  %v454_v8 = vsel %vm392_vm2, %v5701_v53, 0.0 }
  0xf4   :  { %v449_v57 = vadd.f32 %v448_v54, %v447_v52  ;;  %872 = vst.msk [vmem:[#allocation2 + $0x178] sm:$0xff] %vm392_vm2, %v5743_v56  ;;  %v316_v59 = vpop.f32.mrf.mxu0  ;;  %v918_v11 = vsel %vm392_vm2, %v5743_v56, 0.0 }
  0xf5   :  { %v913_v60 = vadd.f32 %v912_v58, %v911_v55  ;;  %406 = vst.msk [vmem:[#allocation2 + $0x68] sm:$0xff] %vm392_vm2, %v316_v59  ;;  %v450_v61 = vsel %vm392_vm2, %v316_v59, 0.0  ;;  %v780_v62 = vpop.f32.mrf.mxu1 }
  0xf6   :  { %v451_v63 = vadd.f32 %v450_v61, %v449_v57  ;;  %870 = vst.msk [vmem:[#allocation2 + $0x168] sm:$0xff] %vm392_vm2, %v780_v62  ;;  %v914_v0 = vsel %vm392_vm2, %v780_v62, 0.0  ;;  %v5704_v1 = vpop.f32.mrf.mxu0 }
  0xf7   :  { %v915_v3 = vadd.f32 %v914_v0, %v913_v60  ;;  %411 = vst.msk [vmem:[#allocation2 + $0x90] sm:$0xff] %vm392_vm2, %v5704_v1  ;;  %v5746_v4 = vpop.f32.mrf.mxu1  ;;  %v460_v26 = vsel %vm392_vm2, %v5704_v1, 0.0 }
  0xf8   :  { %v453_v6 = vadd.f32 %v452_v2, %v451_v63  ;;  %875 = vst.msk [vmem:[#allocation2 + $0x190] sm:$0xff] %vm392_vm2, %v5746_v4  ;;  %v329_v7 = vpop.f32.mrf.mxu0  ;;  %v924_v29 = vsel %vm392_vm2, %v5746_v4, 0.0 }
  0xf9   :  { %v917_v9 = vadd.f32 %v916_v5, %v915_v3  ;;  %409 = vst.msk [vmem:[#allocation2 + $0x80] sm:$0xff] %vm392_vm2, %v329_v7  ;;  %v793_v10 = vpop.f32.mrf.mxu1  ;;  %v456_v14 = vsel %vm392_vm2, %v329_v7, 0.0 }
  0xfa   :  { %v455_v12 = vadd.f32 %v454_v8, %v453_v6  ;;  %873 = vst.msk [vmem:[#allocation2 + $0x180] sm:$0xff] %vm392_vm2, %v793_v10  ;;  %v5705_v13 = vpop.f32.mrf.mxu0  ;;  %v920_v18 = vsel %vm392_vm2, %v793_v10, 0.0 }
  0xfb   :  { %v919_v15 = vadd.f32 %v918_v11, %v917_v9  ;;  %412 = vst.msk [vmem:[#allocation2 + $0x98] sm:$0xff] %vm392_vm2, %v5705_v13  ;;  %v5747_v16 = vpop.f32.mrf.mxu1  ;;  %v462_v32 = vsel %vm392_vm2, %v5705_v13, 0.0 }
  0xfc   :  { %v457_v17 = vadd.f32 %v456_v14, %v455_v12  ;;  %876 = vst.msk [vmem:[#allocation2 + $0x198] sm:$0xff] %vm392_vm2, %v5747_v16  ;;  %v332_v19 = vpop.f32.mrf.mxu0  ;;  %v926_v35 = vsel %vm392_vm2, %v5747_v16, 0.0 }
  0xfd   :  { %v921_v20 = vadd.f32 %v920_v18, %v919_v15  ;;  %410 = vst.msk [vmem:[#allocation2 + $0x88] sm:$0xff] %vm392_vm2, %v332_v19  ;;  %v458_v21 = vsel %vm392_vm2, %v332_v19, 0.0  ;;  %v796_v22 = vpop.f32.mrf.mxu1 }
  0xfe   :  { %v459_v23 = vadd.f32 %v458_v21, %v457_v17  ;;  %874 = vst.msk [vmem:[#allocation2 + $0x188] sm:$0xff] %vm392_vm2, %v796_v22  ;;  %v922_v24 = vsel %vm392_vm2, %v796_v22, 0.0  ;;  %v5708_v25 = vpop.f32.mrf.mxu0 }
  0xff   :  { %v923_v27 = vadd.f32 %v922_v24, %v921_v20  ;;  %415 = vst.msk [vmem:[#allocation2 + $0xb0] sm:$0xff] %vm392_vm2, %v5708_v25  ;;  %v5750_v28 = vpop.f32.mrf.mxu1  ;;  %v468_v50 = vsel %vm392_vm2, %v5708_v25, 0.0 }
 0x100   :  { %v461_v30 = vadd.f32 %v460_v26, %v459_v23  ;;  %879 = vst.msk [vmem:[#allocation2 + $0x1b0] sm:$0xff] %vm392_vm2, %v5750_v28  ;;  %v345_v31 = vpop.f32.mrf.mxu0  ;;  %v932_v53 = vsel %vm392_vm2, %v5750_v28, 0.0 }
 0x101   :  { %v925_v33 = vadd.f32 %v924_v29, %v923_v27  ;;  %413 = vst.msk [vmem:[#allocation2 + $0xa0] sm:$0xff] %vm392_vm2, %v345_v31  ;;  %v809_v34 = vpop.f32.mrf.mxu1  ;;  %v464_v38 = vsel %vm392_vm2, %v345_v31, 0.0 }
 0x102   :  { %v463_v36 = vadd.f32 %v462_v32, %v461_v30  ;;  %877 = vst.msk [vmem:[#allocation2 + $0x1a0] sm:$0xff] %vm392_vm2, %v809_v34  ;;  %v5709_v37 = vpop.f32.mrf.mxu0  ;;  %v928_v42 = vsel %vm392_vm2, %v809_v34, 0.0 }
 0x103   :  { %v927_v39 = vadd.f32 %v926_v35, %v925_v33  ;;  %416 = vst.msk [vmem:[#allocation2 + $0xb8] sm:$0xff] %vm392_vm2, %v5709_v37  ;;  %v5751_v40 = vpop.f32.mrf.mxu1  ;;  %v470_v56 = vsel %vm392_vm2, %v5709_v37, 0.0 }
 0x104   :  { %v465_v41 = vadd.f32 %v464_v38, %v463_v36  ;;  %880 = vst.msk [vmem:[#allocation2 + $0x1b8] sm:$0xff] %vm392_vm2, %v5751_v40  ;;  %v348_v43 = vpop.f32.mrf.mxu0  ;;  %v934_v59 = vsel %vm392_vm2, %v5751_v40, 0.0 }
 0x105   :  { %v929_v44 = vadd.f32 %v928_v42, %v927_v39  ;;  %414 = vst.msk [vmem:[#allocation2 + $0xa8] sm:$0xff] %vm392_vm2, %v348_v43  ;;  %v466_v45 = vsel %vm392_vm2, %v348_v43, 0.0  ;;  %v812_v46 = vpop.f32.mrf.mxu1 }
 0x106   :  { %v467_v47 = vadd.f32 %v466_v45, %v465_v41  ;;  %878 = vst.msk [vmem:[#allocation2 + $0x1a8] sm:$0xff] %vm392_vm2, %v812_v46  ;;  %v930_v48 = vsel %vm392_vm2, %v812_v46, 0.0  ;;  %v5712_v49 = vpop.f32.mrf.mxu0 }
 0x107   :  { %v931_v51 = vadd.f32 %v930_v48, %v929_v44  ;;  %419 = vst.msk [vmem:[#allocation2 + $0xd0] sm:$0xff] %vm392_vm2, %v5712_v49  ;;  %v5754_v52 = vpop.f32.mrf.mxu1  ;;  %v476_v10 = vsel %vm392_vm2, %v5712_v49, 0.0 }
 0x108   :  { %v469_v54 = vadd.f32 %v468_v50, %v467_v47  ;;  %883 = vst.msk [vmem:[#allocation2 + $0x1d0] sm:$0xff] %vm392_vm2, %v5754_v52  ;;  %v361_v55 = vpop.f32.mrf.mxu0  ;;  %v940_v13 = vsel %vm392_vm2, %v5754_v52, 0.0 }
 0x109   :  { %v933_v57 = vadd.f32 %v932_v53, %v931_v51  ;;  %417 = vst.msk [vmem:[#allocation2 + $0xc0] sm:$0xff] %vm392_vm2, %v361_v55  ;;  %v825_v58 = vpop.f32.mrf.mxu1  ;;  %v472_v62 = vsel %vm392_vm2, %v361_v55, 0.0 }
 0x10a   :  { %v471_v60 = vadd.f32 %v470_v56, %v469_v54  ;;  %881 = vst.msk [vmem:[#allocation2 + $0x1c0] sm:$0xff] %vm392_vm2, %v825_v58  ;;  %v5713_v61 = vpop.f32.mrf.mxu0  ;;  %v936_v2 = vsel %vm392_vm2, %v825_v58, 0.0  ;;  %v1126_v56 = vld [vmem:[#allocation2 + $0x100] sm:$0xff] }
 0x10b   :  { %v935_v63 = vadd.f32 %v934_v59, %v933_v57  ;;  %420 = vst.msk [vmem:[#allocation2 + $0xd8] sm:$0xff] %vm392_vm2, %v5713_v61  ;;  %v5755_v0 = vpop.f32.mrf.mxu1  ;;  %v478_v16 = vsel %vm392_vm2, %v5713_v61, 0.0  ;;  %v1127_v57 = vld [vmem:[#allocation2 + $0x108] sm:$0xff] }
 0x10c   :  { %v473_v1 = vadd.f32 %v472_v62, %v471_v60  ;;  %884 = vst.msk [vmem:[#allocation2 + $0x1d8] sm:$0xff] %vm392_vm2, %v5755_v0  ;;  %v364_v3 = vpop.f32.mrf.mxu0  ;;  %v942_v19 = vsel %vm392_vm2, %v5755_v0, 0.0  ;;  %v1128_v60 = vld [vmem:[#allocation2 + $0x110] sm:$0xff]  ;;  %v1129_v62 = vld [vmem:[#allocation2 + $0x118] sm:$0xff] }
 0x10d   :  { %v937_v4 = vadd.f32 %v936_v2, %v935_v63  ;;  %418 = vst.msk [vmem:[#allocation2 + $0xc8] sm:$0xff] %vm392_vm2, %v364_v3  ;;  %v474_v5 = vsel %vm392_vm2, %v364_v3, 0.0  ;;  %v828_v6 = vpop.f32.mrf.mxu1  ;;  %v1130_v2 = vld [vmem:[#allocation2 + $0x120] sm:$0xff] }
 0x10e   :  { %v475_v7 = vadd.f32 %v474_v5, %v473_v1  ;;  %882 = vst.msk [vmem:[#allocation2 + $0x1c8] sm:$0xff] %vm392_vm2, %v828_v6  ;;  %v938_v8 = vsel %vm392_vm2, %v828_v6, 0.0  ;;  %v5716_v9 = vpop.f32.mrf.mxu0  ;;  %v1131_v5 = vld [vmem:[#allocation2 + $0x128] sm:$0xff] }
 0x10f   :  { %v939_v11 = vadd.f32 %v938_v8, %v937_v4  ;;  %423 = vst.msk [vmem:[#allocation2 + $0xf0] sm:$0xff] %vm392_vm2, %v5716_v9  ;;  %v5758_v12 = vpop.f32.mrf.mxu1  ;;  %v484_v33 = vsel %vm392_vm2, %v5716_v9, 0.0 }
 0x110   :  { %v477_v14 = vadd.f32 %v476_v10, %v475_v7  ;;  %887 = vst.msk [vmem:[#allocation2 + $0x1f0] sm:$0xff] %vm392_vm2, %v5758_v12  ;;  %v377_v15 = vpop.f32.mrf.mxu0  ;;  %v948_v35 = vsel %vm392_vm2, %v5758_v12, 0.0  ;;  %v1132_v10 = vld [vmem:[#allocation2 + $0x130] sm:$0xff] }
 0x111   :  { %v941_v17 = vadd.f32 %v940_v13, %v939_v11  ;;  %421 = vst.msk [vmem:[#allocation2 + $0xe0] sm:$0xff] %vm392_vm2, %v377_v15  ;;  %v841_v18 = vpop.f32.mrf.mxu1  ;;  %v480_v22 = vsel %vm392_vm2, %v377_v15, 0.0  ;;  %v1133_v15 = vld [vmem:[#allocation2 + $0x138] sm:$0xff] }
 0x112   :  { %v479_v20 = vadd.f32 %v478_v16, %v477_v14  ;;  %885 = vst.msk [vmem:[#allocation2 + $0x1e0] sm:$0xff] %vm392_vm2, %v841_v18  ;;  %v5717_v21 = vpop.f32.mrf.mxu0  ;;  %v944_v26 = vsel %vm392_vm2, %v841_v18, 0.0 }
 0x113   :  { %v943_v23 = vadd.f32 %v942_v19, %v941_v17  ;;  %424 = vst.msk [vmem:[#allocation2 + $0xf8] sm:$0xff] %vm392_vm2, %v5717_v21  ;;  %v5759_v24 = vpop.f32.mrf.mxu1  ;;  %v486_v37 = vsel %vm392_vm2, %v5717_v21, 0.0 }
 0x114   :  { %v481_v25 = vadd.f32 %v480_v22, %v479_v20  ;;  %888 = vst.msk [vmem:[#allocation2 + $0x1f8] sm:$0xff] %vm392_vm2, %v5759_v24  ;;  %v380_v27 = vpop.f32.mrf.mxu0  ;;  %v950_v39 = vsel %vm392_vm2, %v5759_v24, 0.0  ;;  %v1134_v20 = vld [vmem:[#allocation2 + $0x140] sm:$0xff] }
 0x115   :  { %v945_v28 = vadd.f32 %v944_v26, %v943_v23  ;;  %422 = vst.msk [vmem:[#allocation2 + $0xe8] sm:$0xff] %vm392_vm2, %v380_v27  ;;  %v482_v29 = vsel %vm392_vm2, %v380_v27, 0.0  ;;  %v844_v30 = vpop.f32.mrf.mxu1 }
 0x116   :  { %v483_v31 = vadd.f32 %v482_v29, %v481_v25  ;;  %886 = vst.msk [vmem:[#allocation2 + $0x1e8] sm:$0xff] %vm392_vm2, %v844_v30  ;;  %v946_v32 = vsel %vm392_vm2, %v844_v30, 0.0  ;;  %v1135_v25 = vld [vmem:[#allocation2 + $0x148] sm:$0xff]  ;;  %v1136_v30 = vld [vmem:[#allocation2 + $0x150] sm:$0xff] }
 0x117   :  { %v947_v34 = vadd.f32 %v946_v32, %v945_v28 }
 0x118   :  { %v485_v36 = vadd.f32 %v484_v33, %v483_v31 }
 0x119   :  { %v949_v38 = vadd.f32 %v948_v35, %v947_v34  ;;  %v1137_v35 = vld [vmem:[#allocation2 + $0x158] sm:$0xff] }
 0x11a   :  { %v487_v40 = vadd.f32 %v486_v37, %v485_v36 }
 0x11b   :  { %v951_v41 = vadd.f32 %v950_v39, %v949_v38 }
 0x11c   :  { %v488_v42 = vrot.slane %v487_v40, 4 }
 0x11d   :  { %v952_v43 = vrot.slane %v951_v41, 4 }
 0x11e   :  { %v489_v44 = vadd.f32 %v488_v42, %v487_v40  ;;  %v1138_v40 = vld [vmem:[#allocation2 + $0x160] sm:$0xff] }
 0x11f   :  { %v953_v45 = vadd.f32 %v952_v43, %v951_v41 }
 0x120   :  { %v490_v46 = vrot.slane %v489_v44, 2 }
 0x121   :  { %v954_v47 = vrot.slane %v953_v45, 2 }
 0x122   :  { %v491_v48 = vadd.f32 %v490_v46, %v489_v44 }
 0x123   :  { %v955_v49 = vadd.f32 %v954_v47, %v953_v45  ;;  %v1139_v45 = vld [vmem:[#allocation2 + $0x168] sm:$0xff] }
 0x124   :  { %v492_v50 = vrot.slane %v491_v48, 1 }
 0x125   :  { %v956_v51 = vrot.slane %v955_v49, 1 }
 0x126   :  { %v493_v52 = vadd.f32 %v492_v50, %v491_v48  ;;  %v1140_v50 = vld [vmem:[#allocation2 + $0x170] sm:$0xff] }
 0x127   :  { %v957_v53 = vadd.f32 %v956_v51, %v955_v49 }
 0x129   :  { %v958_v54 = vadd.f32 %v957_v53, %v493_v52 }
 0x12b   :  { %v6410_v55 = vmul.f32 0.001953125, %v958_v54 }
 0x12d   :  { %v1158_v58 = vsub.f32 %v1126_v56, %v6410_v55  ;;  %v1159_v59 = vsub.f32 %v1127_v57, %v6410_v55  ;;  %v1160_v61 = vsub.f32 %v1128_v60, %v6410_v55  ;;  %v1161_v63 = vsub.f32 %v1129_v62, %v6410_v55  ;;  %v6438_v56 = vld [vmem:[#allocation2] sm:$0xff]  ;;  %v6440_v57 = vld [vmem:[#allocation2 + $0x8] sm:$0xff] }
 0x12e   :  { %v1162_v3 = vsub.f32 %v1130_v2, %v6410_v55  ;;  %v1163_v6 = vsub.f32 %v1131_v5, %v6410_v55  ;;  %v1164_v12 = vsub.f32 %v1132_v10, %v6410_v55  ;;  %v1165_v17 = vsub.f32 %v1133_v15, %v6410_v55  ;;  %v1142_v2 = vld [vmem:[#allocation2 + $0x180] sm:$0xff] }
 0x12f   :  { %v1190_v0 = vmul.f32 %v1158_v58, %v1158_v58  ;;  %v1191_v1 = vmul.f32 %v1159_v59, %v1159_v59  ;;  %v1192_v4 = vmul.f32 %v1160_v61, %v1160_v61  ;;  %v1193_v7 = vmul.f32 %v1161_v63, %v1161_v63  ;;  %v1141_v58 = vld [vmem:[#allocation2 + $0x178] sm:$0xff] }
 0x130   :  { %v1194_v13 = vmul.f32 %v1162_v3, %v1162_v3  ;;  %v1195_v18 = vmul.f32 %v1163_v6, %v1163_v6  ;;  %v1166_v22 = vsub.f32 %v1134_v20, %v6410_v55  ;;  %v1196_v23 = vmul.f32 %v1164_v12, %v1164_v12 }
 0x131   :  { %v1222_v8 = vsel %vm392_vm2, %v1190_v0, 0.0  ;;  %v1223_v9 = vsel %vm392_vm2, %v1191_v1, 0.0  ;;  %v1225_v14 = vsel %vm392_vm2, %v1192_v4, 0.0  ;;  %v1227_v19 = vsel %vm392_vm2, %v1193_v7, 0.0  ;;  %v6448_v1 = vld [vmem:[#allocation2 + $0x10] sm:$0xff] }
 0x132   :  { %v1224_v11 = vadd.f32 %v1223_v9, %v1222_v8  ;;  %v1229_v24 = vsel %vm392_vm2, %v1194_v13, 0.0  ;;  %v1167_v27 = vsub.f32 %v1135_v25, %v6410_v55  ;;  %v1197_v28 = vmul.f32 %v1165_v17, %v1165_v17  ;;  %v6454_v8 = vld [vmem:[#allocation2 + $0x18] sm:$0xff]  ;;  %v1143_v9 = vld [vmem:[#allocation2 + $0x188] sm:$0xff] }
 0x133   :  { %v1231_v29 = vsel %vm392_vm2, %v1195_v18, 0.0  ;;  %v1168_v32 = vsub.f32 %v1136_v30, %v6410_v55  ;;  %v1198_v33 = vmul.f32 %v1166_v22, %v1166_v22  ;;  %v1233_v34 = vsel %vm392_vm2, %v1196_v23, 0.0  ;;  %v6460_v18 = vld [vmem:[#allocation2 + $0x20] sm:$0xff]  ;;  %v6463_v22 = vld [vmem:[#allocation2 + $0x28] sm:$0xff] }
 0x134   :  { %v1226_v16 = vadd.f32 %v1225_v14, %v1224_v11  ;;  %v1169_v37 = vsub.f32 %v1137_v35, %v6410_v55  ;;  %v1199_v38 = vmul.f32 %v1167_v27, %v1167_v27  ;;  %v1235_v39 = vsel %vm392_vm2, %v1197_v28, 0.0  ;;  %v1144_v14 = vld [vmem:[#allocation2 + $0x190] sm:$0xff] }
 0x135   :  { %v1170_v42 = vsub.f32 %v1138_v40, %v6410_v55  ;;  %v1200_v43 = vmul.f32 %v1168_v32, %v1168_v32  ;;  %v1237_v44 = vsel %vm392_vm2, %v1198_v33, 0.0  ;;  %v1171_v47 = vsub.f32 %v1139_v45, %v6410_v55 }
 0x136   :  { %v1228_v21 = vadd.f32 %v1227_v19, %v1226_v16  ;;  %v1201_v48 = vmul.f32 %v1169_v37, %v1169_v37  ;;  %v1239_v49 = vsel %vm392_vm2, %v1199_v38, 0.0  ;;  %v1172_v52 = vsub.f32 %v1140_v50, %v6410_v55  ;;  %v1145_v19 = vld [vmem:[#allocation2 + $0x198] sm:$0xff]  ;;  %v6475_v37 = vld [vmem:[#allocation2 + $0x30] sm:$0xff] }
 0x137   :  { %v1202_v53 = vmul.f32 %v1170_v42, %v1170_v42  ;;  %v1241_v54 = vsel %vm392_vm2, %v1200_v43, 0.0  ;;  %v992_v60 = vsub.f32 %v6438_v56, %v6410_v55  ;;  %v993_v61 = vsub.f32 %v6440_v57, %v6410_v55 }
 0x138   :  { %v1230_v26 = vadd.f32 %v1229_v24, %v1228_v21  ;;  %v1173_v62 = vsub.f32 %v1141_v58, %v6410_v55  ;;  %v1203_v63 = vmul.f32 %v1171_v47, %v1171_v47  ;;  %v1243_v0 = vsel %vm392_vm2, %v1201_v48, 0.0  ;;  %v6482_v47 = vld [vmem:[#allocation2 + $0x38] sm:$0xff] }
 0x139   :  { %v994_v4 = vsub.f32 %v6448_v1, %v6410_v55  ;;  %v1174_v5 = vsub.f32 %v1142_v2, %v6410_v55  ;;  %v1204_v6 = vmul.f32 %v1172_v52, %v1172_v52  ;;  %v1245_v7 = vsel %vm392_vm2, %v1202_v53, 0.0 }
 0x13a   :  { %v1232_v31 = vadd.f32 %v1231_v29, %v1230_v26  ;;  %v995_v11 = vsub.f32 %v6454_v8, %v6410_v55  ;;  %v1024_v12 = vmul.f32 %v992_v60, %v992_v60  ;;  %v1025_v13 = vmul.f32 %v993_v61, %v993_v61  ;;  %v1146_v29 = vld [vmem:[#allocation2 + $0x1a0] sm:$0xff] }
 0x13b   :  { %v1175_v15 = vsub.f32 %v1143_v9, %v6410_v55  ;;  %v1205_v16 = vmul.f32 %v1173_v62, %v1173_v62  ;;  %v1247_v17 = vsel %vm392_vm2, %v1203_v63, 0.0  ;;  %v1176_v20 = vsub.f32 %v1144_v14, %v6410_v55  ;;  %v6489_v60 = vld [vmem:[#allocation2 + $0x40] sm:$0xff]  ;;  %v1149_v62 = vld [vmem:[#allocation2 + $0x1b8] sm:$0xff] }
 0x13c   :  { %v1234_v36 = vadd.f32 %v1233_v34, %v1232_v31  ;;  %v996_v23 = vsub.f32 %v6460_v18, %v6410_v55  ;;  %v1026_v24 = vmul.f32 %v994_v4, %v994_v4  ;;  %v1177_v25 = vsub.f32 %v1145_v19, %v6410_v55  ;;  %v6494_v4 = vld [vmem:[#allocation2 + $0x48] sm:$0xff] }
 0x13d   :  { %v1206_v26 = vmul.f32 %v1174_v5, %v1174_v5  ;;  %v1249_v27 = vsel %vm392_vm2, %v1204_v6, 0.0  ;;  %v997_v28 = vsub.f32 %v6463_v22, %v6410_v55  ;;  %v1027_v31 = vmul.f32 %v995_v11, %v995_v11 }
 0x13e   :  { %v1236_v41 = vadd.f32 %v1235_v39, %v1234_v36  ;;  %v1056_v32 = vsel %vm392_vm2, %v1024_v12, 0.0  ;;  %v1057_v33 = vsel %vm392_vm2, %v1025_v13, 0.0  ;;  %v1178_v34 = vsub.f32 %v1146_v29, %v6410_v55  ;;  %v1147_v39 = vld [vmem:[#allocation2 + $0x1a8] sm:$0xff] }
 0x13f   :  { %v1207_v35 = vmul.f32 %v1175_v15, %v1175_v15  ;;  %v1251_v36 = vsel %vm392_vm2, %v1205_v16, 0.0  ;;  %v1058_v38 = vadd.f32 %v1057_v33, %v1056_v32  ;;  %v1028_v42 = vmul.f32 %v996_v23, %v996_v23  ;;  %v6504_v15 = vld [vmem:[%s8895_s4] sm:$0xff]   ;;  %v6506_v16 = vld [vmem:[#allocation2 + $0x50] sm:$0xff] }
 0x140   :  { %v1238_v46 = vadd.f32 %v1237_v44, %v1236_v41  ;;  %v998_v41 = vsub.f32 %v6475_v37, %v6410_v55  ;;  %v1059_v43 = vsel %vm392_vm2, %v1026_v24, 0.0  ;;  %v1179_v44 = vsub.f32 %v1147_v39, %v6410_v55  ;;  %5762 = vmatprep.mubr.msk.bf16.mxu0 %vm1438_vm3, %v6504_v15  ;;  %5768 = vmatprep.mubr.msk.bf16.mxu1 %vm1438_vm3, %v6504_v15 }
 0x141   :  { %v1208_v45 = vmul.f32 %v1176_v20, %v1176_v20  ;;  %v1060_v48 = vadd.f32 %v1059_v43, %v1058_v38  ;;  %v1029_v52 = vmul.f32 %v997_v28, %v997_v28  ;;  %v1061_v53 = vsel %vm392_vm2, %v1027_v31, 0.0  ;;  %v1151_v31 = vld [vmem:[#allocation2 + $0x1c8] sm:$0xff] }
 0x142   :  { %v1240_v51 = vadd.f32 %v1239_v49, %v1238_v46  ;;  %v1253_v46 = vsel %vm392_vm2, %v1206_v26, 0.0  ;;  %v1148_v49 = vld [vmem:[#allocation2 + $0x1b0] sm:$0xff]  ;;  %v1209_v58 = vmul.f32 %v1177_v25, %v1177_v25  ;;  %v1030_v2 = vmul.f32 %v998_v41, %v998_v41 }
 0x143   :  { %v1062_v61 = vadd.f32 %v1061_v53, %v1060_v48  ;;  %v1181_v5 = vsub.f32 %v1149_v62, %v6410_v55  ;;  %v1210_v6 = vmul.f32 %v1178_v34, %v1178_v34  ;;  %v1001_v12 = vsub.f32 %v6494_v4, %v6410_v55 }
 0x144   :  { %v1242_v59 = vadd.f32 %v1241_v54, %v1240_v51  ;;  %v999_v51 = vsub.f32 %v6482_v47, %v6410_v55  ;;  %v1180_v54 = vsub.f32 %v1148_v49, %v6410_v55  ;;  %v1065_v14 = vsel %vm392_vm2, %v1029_v52, 0.0 }
 0x145   :  { %v1211_v19 = vmul.f32 %v1179_v44, %v1179_v44  ;;  %v1259_v20 = vsel %vm392_vm2, %v1209_v58, 0.0  ;;  %v1002_v24 = vsub.f32 %v6506_v16, %v6410_v55  ;;  %v1067_v26 = vsel %vm392_vm2, %v1030_v2, 0.0 }
 0x146   :  { %v1244_v3 = vadd.f32 %v1243_v0, %v1242_v59  ;;  %v1255_v59 = vsel %vm392_vm2, %v1207_v35, 0.0  ;;  %v1000_v0 = vsub.f32 %v6489_v60, %v6410_v55  ;;  %v1031_v13 = vmul.f32 %v999_v51, %v999_v51  ;;  %v1152_v51 = vld [vmem:[#allocation2 + $0x1d0] sm:$0xff] }
 0x147   :  { %v1212_v28 = vmul.f32 %v1180_v54, %v1180_v54  ;;  %v1261_v29 = vsel %vm392_vm2, %v1210_v6, 0.0  ;;  %v1033_v34 = vmul.f32 %v1001_v12, %v1001_v12  ;;  %v1183_v38 = vsub.f32 %v1151_v31, %v6410_v55 }
 0x148   :  { %v1246_v10 = vadd.f32 %v1245_v7, %v1244_v3  ;;  %v1063_v3 = vsel %vm392_vm2, %v1028_v42, 0.0  ;;  %v1257_v7 = vsel %vm392_vm2, %v1208_v45, 0.0  ;;  %v1032_v25 = vmul.f32 %v1000_v0, %v1000_v0 }
 0x149   :  { %v1064_v9 = vadd.f32 %v1063_v3, %v1062_v61  ;;  %v1069_v35 = vsel %vm392_vm2, %v1031_v13, 0.0  ;;  %v1213_v39 = vmul.f32 %v1181_v5, %v1181_v5  ;;  %v1034_v44 = vmul.f32 %v1002_v24, %v1002_v24 }
 0x14a   :  { %v1248_v21 = vadd.f32 %v1247_v17, %v1246_v10  ;;  %v1150_v10 = vld [vmem:[#allocation2 + $0x1c0] sm:$0xff]  ;;  %v1071_v45 = vsel %vm392_vm2, %v1032_v25, 0.0  ;;  %v1265_v49 = vsel %vm392_vm2, %v1212_v28, 0.0  ;;  %v1073_v58 = vsel %vm392_vm2, %v1033_v34, 0.0 }
 0x14b   :  { %v1182_v17 = vsub.f32 %v1150_v10, %v6410_v55  ;;  %v1184_v61 = vsub.f32 %v1152_v51, %v6410_v55  ;;  %v1215_v62 = vmul.f32 %v1183_v38, %v1183_v38  ;;  %v1075_v6 = vsel %vm392_vm2, %v1034_v44, 0.0  ;;  %v6561_v38 = vld [vmem:[#allocation2 + $0x90] sm:$0xff]  ;;  %v1155_v51 = vld [vmem:[#allocation2 + $0x1e8] sm:$0xff] }
 0x14c   :  { %v1250_v30 = vadd.f32 %v1249_v27, %v1248_v21  ;;  %v1066_v21 = vadd.f32 %v1065_v14, %v1064_v9  ;;  %v6513_v27 = vld [vmem:[#allocation2 + $0x58] sm:$0xff] }
 0x14d   :  { %v1003_v33 = vsub.f32 %v6513_v27, %v6410_v55  ;;  %v1214_v48 = vmul.f32 %v1182_v17, %v1182_v17  ;;  %v1271_v24 = vsel %vm392_vm2, %v1215_v62, 0.0 }
 0x14e   :  { %v1252_v40 = vadd.f32 %v1251_v36, %v1250_v30  ;;  %v1068_v30 = vadd.f32 %v1067_v26, %v1066_v21  ;;  %v6523_v36 = vld [vmem:[#allocation2 + $0x60] sm:$0xff]  ;;  %v1216_v21 = vmul.f32 %v1184_v61, %v1184_v61  ;;  %v1187_v61 = vsub.f32 %v1155_v51, %v6410_v55  ;;  %v6604_v51 = vld [vmem:[#allocation2 + $0xc8] sm:$0xff] }
 0x14f   :  { %v1004_v43 = vsub.f32 %v6523_v36, %v6410_v55  ;;  %v1035_v54 = vmul.f32 %v1003_v33, %v1003_v33  ;;  %v1269_v9 = vsel %vm392_vm2, %v1214_v48, 0.0  ;;  %v6568_v48 = vld [vmem:[#allocation2 + $0x98] sm:$0xff] }
 0x150   :  { %v1254_v50 = vadd.f32 %v1253_v46, %v1252_v40  ;;  %v1263_v40 = vsel %vm392_vm2, %v1211_v19, 0.0  ;;  %v1070_v41 = vadd.f32 %v1069_v35, %v1068_v30  ;;  %v6530_v46 = vld [vmem:[#allocation2 + $0x68] sm:$0xff]  ;;  %v6549_v19 = vld [vmem:[#allocation2 + $0x80] sm:$0xff] }
 0x151   :  { %v1005_v53 = vsub.f32 %v6530_v46, %v6410_v55  ;;  %v1036_v5 = vmul.f32 %v1004_v43, %v1004_v43  ;;  %v1077_v17 = vsel %vm392_vm2, %v1035_v54, 0.0  ;;  %v1008_v25 = vsub.f32 %v6549_v19, %v6410_v55 }
 0x152   :  { %v1256_v63 = vadd.f32 %v1255_v59, %v1254_v50  ;;  %v1072_v50 = vadd.f32 %v1071_v45, %v1070_v41  ;;  %v6536_v59 = vld [vmem:[#allocation2 + $0x70] sm:$0xff]  ;;  %v1010_v43 = vsub.f32 %v6561_v38, %v6410_v55 }
 0x153   :  { %v1006_v3 = vsub.f32 %v6536_v59, %v6410_v55  ;;  %v1037_v14 = vmul.f32 %v1005_v53, %v1005_v53  ;;  %v1079_v28 = vsel %vm392_vm2, %v1036_v5, 0.0  ;;  %v1040_v44 = vmul.f32 %v1008_v25, %v1008_v25 }
 0x154   :  { %v1258_v11 = vadd.f32 %v1257_v7, %v1256_v63  ;;  %v1267_v63 = vsel %vm392_vm2, %v1213_v39, 0.0  ;;  %v1074_v0 = vadd.f32 %v1073_v58, %v1072_v50  ;;  %v6543_v7 = vld [vmem:[#allocation2 + $0x78] sm:$0xff]  ;;  %v6573_v58 = vld [vmem:[#allocation2 + $0xa0] sm:$0xff] }
 0x155   :  { %v1007_v13 = vsub.f32 %v6543_v7, %v6410_v55  ;;  %v1038_v26 = vmul.f32 %v1006_v3, %v1006_v3  ;;  %v1081_v35 = vsel %vm392_vm2, %v1037_v14, 0.0  ;;  %v1042_v3 = vmul.f32 %v1010_v43, %v1010_v43 }
 0x156   :  { %v1260_v23 = vadd.f32 %v1259_v20, %v1258_v11  ;;  %v1076_v10 = vadd.f32 %v1075_v6, %v1074_v0  ;;  %v1153_v11 = vld [vmem:[#allocation2 + $0x1d8] sm:$0xff]  ;;  %v1087_v5 = vsel %vm392_vm2, %v1040_v44, 0.0  ;;  %v6580_v6 = vld [vmem:[#allocation2 + $0xa8] sm:$0xff] }
 0x157   :  { %v1185_v20 = vsub.f32 %v1153_v11, %v6410_v55  ;;  %v1039_v34 = vmul.f32 %v1007_v13, %v1007_v13  ;;  %v1083_v45 = vsel %vm392_vm2, %v1038_v26, 0.0  ;;  %v1156_v11 = vld [vmem:[#allocation2 + $0x1f0] sm:$0xff] }
 0x158   :  { %v1262_v32 = vadd.f32 %v1261_v29, %v1260_v23  ;;  %v1078_v23 = vadd.f32 %v1077_v17, %v1076_v10  ;;  %v6556_v29 = vld [vmem:[#allocation2 + $0x88] sm:$0xff]  ;;  %v6585_v17 = vld [vmem:[#allocation2 + $0xb0] sm:$0xff] }
 0x159   :  { %v1009_v33 = vsub.f32 %v6556_v29, %v6410_v55  ;;  %v1085_v54 = vsel %vm392_vm2, %v1039_v34, 0.0  ;;  %v1014_v25 = vsub.f32 %v6585_v17, %v6410_v55 }
 0x15a   :  { %v1264_v42 = vadd.f32 %v1263_v40, %v1262_v32  ;;  %v1080_v31 = vadd.f32 %v1079_v28, %v1078_v23  ;;  %v1154_v32 = vld [vmem:[#allocation2 + $0x1e0] sm:$0xff]  ;;  %v1217_v40 = vmul.f32 %v1185_v20, %v1185_v20  ;;  %v1188_v20 = vsub.f32 %v1156_v11, %v6410_v55  ;;  %v6615_v11 = vld [vmem:[#allocation2 + $0xd8] sm:$0xff] }
 0x15b   :  { %v1186_v39 = vsub.f32 %v1154_v32, %v6410_v55  ;;  %v1041_v53 = vmul.f32 %v1009_v33, %v1009_v33  ;;  %v1091_v28 = vsel %vm392_vm2, %v1042_v3, 0.0  ;;  %v1157_v33 = vld [vmem:[#allocation2 + $0x1f8] sm:$0xff] }
 0x15c   :  { %v1266_v52 = vadd.f32 %v1265_v49, %v1264_v42  ;;  %v1082_v41 = vadd.f32 %v1081_v35, %v1080_v31  ;;  %v1273_v42 = vsel %vm392_vm2, %v1216_v21, 0.0  ;;  %v1275_v0 = vsel %vm392_vm2, %v1217_v40, 0.0  ;;  %v6597_v40 = vld [vmem:[#allocation2 + $0xc0] sm:$0xff] }
 0x15d   :  { %v1218_v62 = vmul.f32 %v1186_v39, %v1186_v39  ;;  %v1089_v14 = vsel %vm392_vm2, %v1041_v53, 0.0  ;;  %v1219_v21 = vmul.f32 %v1187_v61, %v1187_v61 }
 0x15e   :  { %v1268_v2 = vadd.f32 %v1267_v63, %v1266_v52  ;;  %v1084_v50 = vadd.f32 %v1083_v45, %v1082_v41  ;;  %v1011_v52 = vsub.f32 %v6568_v48, %v6410_v55  ;;  %v1189_v41 = vsub.f32 %v1157_v33, %v6410_v55 }
 0x15f   :  { %v1279_v44 = vsel %vm392_vm2, %v1219_v21, 0.0  ;;  %v1016_v45 = vsub.f32 %v6597_v40, %v6410_v55 }
 0x160   :  { %v1270_v12 = vadd.f32 %v1269_v9, %v1268_v2  ;;  %v1086_v63 = vadd.f32 %v1085_v54, %v1084_v50  ;;  %v1012_v2 = vsub.f32 %v6573_v58, %v6410_v55  ;;  %v1043_v13 = vmul.f32 %v1011_v52, %v1011_v52 }
 0x161   :  { %v1017_v54 = vsub.f32 %v6604_v51, %v6410_v55 }
 0x162   :  { %v1272_v30 = vadd.f32 %v1271_v24, %v1270_v12  ;;  %v1088_v10 = vadd.f32 %v1087_v5, %v1086_v63  ;;  %v1013_v12 = vsub.f32 %v6580_v6, %v6410_v55  ;;  %v1277_v24 = vsel %vm392_vm2, %v1218_v62, 0.0  ;;  %v6609_v63 = vld [vmem:[#allocation2 + $0xd0] sm:$0xff] }
 0x163   :  { %v1044_v26 = vmul.f32 %v1012_v2, %v1012_v2  ;;  %v1093_v39 = vsel %vm392_vm2, %v1043_v13, 0.0  ;;  %v1018_v5 = vsub.f32 %v6609_v63, %v6410_v55 }
 0x164   :  { %v1274_v49 = vadd.f32 %v1273_v42, %v1272_v30  ;;  %v1090_v23 = vadd.f32 %v1089_v14, %v1088_v10  ;;  %v6592_v30 = vld [vmem:[#allocation2 + $0xb8] sm:$0xff]  ;;  %v1045_v35 = vmul.f32 %v1013_v12, %v1013_v12  ;;  %v1220_v42 = vmul.f32 %v1188_v20, %v1188_v20 }
 0x165   :  { %v1015_v34 = vsub.f32 %v6592_v30, %v6410_v55  ;;  %v1095_v50 = vsel %vm392_vm2, %v1044_v26, 0.0  ;;  %v1019_v14 = vsub.f32 %v6615_v11, %v6410_v55  ;;  %v1049_v20 = vmul.f32 %v1017_v54, %v1017_v54 }
 0x166   :  { %v1276_v9 = vadd.f32 %v1275_v0, %v1274_v49  ;;  %v1092_v32 = vadd.f32 %v1091_v28, %v1090_v23  ;;  %v1046_v49 = vmul.f32 %v1014_v25, %v1014_v25  ;;  %v1097_v62 = vsel %vm392_vm2, %v1045_v35, 0.0  ;;  %v6620_v23 = vld [vmem:[#allocation2 + $0xe0] sm:$0xff] }
 0x167   :  { %v1047_v61 = vmul.f32 %v1015_v34, %v1015_v34  ;;  %v1221_v0 = vmul.f32 %v1189_v41, %v1189_v41  ;;  %v1281_v3 = vsel %vm392_vm2, %v1220_v42, 0.0  ;;  %v1020_v26 = vsub.f32 %v6620_v23, %v6410_v55  ;;  %v6631_v42 = vld [vmem:[#allocation2 + $0xf0] sm:$0xff] }
 0x168   :  { %v1278_v31 = vadd.f32 %v1277_v24, %v1276_v9  ;;  %v1094_v43 = vadd.f32 %v1093_v39, %v1092_v32  ;;  %v1048_v9 = vmul.f32 %v1016_v45, %v1016_v45  ;;  %v1099_v10 = vsel %vm392_vm2, %v1046_v49, 0.0  ;;  %v6626_v32 = vld [vmem:[#allocation2 + $0xe8] sm:$0xff] }
 0x169   :  { %v1101_v21 = vsel %vm392_vm2, %v1047_v61, 0.0  ;;  %v1283_v25 = vsel %vm392_vm2, %v1221_v0, 0.0  ;;  %v1050_v28 = vmul.f32 %v1018_v5, %v1018_v5  ;;  %v1021_v35 = vsub.f32 %v6626_v32, %v6410_v55 }
 0x16a   :  { %v1280_v52 = vadd.f32 %v1279_v44, %v1278_v31  ;;  %v1096_v53 = vadd.f32 %v1095_v50, %v1094_v43  ;;  %v1103_v31 = vsel %vm392_vm2, %v1048_v9, 0.0  ;;  %v1051_v39 = vmul.f32 %v1019_v14, %v1019_v14  ;;  %v6636_v50 = vld [vmem:[#allocation2 + $0xf8] sm:$0xff] }
 0x16b   :  { %v1105_v41 = vsel %vm392_vm2, %v1049_v20, 0.0  ;;  %v1022_v44 = vsub.f32 %v6631_v42, %v6410_v55  ;;  %v1052_v45 = vmul.f32 %v1020_v26, %v1020_v26  ;;  %v1107_v49 = vsel %vm392_vm2, %v1050_v28, 0.0 }
 0x16c   :  { %v1098_v2 = vadd.f32 %v1097_v62, %v1096_v53  ;;  %v1282_v12 = vadd.f32 %v1281_v3, %v1280_v52  ;;  %v1023_v54 = vsub.f32 %v6636_v50, %v6410_v55  ;;  %v1053_v61 = vmul.f32 %v1021_v35, %v1021_v35 }
 0x16d   :  { %v1109_v62 = vsel %vm392_vm2, %v1051_v39, 0.0  ;;  %v1111_v3 = vsel %vm392_vm2, %v1052_v45, 0.0 }
 0x16e   :  { %v1100_v13 = vadd.f32 %v1099_v10, %v1098_v2  ;;  %v1284_v33 = vadd.f32 %v1283_v25, %v1282_v12  ;;  %v1054_v2 = vmul.f32 %v1022_v44, %v1022_v44  ;;  %v1055_v10 = vmul.f32 %v1023_v54, %v1023_v54  ;;  %v1292_v54 = vld [vmem:[%s8896_s2] sm:$0x1] }
 0x16f   :  { %v1113_v12 = vsel %vm392_vm2, %v1053_v61, 0.0 }
 0x170   :  { %v1102_v24 = vadd.f32 %v1101_v21, %v1100_v13  ;;  %v1285_v52 = vrot.slane %v1284_v33, 4  ;;  %v1115_v14 = vsel %vm392_vm2, %v1054_v2, 0.0  ;;  %v1297_v2 = vld [vmem:[%s8897_s3] sm:$0x1] }
 0x172   :  { %v1104_v34 = vadd.f32 %v1103_v31, %v1102_v24  ;;  %v1286_v5 = vadd.f32 %v1285_v52, %v1284_v33  ;;  %v1117_v24 = vsel %vm392_vm2, %v1055_v10, 0.0  ;;  %v1305_v52 = vlaneseq }
 0x174   :  { %v1106_v43 = vadd.f32 %v1105_v41, %v1104_v34  ;;  %v1287_v20 = vrot.slane %v1286_v5, 2 }
 0x176   :  { %v1108_v53 = vadd.f32 %v1107_v49, %v1106_v43  ;;  %v1288_v26 = vadd.f32 %v1287_v20, %v1286_v5 }
 0x178   :  { %v1110_v0 = vadd.f32 %v1109_v62, %v1108_v53  ;;  %v1289_v34 = vrot.slane %v1288_v26, 1  ;;  %v1306_v53 = vshrl.u32 %v1305_v52, 7 }
 0x17a   :  { %v1112_v9 = vadd.f32 %v1111_v3, %v1110_v0  ;;  %v1290_v41 = vadd.f32 %v1289_v34, %v1288_v26  ;;  %v1307_v61 = vsub.s32 0, %v1306_v53 }
 0x17c   :  { %v1114_v13 = vadd.f32 %v1113_v12, %v1112_v9 }
 0x17e   :  { %v1116_v21 = vadd.f32 %v1115_v14, %v1114_v13 }
 0x180   :  { %v1118_v25 = vadd.f32 %v1117_v24, %v1116_v21 }
 0x182   :  { %v1119_v28 = vrot.slane %v1118_v25, 4 }
 0x184   :  { %v1120_v31 = vadd.f32 %v1119_v28, %v1118_v25 }
 0x186   :  { %v1121_v35 = vrot.slane %v1120_v31, 2 }
 0x188   :  { %v1122_v39 = vadd.f32 %v1121_v35, %v1120_v31 }
 0x18a   :  { %v1123_v33 = vrot.slane %v1122_v39, 1 }
 0x18c   :  { %v1124_v43 = vadd.f32 %v1123_v33, %v1122_v39 }
 0x18e   :  { %v1291_v44 = vadd.f32 %v1290_v41, %v1124_v43 }
 0x190   :  { %v1293_v45 = vmul.f32 0.001953125, %v1291_v44 }
 0x192   :  { %v1294_v49 = vadd.f32 1e-05, %v1293_v45 }
 0x194   :  { %6067 = vrsqrt.f32 %v1294_v49 }
 0x1a1   :  { %v6068_v62 = vpop.eup %6067 }
 0x1a2   :  { %v1296_v0 = vmul.f32 %v6068_v62, %v1292_v54  ;;  %v6699_v62 = vld [vmem:[%s8895_s4 + $0x8] sm:$0xff]  }
 0x1a4   :  { %v1298_v3 = vmul.f32 %v1296_v0, %v6410_v55  ;;  %v6652_v5 = vrot.slane %v1296_v0, %v1307_v61 }
 0x1a6   :  { %v1299_v9 = vsub.f32 %v1297_v2, %v1298_v3  ;;  %v1310_v10 = vmul.f32 %v6652_v5, %v6438_v56  ;;  %v1311_v12 = vmul.f32 %v6652_v5, %v6440_v57  ;;  %v1312_v13 = vmul.f32 %v6652_v5, %v6448_v1 }
 0x1a7   :  { %v1313_v14 = vmul.f32 %v6652_v5, %v6454_v8  ;;  %v1314_v20 = vmul.f32 %v6652_v5, %v6460_v18  ;;  %v1315_v55 = vmul.f32 %v6652_v5, %v6463_v22  ;;  %v1316_v21 = vmul.f32 %v6652_v5, %v6475_v37 }
 0x1a8   :  { %v6668_v24 = vrot.slane %v1299_v9, %v1307_v61  ;;  %v1317_v56 = vmul.f32 %v6652_v5, %v6482_v47  ;;  %v1318_v57 = vmul.f32 %v6652_v5, %v6489_v60  ;;  %v1319_v1 = vmul.f32 %v6652_v5, %v6494_v4 }
 0x1a9   :  { %v1320_v8 = vmul.f32 %v6652_v5, %v6506_v16  ;;  %v1321_v18 = vmul.f32 %v6652_v5, %v6513_v27  ;;  %v1322_v22 = vmul.f32 %v6652_v5, %v6523_v36  ;;  %v1323_v37 = vmul.f32 %v6652_v5, %v6530_v46 }
 0x1aa   :  { %v1348_v47 = vadd.f32 %v6668_v24, %v1310_v10  ;;  %v1349_v25 = vadd.f32 %v6668_v24, %v1311_v12  ;;  %v1350_v60 = vadd.f32 %v6668_v24, %v1312_v13  ;;  %v1351_v4 = vadd.f32 %v6668_v24, %v1313_v14 }
 0x1ab   :  { %v1352_v26 = vadd.f32 %v6668_v24, %v1314_v20  ;;  %v1353_v16 = vadd.f32 %v6668_v24, %v1315_v55  ;;  %v1354_v27 = vadd.f32 %v6668_v24, %v1316_v21  ;;  %v1355_v28 = vadd.f32 %v6668_v24, %v1317_v56 }
 0x1ac   :  { %v1380_v36 = vmax.f32 %v1348_v47, 0.0  ;;  %v1381_v31 = vmax.f32 %v1349_v25, 0.0  ;;  %v1382_v34 = vmax.f32 %v1350_v60, 0.0  ;;  %v1383_v46 = vmax.f32 %v1351_v4, 0.0 }
 0x1ad   :  { %v1384_v35 = vmax.f32 %v1352_v26, 0.0  ;;  %v1385_v39 = vmax.f32 %v1353_v16, 0.0  ;;  %v1386_v41 = vmax.f32 %v1354_v27, 0.0  ;;  %v1387_v33 = vmax.f32 %v1355_v28, 0.0 }
 0x1ae   :  { %v1412_v43 = vpack.c.bf16 %v1381_v31, %v1380_v36  ;;  %v1413_v44 = vpack.c.bf16 %v1383_v46, %v1382_v34  ;;  %v1356_v45 = vadd.f32 %v6668_v24, %v1318_v57  ;;  %v1357_v49 = vadd.f32 %v6668_v24, %v1319_v1 }
 0x1af   :  { %v1414_v52 = vpack.c.bf16 %v1385_v39, %v1384_v35  ;;  %v1415_v53 = vpack.c.bf16 %v1387_v33, %v1386_v41  ;;  %v1358_v54 = vadd.f32 %v6668_v24, %v1320_v8  ;;  %v1359_v61 = vadd.f32 %v6668_v24, %v1321_v18 }
 0x1b0   :  { %5760 = vmatprep.subr.bf16.mxu0 %v1412_v43  ;;  %5766 = vmatprep.subr.bf16.mxu1 %v1413_v44  ;;  %v1388_v0 = vmax.f32 %v1356_v45, 0.0  ;;  %v1389_v2 = vmax.f32 %v1357_v49, 0.0  ;;  %v1360_v3 = vadd.f32 %v6668_v24, %v1322_v22  ;;  %v1361_v9 = vadd.f32 %v6668_v24, %v1323_v37 }
 0x1b1   :  { %5761 = vmatpush3.bf16.msra.mxu0 %v1412_v43  ;;  %5767 = vmatpush3.bf16.msra.mxu1 %v1413_v44  ;;  %v1390_v10 = vmax.f32 %v1358_v54, 0.0  ;;  %v1391_v12 = vmax.f32 %v1359_v61, 0.0  ;;  %v1324_v13 = vmul.f32 %v6652_v5, %v6536_v59  ;;  %v1325_v14 = vmul.f32 %v6652_v5, %v6543_v7 }
 0x1b2   :  { %5772 = vmatprep.subr.bf16.mxu0 %v1414_v52  ;;  %5778 = vmatprep.subr.bf16.mxu1 %v1415_v53  ;;  %v1416_v20 = vpack.c.bf16 %v1389_v2, %v1388_v0  ;;  %v1392_v55 = vmax.f32 %v1360_v3, 0.0  ;;  %v1393_v21 = vmax.f32 %v1361_v9, 0.0  ;;  %v1326_v56 = vmul.f32 %v6652_v5, %v6549_v19 }
 0x1b3   :  { %v1417_v57 = vpack.c.bf16 %v1391_v12, %v1390_v10  ;;  %v1362_v1 = vadd.f32 %v6668_v24, %v1324_v13  ;;  %v1363_v8 = vadd.f32 %v6668_v24, %v1325_v14  ;;  %v1327_v18 = vmul.f32 %v6652_v5, %v6556_v29  ;;  %v3063_v10 = vld [vmem:[#allocation2 + $0x100] sm:$0xff]  ;;  %v3064_v14 = vld [vmem:[#allocation2 + $0x108] sm:$0xff] }
 0x1b4   :  { %5763 = vmatmul.mubr.msk.bf16.vlgmr.msra.gmra.mxu0 %vm1438_vm3, %v6699_v62  ;;  %5769 = vmatmul.mubr.msk.bf16.vlgmr.msra.gmra.mxu1 %vm1438_vm3, %v6699_v62  ;;  %v6717_v59 = vpack.c.bf16 %v1393_v21, %v1392_v55  ;;  %v1364_v7 = vadd.f32 %v6668_v24, %v1326_v56  ;;  %v1328_v19 = vmul.f32 %v6652_v5, %v6561_v38 }
 0x1b5   :  { %5773 = vmatpush3.bf16.msra.mxu0 %v1414_v52  ;;  %5779 = vmatpush3.bf16.msra.mxu1 %v1415_v53  ;;  %v1394_v22 = vmax.f32 %v1362_v1, 0.0  ;;  %v1395_v37 = vmax.f32 %v1363_v8, 0.0  ;;  %v1365_v47 = vadd.f32 %v6668_v24, %v1327_v18  ;;  %v1329_v29 = vmul.f32 %v6652_v5, %v6568_v48  ;;  %v3067_v1 = vld [vmem:[#allocation2 + $0x120] sm:$0xff] }
 0x1b6   :  { %5784 = vmatprep.subr.bf16.mxu0 %v1416_v20  ;;  %5790 = vmatprep.subr.bf16.mxu1 %v1417_v57  ;;  %v1396_v25 = vmax.f32 %v1364_v7, 0.0  ;;  %v1366_v60 = vadd.f32 %v6668_v24, %v1328_v19  ;;  %v1330_v4 = vmul.f32 %v6652_v5, %v6573_v58  ;;  %v1331_v38 = vmul.f32 %v6652_v5, %v6580_v6  ;;  %v3068_v7 = vld [vmem:[#allocation2 + $0x128] sm:$0xff] }
 0x1b7   :  { %5774 = vmatprep.mubr.msk.bf16.mxu0 %vm1438_vm3, %v6504_v15  ;;  %5780 = vmatprep.mubr.msk.bf16.mxu1 %vm1438_vm3, %v6504_v15  ;;  %v6734_v26 = vpack.c.bf16 %v1395_v37, %v1394_v22  ;;  %v1397_v48 = vmax.f32 %v1365_v47, 0.0  ;;  %v1367_v16 = vadd.f32 %v6668_v24, %v1329_v29  ;;  %v1332_v27 = vmul.f32 %v6652_v5, %v6585_v17 }
 0x1b8   :  { %v1398_v28 = vmax.f32 %v1366_v60, 0.0  ;;  %v1368_v58 = vadd.f32 %v6668_v24, %v1330_v4  ;;  %v1369_v36 = vadd.f32 %v6668_v24, %v1331_v38  ;;  %v1333_v6 = vmul.f32 %v6652_v5, %v6592_v30  ;;  %v3072_v60 = vld [vmem:[#allocation2 + $0x148] sm:$0xff] }
 0x1b9   :  { %v6743_v31 = vpack.c.bf16 %v1397_v48, %v1396_v25  ;;  %v1399_v34 = vmax.f32 %v1367_v16, 0.0  ;;  %v1370_v46 = vadd.f32 %v6668_v24, %v1332_v27  ;;  %v1334_v35 = vmul.f32 %v6652_v5, %v6597_v40  ;;  %v3071_v25 = vld [vmem:[#allocation2 + $0x140] sm:$0xff]  ;;  %v3065_v27 = vld [vmem:[#allocation2 + $0x110] sm:$0xff] }
 0x1ba   :  { %v1400_v39 = vmax.f32 %v1368_v58, 0.0  ;;  %v1401_v41 = vmax.f32 %v1369_v36, 0.0  ;;  %v1371_v17 = vadd.f32 %v6668_v24, %v1333_v6  ;;  %v1335_v33 = vmul.f32 %v6652_v5, %v6604_v51  ;;  %v3066_v6 = vld [vmem:[#allocation2 + $0x118] sm:$0xff] }
 0x1bb   :  { %v6751_v43 = vpack.c.bf16 %v1399_v34, %v1398_v28  ;;  %v1402_v44 = vmax.f32 %v1370_v46, 0.0  ;;  %v1372_v30 = vadd.f32 %v6668_v24, %v1334_v35  ;;  %v1336_v45 = vmul.f32 %v6652_v5, %v6609_v63 }
 0x1bc   :  { %5775 = vmatmul.mubr.msk.bf16.vlgmr.msra.gmra.mxu0 %vm1438_vm3, %v6699_v62  ;;  %5781 = vmatmul.mubr.msk.bf16.vlgmr.msra.gmra.mxu1 %vm1438_vm3, %v6699_v62  ;;  %v6760_v40 = vpack.c.bf16 %v1401_v41, %v1400_v39  ;;  %v1403_v49 = vmax.f32 %v1371_v17, 0.0  ;;  %v1373_v52 = vadd.f32 %v6668_v24, %v1335_v33  ;;  %v1337_v51 = vmul.f32 %v6652_v5, %v6615_v11 }
 0x1bd   :  { %5785 = vmatpush3.bf16.msra.mxu0 %v1416_v20  ;;  %5791 = vmatpush3.bf16.msra.mxu1 %v1417_v57  ;;  %v1374_v53 = vadd.f32 %v6668_v24, %v1336_v45  ;;  %v1338_v63 = vmul.f32 %v6652_v5, %v6620_v23  ;;  %v1339_v54 = vmul.f32 %v6652_v5, %v6626_v32  ;;  %v1404_v61 = vmax.f32 %v1372_v30, 0.0 }
 0x1be   :  { %5796 = vmatprep.subr.bf16.mxu0 %v6717_v59  ;;  %5802 = vmatprep.subr.bf16.mxu1 %v6734_v26  ;;  %v1405_v0 = vmax.f32 %v1373_v52, 0.0  ;;  %v1375_v2 = vadd.f32 %v6668_v24, %v1337_v51  ;;  %v1340_v11 = vmul.f32 %v6652_v5, %v6631_v42  ;;  %v1341_v9 = vmul.f32 %v6652_v5, %v6636_v50 }
 0x1bf   :  { %5786 = vmatprep.mubr.msk.bf16.mxu0 %vm1438_vm3, %v6504_v15  ;;  %5792 = vmatprep.mubr.msk.bf16.mxu1 %vm1438_vm3, %v6504_v15  ;;  %v1406_v23 = vmax.f32 %v1374_v53, 0.0  ;;  %v1376_v32 = vadd.f32 %v6668_v24, %v1338_v63  ;;  %v1377_v3 = vadd.f32 %v6668_v24, %v1339_v54  ;;  %v6783_v12 = vpack.c.bf16 %v1403_v49, %v1402_v44  ;;  %v3076_v44 = vld [vmem:[#allocation2 + $0x168] sm:$0xff]  ;;  %v3069_v53 = vld [vmem:[#allocation2 + $0x130] sm:$0xff] }
 0x1c0   :  { %v1407_v13 = vmax.f32 %v1375_v2, 0.0  ;;  %v6786_v42 = vadd.f32 %v6668_v24, %v1340_v11  ;;  %v3095_v20 = vmul.f32 %v3063_v10, %v6652_v5  ;;  %v6790_v56 = vadd.f32 %v6668_v24, %v1341_v9  ;;  %v3073_v9 = vld [vmem:[#allocation2 + $0x150] sm:$0xff]  ;;  %v3074_v10 = vld [vmem:[#allocation2 + $0x158] sm:$0xff] }
 0x1c1   :  { %v1408_v55 = vmax.f32 %v1376_v32, 0.0  ;;  %v1409_v21 = vmax.f32 %v1377_v3, 0.0  ;;  %v3096_v57 = vmul.f32 %v3064_v14, %v6652_v5  ;;  %v6793_v8 = vpack.c.bf16 %v1405_v0, %v1404_v61  ;;  %v3070_v0 = vld [vmem:[#allocation2 + $0x138] sm:$0xff] }
 0x1c2   :  { %v6795_v50 = vpack.c.bf16 %v1407_v13, %v1406_v23  ;;  %v3127_v18 = vadd.f32 %v3095_v20, %v6668_v24  ;;  %v3099_v19 = vmul.f32 %v3067_v1, %v6652_v5  ;;  %v1410_v37 = vmax.f32 %v6786_v42, 0.0 }
 0x1c3   :  { %v6799_v22 = vpack.c.bf16 %v1409_v21, %v1408_v55  ;;  %v3128_v47 = vadd.f32 %v3096_v57, %v6668_v24  ;;  %v3100_v29 = vmul.f32 %v3068_v7, %v6652_v5  ;;  %v3103_v48 = vmul.f32 %v3071_v25, %v6652_v5  ;;  %v3079_v21 = vld [vmem:[#allocation2 + $0x180] sm:$0xff]  ;;  %v3080_v7 = vld [vmem:[#allocation2 + $0x188] sm:$0xff] }
 0x1c4   :  { %5787 = vmatmul.mubr.msk.bf16.vlgmr.msra.gmra.mxu0 %vm1438_vm3, %v6699_v62  ;;  %5793 = vmatmul.mubr.msk.bf16.vlgmr.msra.gmra.mxu1 %vm1438_vm3, %v6699_v62  ;;  %v3159_v4 = vmax.f32 %v3127_v18, 0.0  ;;  %v3131_v38 = vadd.f32 %v3099_v19, %v6668_v24  ;;  %v3104_v16 = vmul.f32 %v3072_v60, %v6652_v5  ;;  %v1411_v28 = vmax.f32 %v6790_v56, 0.0 }
 0x1c5   :  { %5797 = vmatpush3.bf16.msra.mxu0 %v6717_v59  ;;  %5803 = vmatpush3.bf16.msra.mxu1 %v6734_v26  ;;  %v3160_v58 = vmax.f32 %v3128_v47, 0.0  ;;  %v3132_v36 = vadd.f32 %v3100_v29, %v6668_v24  ;;  %v3097_v34 = vmul.f32 %v3065_v27, %v6652_v5  ;;  %v3135_v35 = vadd.f32 %v3103_v48, %v6668_v24  ;;  %v3075_v26 = vld [vmem:[#allocation2 + $0x160] sm:$0xff] }
 0x1c6   :  { %5808 = vmatprep.subr.bf16.mxu0 %v6743_v31  ;;  %5814 = vmatprep.subr.bf16.mxu1 %v6751_v43  ;;  %v3163_v46 = vmax.f32 %v3131_v38, 0.0  ;;  %v3136_v39 = vadd.f32 %v3104_v16, %v6668_v24  ;;  %v3098_v59 = vmul.f32 %v3066_v6, %v6652_v5  ;;  %v3107_v30 = vmul.f32 %v3075_v26, %v6652_v5 }
 0x1c7   :  { %5798 = vmatprep.mubr.msk.bf16.mxu0 %vm1438_vm3, %v6504_v15  ;;  %5804 = vmatprep.mubr.msk.bf16.mxu1 %vm1438_vm3, %v6504_v15  ;;  %v6825_v41 = vpack.c.bf16 %v3160_v58, %v3159_v4  ;;  %v3164_v17 = vmax.f32 %v3132_v36, 0.0  ;;  %v3129_v33 = vadd.f32 %v3097_v34, %v6668_v24  ;;  %v3167_v45 = vmax.f32 %v3135_v35, 0.0  ;;  %v3077_v4 = vld [vmem:[#allocation2 + $0x170] sm:$0xff]  ;;  %v3083_v34 = vld [vmem:[#allocation2 + $0x1a0] sm:$0xff] }
 0x1c8   :  { %v3168_v49 = vmax.f32 %v3136_v39, 0.0  ;;  %v3130_v52 = vadd.f32 %v3098_v59, %v6668_v24  ;;  %v3108_v51 = vmul.f32 %v3076_v44, %v6652_v5  ;;  %v3139_v61 = vadd.f32 %v3107_v30, %v6668_v24  ;;  %v3084_v59 = vld [vmem:[#allocation2 + $0x1a8] sm:$0xff] }
 0x1c9   :  { %8951 = vst [vmem:[#allocation3_spill] sm:$0xff] %v6825_v41  ;;  %v6831_v63 = vpack.c.bf16 %v3164_v17, %v3163_v46  ;;  %v3161_v54 = vmax.f32 %v3129_v33, 0.0  ;;  %v3101_v2 = vmul.f32 %v3069_v53, %v6652_v5  ;;  %v3102_v3 = vmul.f32 %v3070_v0, %v6652_v5 }
 0x1ca   :  { %v6835_v11 = vpack.c.bf16 %v3168_v49, %v3167_v45  ;;  %v3162_v23 = vmax.f32 %v3130_v52, 0.0  ;;  %v3140_v32 = vadd.f32 %v3108_v51, %v6668_v24  ;;  %v3171_v13 = vmax.f32 %v3139_v61, 0.0  ;;  %v3081_v45 = vld [vmem:[#allocation2 + $0x190] sm:$0xff]  ;;  %v3082_v49 = vld [vmem:[#allocation2 + $0x198] sm:$0xff]  ;;  %v3087_v61 = vld [vmem:[#allocation2 + $0x1c0] sm:$0xff] }
 0x1cb   :  { %8952 = vst [vmem:[#allocation4_spill] sm:$0xff] %v6831_v63  ;;  %v3133_v14 = vadd.f32 %v3101_v2, %v6668_v24  ;;  %v3105_v20 = vmul.f32 %v3073_v9, %v6652_v5  ;;  %v3106_v55 = vmul.f32 %v3074_v10, %v6652_v5  ;;  %v3134_v18 = vadd.f32 %v3102_v3, %v6668_v24 }
 0x1cc   :  { %8953 = vst [vmem:[#allocation5_spill] sm:$0xff] %v6835_v11  ;;  %5799 = vmatmul.mubr.msk.bf16.vlgmr.msra.gmra.mxu0 %vm1438_vm3, %v6699_v62  ;;  %5805 = vmatmul.mubr.msk.bf16.vlgmr.msra.gmra.mxu1 %vm1438_vm3, %v6699_v62  ;;  %v6846_v57 = vpack.c.bf16 %v3162_v23, %v3161_v54  ;;  %v3172_v1 = vmax.f32 %v3140_v32, 0.0  ;;  %v3111_v19 = vmul.f32 %v3079_v21, %v6652_v5  ;;  %v3088_v32 = vld [vmem:[#allocation2 + $0x1c8] sm:$0xff] }
 0x1cd   :  { %5809 = vmatpush3.bf16.msra.mxu0 %v6743_v31  ;;  %5815 = vmatpush3.bf16.msra.mxu1 %v6751_v43  ;;  %v3165_v47 = vmax.f32 %v3133_v14, 0.0  ;;  %v3137_v29 = vadd.f32 %v3105_v20, %v6668_v24  ;;  %v3138_v25 = vadd.f32 %v3106_v55, %v6668_v24  ;;  %v3112_v60 = vmul.f32 %v3080_v7, %v6652_v5  ;;  %v3078_v31 = vld [vmem:[#allocation2 + $0x178] sm:$0xff]  ;;  %v3085_v20 = vld [vmem:[#allocation2 + $0x1b0] sm:$0xff] }
 0x1ce   :  { %8954 = vst [vmem:[#allocation6_spill] sm:$0xff] %v6846_v57  ;;  %5820 = vmatprep.subr.bf16.mxu0 %v6760_v40  ;;  %5826 = vmatprep.subr.bf16.mxu1 %v6783_v12  ;;  %v6857_v38 = vpack.c.bf16 %v3172_v1, %v3171_v13  ;;  %v3166_v48 = vmax.f32 %v3134_v18, 0.0  ;;  %v3143_v16 = vadd.f32 %v3111_v19, %v6668_v24  ;;  %v3086_v18 = vld [vmem:[#allocation2 + $0x1b8] sm:$0xff] }
 0x1cf   :  { %v3109_v43 = vmul.f32 %v3077_v4, %v6652_v5  ;;  %5810 = vmatprep.mubr.msk.bf16.mxu0 %vm1438_vm3, %v6504_v15  ;;  %5816 = vmatprep.mubr.msk.bf16.mxu1 %vm1438_vm3, %v6504_v15  ;;  %v3169_v27 = vmax.f32 %v3137_v29, 0.0  ;;  %v3170_v58 = vmax.f32 %v3138_v25, 0.0  ;;  %v3144_v36 = vadd.f32 %v3112_v60, %v6668_v24  ;;  %v3091_v25 = vld [vmem:[#allocation2 + $0x1e0] sm:$0xff] }
 0x1d0   :  { %8955 = vst [vmem:[#allocation7_spill] sm:$0xff] %v6857_v38  ;;  %v3110_v6 = vmul.f32 %v3078_v31, %v6652_v5  ;;  %v6867_v46 = vpack.c.bf16 %v3166_v48, %v3165_v47  ;;  %v3175_v35 = vmax.f32 %v3143_v16, 0.0  ;;  %v3115_v26 = vmul.f32 %v3083_v34, %v6652_v5  ;;  %v3092_v48 = vld [vmem:[#allocation2 + $0x1e8] sm:$0xff] }
 0x1d1   :  { %v3141_v39 = vadd.f32 %v3109_v43, %v6668_v24  ;;  %v6871_v17 = vpack.c.bf16 %v3170_v58, %v3169_v27  ;;  %v3176_v33 = vmax.f32 %v3144_v36, 0.0  ;;  %v3116_v30 = vmul.f32 %v3084_v59, %v6652_v5  ;;  %v3089_v36 = vld [vmem:[#allocation2 + $0x1d0] sm:$0xff] }
 0x1d2   :  { %8956 = vst [vmem:[#allocation8_spill] sm:$0xff] %v6867_v46  ;;  %v3142_v44 = vadd.f32 %v3110_v6, %v6668_v24  ;;  %v3147_v51 = vadd.f32 %v3115_v26, %v6668_v24  ;;  %v3113_v53 = vmul.f32 %v3081_v45, %v6652_v5  ;;  %v3114_v54 = vmul.f32 %v3082_v49, %v6652_v5  ;;  %v3090_v6 = vld [vmem:[#allocation2 + $0x1d8] sm:$0xff]  ;;  %v3093_v59 = vld [vmem:[#allocation2 + $0x1f0] sm:$0xff] }
 0x1d3   :  { %8957 = vst [vmem:[#allocation9_spill] sm:$0xff] %v6871_v17  ;;  %v3173_v52 = vmax.f32 %v3141_v39, 0.0  ;;  %v6878_v0 = vpack.c.bf16 %v3176_v33, %v3175_v35  ;;  %v3148_v23 = vadd.f32 %v3116_v30, %v6668_v24  ;;  %v3119_v3 = vmul.f32 %v3087_v61, %v6652_v5  ;;  %v3094_v30 = vld [vmem:[#allocation2 + $0x1f8] sm:$0xff] }
 0x1d4   :  { %v3174_v2 = vmax.f32 %v3142_v44, 0.0  ;;  %5811 = vmatmul.mubr.msk.bf16.vlgmr.msra.gmra.mxu0 %vm1438_vm3, %v6699_v62  ;;  %5817 = vmatmul.mubr.msk.bf16.vlgmr.msra.gmra.mxu1 %vm1438_vm3, %v6699_v62  ;;  %v3179_v9 = vmax.f32 %v3147_v51, 0.0  ;;  %v3145_v10 = vadd.f32 %v3113_v53, %v6668_v24  ;;  %v3146_v13 = vadd.f32 %v3114_v54, %v6668_v24 }
 0x1d5   :  { %8958 = vst [vmem:[#allocation10_spill] sm:$0xff] %v6878_v0  ;;  %v3120_v14 = vmul.f32 %v3088_v32, %v6652_v5  ;;  %5821 = vmatpush3.bf16.msra.mxu0 %v6760_v40  ;;  %5827 = vmatpush3.bf16.msra.mxu1 %v6783_v12  ;;  %v3180_v21 = vmax.f32 %v3148_v23, 0.0  ;;  %v3151_v1 = vadd.f32 %v3119_v3, %v6668_v24 }
 0x1d6   :  { %v6891_v55 = vpack.c.bf16 %v3174_v2, %v3173_v52  ;;  %v3117_v7 = vmul.f32 %v3085_v20, %v6652_v5  ;;  %5832 = vmatprep.subr.bf16.mxu0 %v6793_v8  ;;  %5838 = vmatprep.subr.bf16.mxu1 %v6795_v50  ;;  %v3177_v19 = vmax.f32 %v3145_v10, 0.0  ;;  %v3178_v47 = vmax.f32 %v3146_v13, 0.0 }
 0x1d7   :  { %v3152_v29 = vadd.f32 %v3120_v14, %v6668_v24  ;;  %v3118_v40 = vmul.f32 %v3086_v18, %v6652_v5  ;;  %5822 = vmatprep.mubr.msk.bf16.mxu0 %vm1438_vm3, %v6504_v15  ;;  %5828 = vmatprep.mubr.msk.bf16.mxu1 %vm1438_vm3, %v6504_v15  ;;  %v6903_v12 = vpack.c.bf16 %v3180_v21, %v3179_v9  ;;  %v3183_v60 = vmax.f32 %v3151_v1, 0.0 }
 0x1d8   :  { %8959 = vst [vmem:[#allocation11_spill] sm:$0xff] %v6891_v55  ;;  %v3149_v4 = vadd.f32 %v3117_v7, %v6668_v24  ;;  %v3123_v16 = vmul.f32 %v3091_v25, %v6652_v5  ;;  %v6907_v31 = vpack.c.bf16 %v3178_v47, %v3177_v19  ;;  %v3124_v58 = vmul.f32 %v3092_v48, %v6652_v5 }
 0x1d9   :  { %8960 = vst [vmem:[#allocation12_spill] sm:$0xff] %v6903_v12  ;;  %v3184_v43 = vmax.f32 %v3152_v29, 0.0  ;;  %v3150_v27 = vadd.f32 %v3118_v40, %v6668_v24  ;;  %v3121_v35 = vmul.f32 %v3089_v36, %v6652_v5  ;;  %v3122_v39 = vmul.f32 %v3090_v6, %v6652_v5 }
 0x1da   :  { %8961 = vst [vmem:[#allocation13_spill] sm:$0xff] %v6907_v31  ;;  %v3181_v34 = vmax.f32 %v3149_v4, 0.0  ;;  %v3155_v15 = vadd.f32 %v3123_v16, %v6668_v24  ;;  %v3156_v44 = vadd.f32 %v3124_v58, %v6668_v24  ;;  %v3125_v45 = vmul.f32 %v3093_v59, %v6652_v5 }
 0x1db   :  { %v6914_v26 = vpack.c.bf16 %v3184_v43, %v3183_v60  ;;  %v3182_v33 = vmax.f32 %v3150_v27, 0.0  ;;  %v3153_v52 = vadd.f32 %v3121_v35, %v6668_v24  ;;  %v3154_v51 = vadd.f32 %v3122_v39, %v6668_v24 }
 0x1dc   :  { %v3187_v49 = vmax.f32 %v3155_v15, 0.0  ;;  %v3126_v53 = vmul.f32 %v3094_v30, %v6652_v5  ;;  %5823 = vmatmul.mubr.msk.bf16.vlgmr.msra.gmra.mxu0 %vm1438_vm3, %v6699_v62  ;;  %5829 = vmatmul.mubr.msk.bf16.vlgmr.msra.gmra.mxu1 %vm1438_vm3, %v6699_v62  ;;  %v1427_v54 = vpack.c.bf16 %v1411_v28, %v1410_v37  ;;  %v3188_v2 = vmax.f32 %v3156_v44, 0.0  ;;  %v6073_v37 = vld [vmem:[%s8895_s4] sm:$0xff]  }
 0x1dd   :  { %8962 = vst [vmem:[#allocation14_spill] sm:$0xff] %v6914_v26  ;;  %v6929_v61 = vpack.c.bf16 %v3182_v33, %v3181_v34  ;;  %v3157_v23 = vadd.f32 %v3125_v45, %v6668_v24  ;;  %5833 = vmatpush3.bf16.msra.mxu0 %v6793_v8  ;;  %5839 = vmatpush3.bf16.msra.mxu1 %v6795_v50  ;;  %v3185_v5 = vmax.f32 %v3153_v52, 0.0  ;;  %v3186_v32 = vmax.f32 %v3154_v51, 0.0 }
 0x1de   :  { %v3158_v3 = vadd.f32 %v3126_v53, %v6668_v24  ;;  %5844 = vmatprep.subr.bf16.mxu0 %v6799_v22  ;;  %5850 = vmatprep.subr.bf16.mxu1 %v1427_v54  ;;  %v6936_v42 = vpack.c.bf16 %v3188_v2, %v3187_v49  ;;  %v6961_v24 = vld [vmem:[%s8898_s5] sm:$0xff]  }
 0x1df   :  { %8963 = vst [vmem:[#allocation15_spill] sm:$0xff] %v6929_v61  ;;  %v3189_v56 = vmax.f32 %v3157_v23, 0.0  ;;  %5834 = vmatprep.mubr.msk.bf16.mxu0 %vm1438_vm3, %v6073_v37  ;;  %5840 = vmatprep.mubr.msk.bf16.mxu1 %vm1438_vm3, %v6073_v37  ;;  %v6943_v8 = vpack.c.bf16 %v3186_v32, %v3185_v5  ;;  %8967 = vst [vmem:[#allocation19_spill] sm:$0xff] %v6961_v24 }
 0x1e0   :  { %8964 = vst [vmem:[#allocation16_spill] sm:$0xff] %v6936_v42  ;;  %v3190_v50 = vmax.f32 %v3158_v3, 0.0 }
 0x1e1   :  { %8965 = vst [vmem:[#allocation17_spill] sm:$0xff] %v6943_v8 }
 0x1e2   :  { %v6945_v28 = vpack.c.bf16 %v3190_v50, %v3189_v56 }
 0x1e4   :  { %8966 = vst [vmem:[#allocation18_spill] sm:$0xff] %v6945_v28  ;;  %5835 = vmatmul.mubr.msk.bf16.vlgmr.msra.gmra.mxu0 %vm1438_vm3, %v6699_v62  ;;  %5841 = vmatmul.mubr.msk.bf16.vlgmr.msra.gmra.mxu1 %vm1438_vm3, %v6699_v62 }
 0x1e5   :  { %5845 = vmatpush3.bf16.msra.mxu0 %v6799_v22  ;;  %5851 = vmatpush3.bf16.msra.mxu1 %v1427_v54 }
 0x1e6   :  { %5846 = vmatprep.mubr.msk.bf16.mxu0 %vm1438_vm3, %v6073_v37  ;;  %5852 = vmatprep.mubr.msk.bf16.mxu1 %vm1438_vm3, %v6073_v37 }
 0x1ec   :  { %5847 = vmatmul.mubr.msk.bf16.vlgmr.msra.gmra.mxu0 %vm1438_vm3, %v6699_v62  ;;  %5853 = vmatmul.mubr.msk.bf16.vlgmr.msra.gmra.mxu1 %vm1438_vm3, %v6699_v62 }
 0x1ed   :  { %5500 = vmatprep.mubr.msk.bf16.mxu0 %vm392_vm2, %v6961_v24  ;;  %5518 = vmatprep.mubr.msk.bf16.mxu1 %vm392_vm2, %v6961_v24 }
 0x274   :  { %v6967_v22 = vpop.f32.mrf.mxu0  ;;  %v6969_v9 = vpop.f32.mrf.mxu1 }
 0x275   :  { %8968 = vst [vmem:[#allocation20_spill] sm:$0xff] %v6967_v22  ;;  %v2255_v49 = vmul.f32 0.5483871, %v6969_v9 }
 0x276   :  { %v6971_v10 = vpop.f32.mrf.mxu0  ;;  %v6973_v13 = vpop.f32.mrf.mxu1 }
 0x277   :  { %8969 = vst [vmem:[#allocation21_spill] sm:$0xff] %v6971_v10  ;;  %v2265_v40 = vmul.f32 0.06451613, %v6973_v13  ;;  %v7084_v8 = vmul.f32 0.9677419, %v6973_v13 }
 0x278   :  { %v6975_v62 = vpop.f32.mrf.mxu0  ;;  %v6977_v14 = vpop.f32.mrf.mxu1 }
 0x279   :  { %8970 = vst [vmem:[#allocation22_spill] sm:$0xff] %v6975_v62  ;;  %v2256_v5 = vmul.f32 0.5483871, %v6977_v14  ;;  %v7092_v31 = vmul.f32 0.516129, %v6975_v62 }
 0x27a   :  { %v6981_v21 = vpop.f32.mrf.mxu0  ;;  %v6983_v1 = vpop.f32.mrf.mxu1  ;;  %v2244_v12 = vmul.f32 0.032258064, %v6975_v62  ;;  %v2248_v55 = vmul.f32 0.9677419, %v6977_v14 }
 0x27b   :  { %8971 = vst [vmem:[#allocation23_spill] sm:$0xff] %v6981_v21  ;;  %v2266_v27 = vmul.f32 0.06451613, %v6983_v1 }
 0x27c   :  { %v6987_v7 = vpop.f32.mrf.mxu0  ;;  %v6989_v19 = vpop.f32.mrf.mxu1  ;;  %v2252_v24 = vadd.f32 %v2248_v55, %v2244_v12 }
 0x27d   :  { %v2303_v35 = vmul.f32 0.61290324, %v6989_v19  ;;  %v2259_v51 = vmul.f32 0.4516129, %v6987_v7  ;;  %v2295_v42 = vmul.f32 0.9032258, %v6989_v19 }
 0x27e   :  { %v6991_v47 = vpop.f32.mrf.mxu0  ;;  %v6993_v29 = vpop.f32.mrf.mxu1 }
 0x27f   :  { %v2269_v25 = vmul.f32 0.9354839, %v6991_v47 }
 0x280   :  { %v6997_v60 = vpop.f32.mrf.mxu0  ;;  %v6999_v4 = vpop.f32.mrf.mxu1 }
 0x281   :  { %v7001_v48 = vadd.f32 %v2269_v25, %v2265_v40  ;;  %v2304_v33 = vmul.f32 0.61290324, %v6999_v4  ;;  %v2260_v53 = vmul.f32 0.4516129, %v6997_v60  ;;  %v2301_v40 = vmul.f32 0.61290324, %v6993_v29 }
 0x282   :  { %v7003_v16 = vpop.f32.mrf.mxu0  ;;  %v7005_v43 = vpop.f32.mrf.mxu1 }
 0x283   :  { %v2270_v58 = vmul.f32 0.9354839, %v7003_v16  ;;  %v2302_v3 = vmul.f32 0.61290324, %v7005_v43 }
 0x284   :  { %v7009_v36 = vpop.f32.mrf.mxu0  ;;  %v7015_v15 = vpop.f32.mrf.mxu1 }
 0x285   :  { %v7011_v6 = vadd.f32 %v2270_v58, %v2266_v27  ;;  %v2307_v59 = vmul.f32 0.38709676, %v7009_v36  ;;  %v2263_v58 = vadd.f32 %v2259_v51, %v2255_v49  ;;  %v2243_v49 = vmul.f32 0.032258064, %v6967_v22 }
 0x286   :  { %v7013_v34 = vpop.f32.mrf.mxu0  ;;  %v7025_v45 = vpop.f32.mrf.mxu1  ;;  %v7057_v51 = vmul.f32 0.48387095, %v6969_v9  ;;  %v2351_v57 = vmul.f32 0.67741936, %v7015_v15 }
 0x287   :  { %v2311_v23 = vadd.f32 %v2307_v59, %v2303_v35  ;;  %v2305_v32 = vmul.f32 0.38709676, %v7013_v34 }
 0x288   :  { %v7018_v39 = vpop.f32.mrf.mxu0  ;;  %v7038_v37 = vpop.f32.mrf.mxu1 }
 0x289   :  { %v2308_v44 = vmul.f32 0.38709676, %v7018_v39  ;;  %v2309_v35 = vadd.f32 %v2305_v32, %v2301_v40  ;;  %v7063_v32 = vmul.f32 0.06451613, %v6969_v9  ;;  %v7069_v40 = vmul.f32 0.516129, %v6971_v10 }
 0x28a   :  { %v7023_v30 = vpop.f32.mrf.mxu0 }
 0x28b   :  { %v2312_v52 = vadd.f32 %v2308_v44, %v2304_v33  ;;  %v2306_v54 = vmul.f32 0.38709676, %v7023_v30  ;;  %v2264_v33 = vadd.f32 %v2260_v53, %v2256_v5  ;;  %v7044_v44 = vpop.f32.mrf.mxu1  ;;  %v2247_v53 = vmul.f32 0.9677419, %v6969_v9  ;;  %8973 = vst [vmem:[#allocation25_spill] sm:$0xff] %v7069_v40 }
 0x28c   :  { %v7031_v2 = vpop.f32.mrf.mxu0  ;;  %v7079_v9 = vmul.f32 0.48387095, %v6973_v13 }
 0x28d   :  { %v2606_v50 = vpack.c.bf16 %v2312_v52, %v2311_v23  ;;  %v2310_v25 = vadd.f32 %v2306_v54, %v2302_v3  ;;  %v2598_v59 = vpack.c.bf16 %v2264_v33, %v2263_v58  ;;  %v7051_v52 = vmul.f32 0.516129, %v6967_v22  ;;  %v7060_v5 = vpop.f32.mrf.mxu1 }
 0x28e   :  { %v7036_v56 = vpop.f32.mrf.mxu0  ;;  %v2258_v54 = vmul.f32 0.4516129, %v7003_v16  ;;  %v2257_v3 = vmul.f32 0.4516129, %v6991_v47  ;;  %v2296_v58 = vmul.f32 0.9032258, %v6999_v4  ;;  %v7089_v26 = vadd.f32 %v2247_v53, %v2243_v49 }
 0x28f   :  { %5954 = vmatprep.subr.msk.bf16.mxu0 %vm392_vm2, %v2606_v50  ;;  %v2605_v28 = vpack.c.bf16 %v2310_v25, %v2309_v35  ;;  %v2685_v23 = vsel %vm392_vm2, %v2598_v59, 0  ;;  %v2254_v50 = vmul.f32 0.5483871, %v6983_v1  ;;  %v2292_v25 = vmul.f32 0.09677419, %v6997_v60  ;;  %8975 = vst [vmem:[#allocation27_spill] sm:$0xff] %v7079_v9  ;;  %v7087_v61 = vpop.f32.mrf.mxu1 }
 0x290   :  { %v7041_v27 = vpop.f32.mrf.mxu0  ;;  %5485 = vmatpush3.bf16.xpose.msra.mxu0 %v2685_v23  ;;  %v7076_v35 = vmul.f32 0.032258064, %v6971_v10  ;;  %v2253_v59 = vmul.f32 0.5483871, %v6973_v13  ;;  %v7100_v13 = vmul.f32 0.48387095, %v6977_v14 }
 0x291   :  { %5955 = vmatprep.subr.msk.bf16.mxu0 %vm392_vm2, %v2605_v28  ;;  %v2262_v23 = vadd.f32 %v2258_v54, %v2254_v50  ;;  %v2291_v28 = vmul.f32 0.09677419, %v6987_v7  ;;  %v7097_v54 = vmul.f32 0.516129, %v6981_v21  ;;  %v7103_v50 = vmul.f32 0.06451613, %v6977_v14  ;;  %v7113_v41 = vpop.f32.mrf.mxu1 }
 0x292   :  { %v7046_v18 = vpop.f32.mrf.mxu0  ;;  %v2261_v0 = vadd.f32 %v2257_v3, %v2253_v59  ;;  %v2300_v17 = vadd.f32 %v2296_v58, %v2292_v25  ;;  %v2242_v53 = vmul.f32 0.032258064, %v6981_v21  ;;  %v2399_v38 = vmul.f32 0.7419355, %v7060_v5 }
 0x293   :  { %8976 = vst [vmem:[#allocation28_spill] sm:$0xff] %v7103_v50  ;;  %v2289_v3 = vmul.f32 0.09677419, %v6991_v47  ;;  %v2299_v59 = vadd.f32 %v2295_v42, %v2291_v28  ;;  %v2356_v63 = vmul.f32 0.32258064, %v7041_v27  ;;  %v7128_v12 = vpop.f32.mrf.mxu1 }
 0x294   :  { %v7048_v20 = vpop.f32.mrf.mxu0  ;;  %v2597_v11 = vpack.c.bf16 %v2262_v23, %v2261_v0  ;;  %v2355_v14 = vmul.f32 0.32258064, %v7031_v2  ;;  %v2400_v25 = vmul.f32 0.7419355, %v7113_v41  ;;  %v2290_v10 = vmul.f32 0.09677419, %v7003_v16 }
 0x295   :  { %8972 = vst [vmem:[#allocation24_spill] sm:$0xff] %v7048_v20  ;;  %v2403_v46 = vmul.f32 0.2580645, %v7048_v20  ;;  %v2294_v0 = vmul.f32 0.9032258, %v7005_v43  ;;  %v2604_v42 = vpack.c.bf16 %v2300_v17, %v2299_v59 }
 0x296   :  { %v7073_v33 = vpop.f32.mrf.mxu0  ;;  %v2352_v23 = vmul.f32 0.67741936, %v7038_v37  ;;  %v2682_v20 = vsel %vm392_vm2, %v2597_v11, 0  ;;  %v2293_v50 = vmul.f32 0.9032258, %v6993_v29  ;;  %v2359_v59 = vadd.f32 %v2355_v14, %v2351_v57  ;;  %v7141_v14 = vpop.f32.mrf.mxu1 }
 0x297   :  { %8974 = vst [vmem:[#allocation26_spill] sm:$0xff] %v7073_v33  ;;  %v2407_v21 = vadd.f32 %v2403_v46, %v2399_v38  ;;  %v2401_v22 = vmul.f32 0.2580645, %v7073_v33  ;;  %v2397_v55 = vmul.f32 0.7419355, %v7087_v61  ;;  %v2596_v33 = vpack.c.bf16 %v2252_v24, %v7089_v26  ;;  %8978 = vst [vmem:[#allocation30_spill] sm:$0xff] %v7141_v14 }
 0x298   :  { %v7105_v49 = vpop.f32.mrf.mxu0  ;;  %5487 = vmatpush3.bf16.xpose.msra.mxu0 %v2682_v20  ;;  %v2360_v9 = vadd.f32 %v2356_v63, %v2352_v23  ;;  %v2398_v38 = vmul.f32 0.7419355, %v7128_v12  ;;  %v2246_v11 = vmul.f32 0.9677419, %v6983_v1  ;;  %v2350_v20 = vmul.f32 0.67741936, %v7044_v44 }
 0x299   :  { %8977 = vst [vmem:[#allocation29_spill] sm:$0xff] %v7105_v49  ;;  %v2404_v58 = vmul.f32 0.2580645, %v7105_v49  ;;  %v2354_v49 = vmul.f32 0.32258064, %v7046_v18  ;;  %5956 = vmatprep.subr.msk.bf16.mxu0 %vm392_vm2, %v2604_v42  ;;  %v2405_v40 = vadd.f32 %v2401_v22, %v2397_v55 }
 0x29a   :  { %v7121_v28 = vpop.f32.mrf.mxu0  ;;  %v2614_v23 = vpack.c.bf16 %v2360_v9, %v2359_v59  ;;  %v2349_v42 = vmul.f32 0.67741936, %v7025_v45  ;;  %v2388_v57 = vmul.f32 0.22580644, %v7041_v27  ;;  %v2284_v22 = vmul.f32 0.41935483, %v6999_v4 }
 0x29b   :  { %v2408_v62 = vadd.f32 %v2404_v58, %v2400_v25  ;;  %v2402_v46 = vmul.f32 0.2580645, %v7121_v28  ;;  %v2298_v25 = vadd.f32 %v2294_v0, %v2290_v10  ;;  %v2353_v58 = vmul.f32 0.32258064, %v7036_v56 }
 0x29c   :  { %v2392_v10 = vmul.f32 0.7741935, %v7113_v41  ;;  %v2733_v26 = vsel %vm392_vm2, %v2614_v23, 0  ;;  %v2358_v0 = vadd.f32 %v2354_v49, %v2350_v20  ;;  %v2387_v55 = vmul.f32 0.22580644, %v7031_v2  ;;  %v7157_v20 = vpop.f32.mrf.mxu1 }
 0x29d   :  { %v2622_v17 = vpack.c.bf16 %v2408_v62, %v2407_v21  ;;  %v2406_v63 = vadd.f32 %v2402_v46, %v2398_v38  ;;  %v2280_v62 = vmul.f32 0.58064514, %v6997_v60  ;;  %v2297_v21 = vadd.f32 %v2293_v50, %v2289_v3 }
 0x29e   :  { %v2391_v9 = vmul.f32 0.7741935, %v7060_v5  ;;  %v2679_v50 = vsel %vm392_vm2, %v2596_v33, 0  ;;  %v2357_v38 = vadd.f32 %v2353_v58, %v2349_v42  ;;  %v2279_v46 = vmul.f32 0.58064514, %v6987_v7 }
 0x29f   :  { %5962 = vmatprep.subr.msk.bf16.mxu1 %vm392_vm2, %v2622_v17  ;;  %v2621_v24 = vpack.c.bf16 %v2406_v63, %v2405_v40  ;;  %v2603_v3 = vpack.c.bf16 %v2298_v25, %v2297_v21  ;;  %v2250_v17 = vadd.f32 %v2246_v11, %v2242_v53  ;;  %v7152_v59 = vmul.f32 0.48387095, %v6983_v1  ;;  %v7162_v11 = vpop.f32.mrf.mxu0 }
 0x2a0   :  { %5503 = vmatpush3.bf16.xpose.msra.mxu1 %v2733_v26  ;;  %v2283_v40 = vmul.f32 0.41935483, %v6989_v19  ;;  %5489 = vmatpush3.bf16.xpose.msra.mxu0 %v2679_v50  ;;  %v2249_v49 = vadd.f32 %v7084_v8, %v7076_v35  ;;  %v2340_v33 = vmul.f32 0.16129032, %v7018_v39  ;;  %v2344_v25 = vmul.f32 0.83870965, %v7038_v37 }
 0x2a1   :  { %5963 = vmatprep.subr.msk.bf16.mxu1 %vm392_vm2, %v2621_v24  ;;  %v2396_v63 = vadd.f32 %v2392_v10, %v2388_v57  ;;  %5957 = vmatprep.subr.msk.bf16.mxu0 %vm392_vm2, %v2603_v3  ;;  %v2613_v53 = vpack.c.bf16 %v2358_v0, %v2357_v38  ;;  %8979 = vst [vmem:[#allocation31_spill] sm:$0xff] %v7162_v11  ;;  %v7165_v1 = vmul.f32 0.9354839, %v6987_v7  ;;  %v2277_v58 = vmul.f32 0.58064514, %v6991_v47  ;;  %v7175_v0 = vpop.f32.mrf.mxu1 }
 0x2a2   :  { %v2339_v23 = vmul.f32 0.16129032, %v7009_v36  ;;  %v2239_v8 = vadd.f32 %v7057_v51, %v7051_v52  ;;  %v2288_v35 = vadd.f32 %v2284_v22, %v2280_v62  ;;  %v2343_v21 = vmul.f32 0.83870965, %v7015_v15  ;;  %8980 = vst [vmem:[#allocation32_spill] sm:$0xff] %v7175_v0  ;;  %v7179_v51 = vpop.f32.mrf.mxu0 }
 0x2a3   :  { %v2395_v42 = vadd.f32 %v2391_v9, %v2387_v55  ;;  %v2595_v57 = vpack.c.bf16 %v2250_v17, %v2249_v49  ;;  %v2278_v10 = vmul.f32 0.58064514, %v7003_v16  ;;  %v2287_v26 = vadd.f32 %v2283_v40, %v2279_v46  ;;  %8981 = vst [vmem:[#allocation33_spill] sm:$0xff] %v7179_v51 }
 0x2a4   :  { %v2386_v24 = vmul.f32 0.22580644, %v7046_v18  ;;  %v2390_v7 = vmul.f32 0.7741935, %v7128_v12  ;;  %v2730_v47 = vsel %vm392_vm2, %v2613_v53, 0  ;;  %v2348_v3 = vadd.f32 %v2344_v25, %v2340_v33 }
 0x2a5   :  { %v2620_v50 = vpack.c.bf16 %v2396_v63, %v2395_v42  ;;  %v2457_v52 = vmul.f32 0.32258064, %v7157_v20  ;;  %v2282_v62 = vmul.f32 0.41935483, %v7005_v43  ;;  %v2385_v22 = vmul.f32 0.22580644, %v7036_v56 }
 0x2a6   :  { %v2240_v16 = vadd.f32 %v7100_v13, %v7092_v31  ;;  %v2461_v55 = vmul.f32 0.67741936, %v7179_v51  ;;  %v2389_v9 = vmul.f32 0.7741935, %v7087_v61  ;;  %v2676_v17 = vsel %vm392_vm2, %v2595_v57, 0  ;;  %v7196_v31 = vpop.f32.mrf.mxu1 }
 0x2a7   :  { %v2602_v38 = vpack.c.bf16 %v2288_v35, %v2287_v26  ;;  %v2347_v46 = vadd.f32 %v2343_v21, %v2339_v23  ;;  %v2272_v40 = vmul.f32 0.9354839, %v6997_v60  ;;  %v7191_v49 = vmul.f32 0.12903225, %v6989_v19  ;;  %8983 = vst [vmem:[#allocation35_spill] sm:$0xff] %v7196_v31 }
 0x2a8   :  { %5505 = vmatpush3.bf16.xpose.msra.mxu1 %v2730_v47  ;;  %v2281_v33 = vmul.f32 0.41935483, %v6993_v29  ;;  %5491 = vmatpush3.bf16.xpose.msra.mxu0 %v2676_v17  ;;  %v7194_v25 = vadd.f32 %v2461_v55, %v2457_v52  ;;  %v2338_v13 = vmul.f32 0.16129032, %v7023_v30  ;;  %v2342_v63 = vmul.f32 0.83870965, %v7044_v44  ;;  %v7208_v42 = vpop.f32.mrf.mxu1  ;;  %v7218_v52 = vpop.f32.mrf.mxu0 }
 0x2a9   :  { %5964 = vmatprep.subr.msk.bf16.mxu1 %vm392_vm2, %v2620_v50  ;;  %v2394_v53 = vadd.f32 %v2390_v7, %v2386_v24  ;;  %5958 = vmatprep.subr.msk.bf16.mxu0 %vm392_vm2, %v2602_v38  ;;  %v2612_v23 = vpack.c.bf16 %v2348_v3, %v2347_v46  ;;  %v7202_v60 = vmul.f32 0.87096775, %v7009_v36  ;;  %v2327_v19 = vmul.f32 0.6451613, %v7009_v36  ;;  %8984 = vst [vmem:[#allocation36_spill] sm:$0xff] %v7218_v52 }
 0x2aa   :  { %8982 = vst [vmem:[#allocation34_spill] sm:$0xff] %v7194_v25  ;;  %v2337_v35 = vmul.f32 0.16129032, %v7013_v34  ;;  %v2286_v57 = vadd.f32 %v2282_v62, %v2278_v10  ;;  %v2341_v26 = vmul.f32 0.83870965, %v7025_v45  ;;  %v2393_v47 = vadd.f32 %v2389_v9, %v2385_v22  ;;  %v8998_v25 = vld [vmem:[#allocation21_spill] sm:$0xff] }
 0x2ab   :  { %v2594_v24 = vpack.c.bf16 %v2240_v16, %v2239_v8  ;;  %v2285_v7 = vadd.f32 %v2281_v33, %v2277_v58  ;;  %v7212_v50 = vmul.f32 0.12903225, %v6993_v29  ;;  %v7215_v3 = vmul.f32 0.87096775, %v7013_v34  ;;  %v7227_v8 = vpop.f32.mrf.mxu1 }
 0x2ac   :  { %v2376_v36 = vmul.f32 0.7096774, %v7041_v27  ;;  %v2380_v55 = vmul.f32 0.29032257, %v7113_v41  ;;  %v2727_v17 = vsel %vm392_vm2, %v2612_v23, 0  ;;  %v2619_v10 = vpack.c.bf16 %v2394_v53, %v2393_v47  ;;  %v7238_v53 = vpop.f32.mrf.mxu0  ;;  %v8985_v47 = vld [vmem:[#allocation25_spill] sm:$0xff] }
 0x2ad   :  { %v2346_v62 = vadd.f32 %v2342_v63, %v2338_v13  ;;  %v7223_v22 = vmul.f32 0.6451613, %v7013_v34  ;;  %v2375_v58 = vmul.f32 0.7096774, %v7031_v2  ;;  %v2379_v29 = vmul.f32 0.29032257, %v7060_v5 }
 0x2ae   :  { %v2673_v16 = vsel %vm392_vm2, %v2594_v24, 0  ;;  %v2601_v9 = vpack.c.bf16 %v2286_v57, %v2285_v7  ;;  %v2238_v38 = vadd.f32 %v7152_v59, %v7097_v54  ;;  %v2345_v46 = vadd.f32 %v2341_v26, %v2337_v35  ;;  %v8986_v54 = vld [vmem:[#allocation27_spill] sm:$0xff]  ;;  %v8987_v26 = vld [vmem:[#allocation28_spill] sm:$0xff]  ;;  %v7252_v7 = vpop.f32.mrf.mxu1 }
 0x2af   :  { %v2275_v34 = vadd.f32 %v7165_v1, %v7063_v32  ;;  %v2316_v33 = vmul.f32 0.12903225, %v6999_v4  ;;  %v2328_v13 = vmul.f32 0.6451613, %v7018_v39  ;;  %v2332_v63 = vmul.f32 0.3548387, %v7038_v37 }
 0x2b0   :  { %5507 = vmatpush3.bf16.xpose.msra.mxu1 %v2727_v17  ;;  %5493 = vmatpush3.bf16.xpose.msra.mxu0 %v2673_v16  ;;  %v2320_v23 = vmul.f32 0.87096775, %v7018_v39  ;;  %v2384_v57 = vadd.f32 %v2380_v55, %v2376_v36  ;;  %v2237_v59 = vadd.f32 %v8986_v54, %v8985_v47  ;;  %v2611_v35 = vpack.c.bf16 %v2346_v62, %v2345_v46  ;;  %v7263_v16 = vpop.f32.mrf.mxu0 }
 0x2b1   :  { %5965 = vmatprep.subr.msk.bf16.mxu1 %vm392_vm2, %v2619_v10  ;;  %5959 = vmatprep.subr.msk.bf16.mxu0 %vm392_vm2, %v2601_v9  ;;  %v2276_v32 = vadd.f32 %v2272_v40, %v8987_v26  ;;  %v7246_v4 = vmul.f32 0.12903225, %v7005_v43  ;;  %v7249_v1 = vmul.f32 0.87096775, %v7023_v30  ;;  %v2331_v24 = vmul.f32 0.3548387, %v7015_v15 }
 0x2b2   :  { %v2326_v39 = vmul.f32 0.6451613, %v7023_v30  ;;  %v7256_v36 = vmul.f32 0.19354838, %v7015_v15  ;;  %v2383_v55 = vadd.f32 %v2379_v29, %v2375_v58  ;;  %v2593_v17 = vpack.c.bf16 %v2238_v38, %v2237_v59 }
 0x2b3   :  { %v7259_v10 = vmul.f32 0.8064516, %v7031_v2  ;;  %v2374_v43 = vmul.f32 0.7096774, %v7046_v18  ;;  %v2378_v40 = vmul.f32 0.29032257, %v7128_v12  ;;  %v2336_v62 = vadd.f32 %v2332_v63, %v2328_v13  ;;  %v7275_v13 = vpop.f32.mrf.mxu1 }
 0x2b4   :  { %v2329_v9 = vmul.f32 0.3548387, %v7025_v45  ;;  %v7267_v46 = vmul.f32 0.19354838, %v7025_v45  ;;  %v2724_v15 = vsel %vm392_vm2, %v2611_v35, 0  ;;  %v2618_v30 = vpack.c.bf16 %v2384_v57, %v2383_v55 }
 0x2b5   :  { %v7271_v58 = vmul.f32 0.8064516, %v7036_v56  ;;  %v2373_v2 = vmul.f32 0.7096774, %v7036_v56  ;;  %v2377_v29 = vmul.f32 0.29032257, %v7087_v61  ;;  %v2335_v38 = vadd.f32 %v2331_v24, %v2327_v19  ;;  %v7285_v19 = vpop.f32.mrf.mxu0 }
 0x2b6   :  { %v2364_v63 = vmul.f32 0.19354838, %v7038_v37  ;;  %v2368_v47 = vmul.f32 0.8064516, %v7041_v27  ;;  %v2670_v45 = vsel %vm392_vm2, %v2593_v17, 0  ;;  %v2600_v54 = vpack.c.bf16 %v2276_v32, %v2275_v34  ;;  %v8988_v27 = vld [vmem:[#allocation24_spill] sm:$0xff] }
 0x2b7   :  { %v2330_v57 = vmul.f32 0.3548387, %v7044_v44  ;;  %v7283_v59 = vmul.f32 0.19354838, %v7044_v44  ;;  %v2382_v56 = vadd.f32 %v2378_v40, %v2374_v43  ;;  %v2610_v35 = vpack.c.bf16 %v2336_v62, %v2335_v38  ;;  %v8989_v17 = vld [vmem:[#allocation26_spill] sm:$0xff] }
 0x2b8   :  { %5509 = vmatpush3.bf16.xpose.msra.mxu1 %v2724_v15  ;;  %5495 = vmatpush3.bf16.xpose.msra.mxu0 %v2670_v45  ;;  %v7288_v26 = vmul.f32 0.8064516, %v7046_v18  ;;  %v7291_v37 = vmul.f32 0.2580645, %v7060_v5  ;;  %v7294_v34 = vmul.f32 0.7419355, %v8988_v27  ;;  %v2381_v24 = vadd.f32 %v2377_v29, %v2373_v2  ;;  %v7306_v18 = vpop.f32.mrf.mxu1  ;;  %v7323_v29 = vpop.f32.mrf.mxu0 }
 0x2b9   :  { %5966 = vmatprep.subr.msk.bf16.mxu1 %vm392_vm2, %v2618_v30  ;;  %5960 = vmatprep.subr.msk.bf16.mxu0 %vm392_vm2, %v2600_v54  ;;  %v7298_v32 = vmul.f32 0.7741935, %v8988_v27  ;;  %v7301_v44 = vmul.f32 0.29032257, %v8988_v27  ;;  %v7304_v55 = vmul.f32 0.2580645, %v7087_v61  ;;  %v7316_v40 = vadd.f32 %v7202_v60, %v7191_v49 }
 0x2ba   :  { %v7309_v5 = vmul.f32 0.7419355, %v8989_v17  ;;  %v7312_v43 = vmul.f32 0.7741935, %v8989_v17  ;;  %v7318_v62 = vadd.f32 %v2320_v23, %v2316_v33  ;;  %v2721_v15 = vsel %vm392_vm2, %v2610_v35, 0  ;;  %v8990_v35 = vld [vmem:[#allocation29_spill] sm:$0xff] }
 0x2bb   :  { %v2495_v30 = vmul.f32 0.87096775, %v7208_v42  ;;  %v2499_v61 = vmul.f32 0.12903225, %v7263_v16  ;;  %v2617_v2 = vpack.c.bf16 %v2382_v56, %v2381_v24  ;;  %v2496_v38 = vmul.f32 0.87096775, %v7252_v7  ;;  %v7338_v56 = vpop.f32.mrf.mxu1 }
 0x2bc   :  { %v2500_v45 = vmul.f32 0.12903225, %v7323_v29  ;;  %v2334_v54 = vadd.f32 %v2330_v57, %v2326_v39  ;;  %v2372_v60 = vadd.f32 %v2368_v47, %v2364_v63  ;;  %v7330_v33 = vmul.f32 0.29032257, %v8989_v17  ;;  %v8991_v57 = vld [vmem:[#allocation22_spill] sm:$0xff]  ;;  %v8992_v49 = vld [vmem:[#allocation20_spill] sm:$0xff] }
 0x2bd   :  { %v7333_v23 = vmul.f32 0.2580645, %v7113_v41  ;;  %v7336_v27 = vmul.f32 0.7419355, %v8990_v35  ;;  %v7341_v24 = vmul.f32 0.7741935, %v8990_v35  ;;  %v8993_v63 = vpack.c.bf16 %v8991_v57, %v8992_v49 }
 0x2be   :  { %v2436_v39 = vmul.f32 0.29032257, %v8990_v35  ;;  %v2333_v41 = vadd.f32 %v2329_v9, %v7223_v22  ;;  %v7351_v17 = vmul.f32 0.2580645, %v7128_v12  ;;  %v7357_v21 = vmul.f32 0.7741935, %v7121_v28 }
 0x2bf   :  { %v2667_v47 = vsel %vm392_vm2, %v8993_v63, 0  ;;  %v7361_v35 = vadd.f32 %v7215_v3, %v7212_v50  ;;  %v8996_v49 = vpack.c.bf16 %v7011_v6, %v7001_v48  ;;  %v2503_v22 = vadd.f32 %v2499_v61, %v2495_v30  ;;  %v7378_v48 = vpop.f32.mrf.mxu1 }
 0x2c0   :  { %5511 = vmatpush3.bf16.xpose.msra.mxu1 %v2721_v15  ;;  %8994 = vst [vmem:[#allocation25_spill] sm:$0xff] %v7351_v17  ;;  %v7354_v15 = vmul.f32 0.7419355, %v7121_v28  ;;  %5497 = vmatpush3.bf16.xpose.msra.mxu0 %v2667_v47  ;;  %v2504_v9 = vadd.f32 %v2500_v45, %v2496_v38  ;;  %v2609_v12 = vpack.c.bf16 %v2334_v54, %v2333_v41  ;;  %v2434_v63 = vmul.f32 0.29032257, %v7121_v28 }
 0x2c1   :  { %5967 = vmatprep.subr.msk.bf16.mxu1 %vm392_vm2, %v2617_v2  ;;  %5961 = vmatprep.subr.msk.bf16.mxu0 %vm392_vm2, %v8996_v49  ;;  %v7369_v2 = vadd.f32 %v7249_v1, %v7246_v4  ;;  %v2371_v57 = vadd.f32 %v7259_v10, %v7256_v36  ;;  %v7375_v50 = vmul.f32 0.22580644, %v7141_v14  ;;  %v2447_v3 = vmul.f32 0.8064516, %v7141_v14  ;;  %v7390_v10 = vpop.f32.mrf.mxu0  ;;  %v8997_v4 = vld [vmem:[#allocation23_spill] sm:$0xff] }
 0x2c2   :  { %8995 = vst [vmem:[#allocation27_spill] sm:$0xff] %v7354_v15  ;;  %v2451_v6 = vmul.f32 0.19354838, %v7162_v11  ;;  %v2448_v30 = vmul.f32 0.8064516, %v7175_v0  ;;  %v2718_v45 = vsel %vm392_vm2, %v2609_v12, 0  ;;  %v2638_v47 = vpack.c.bf16 %v2504_v9, %v2503_v22  ;;  %v7400_v15 = vpop.f32.mrf.mxu1 }
 0x2c3   :  { %v2452_v61 = vmul.f32 0.19354838, %v7218_v52  ;;  %v2439_v1 = vmul.f32 0.7096774, %v7141_v14  ;;  %v2483_v28 = vmul.f32 0.3548387, %v7162_v11  ;;  %v2616_v54 = vpack.c.bf16 %v2372_v60, %v2371_v57 }
 0x2c4   :  { %v7388_v36 = vmul.f32 0.22580644, %v7157_v20  ;;  %v2440_v38 = vmul.f32 0.7096774, %v7175_v0  ;;  %v2493_v41 = vmul.f32 0.87096775, %v7227_v8  ;;  %v8999_v14 = vpack.c.bf16 %v8997_v4, %v8998_v25  ;;  %v7410_v4 = vpop.f32.mrf.mxu0 }
 0x2c5   :  { %v2497_v49 = vmul.f32 0.12903225, %v7285_v19  ;;  %v2494_v17 = vmul.f32 0.87096775, %v7275_v13  ;;  %v2498_v12 = vmul.f32 0.12903225, %v7390_v10  ;;  %v2455_v60 = vadd.f32 %v2451_v6, %v2447_v3 }
 0x2c6   :  { %v2664_v11 = vsel %vm392_vm2, %v8999_v14, 0  ;;  %v2456_v22 = vadd.f32 %v2452_v61, %v2448_v30  ;;  %v2369_v9 = vadd.f32 %v7271_v58, %v7267_v46  ;;  %v2437_v57 = vmul.f32 0.7096774, %v7157_v20  ;;  %v7423_v30 = vpop.f32.mrf.mxu1 }
 0x2c7   :  { %v2445_v25 = vmul.f32 0.8064516, %v7157_v20  ;;  %v2449_v14 = vmul.f32 0.19354838, %v7179_v51  ;;  %v2428_v3 = vmul.f32 0.22580644, %v7175_v0  ;;  %v2501_v58 = vadd.f32 %v2497_v49, %v2493_v41 }
 0x2c8   :  { %5513 = vmatpush3.bf16.xpose.msra.mxu1 %v2718_v45  ;;  %5499 = vmatpush3.bf16.xpose.msra.mxu0 %v2664_v11  ;;  %v2370_v45 = vadd.f32 %v7288_v26, %v7283_v59  ;;  %v2484_v6 = vmul.f32 0.3548387, %v7218_v52  ;;  %v2438_v46 = vmul.f32 0.7096774, %v7196_v31  ;;  %v2446_v20 = vmul.f32 0.8064516, %v7196_v31 }
 0x2c9   :  { %5968 = vmatprep.subr.msk.bf16.mxu1 %vm392_vm2, %v2616_v54  ;;  %v7415_v54 = vmul.f32 0.3548387, %v7179_v51  ;;  %5970 = vmatprep.subr.msk.bf16.mxu0 %vm392_vm2, %v2638_v47  ;;  %v2450_v11 = vmul.f32 0.19354838, %v7238_v53  ;;  %v2502_v61 = vadd.f32 %v2498_v12, %v2494_v17  ;;  %v2630_v59 = vpack.c.bf16 %v2456_v22, %v2455_v60  ;;  %v7444_v12 = vpop.f32.mrf.mxu1 }
 0x2ca   :  { %v7426_v26 = vadd.f32 %v2439_v1, %v7301_v44  ;;  %v7428_v51 = vadd.f32 %v2440_v38, %v2436_v39  ;;  %v2426_v0 = vmul.f32 0.22580644, %v7196_v31  ;;  %v7432_v47 = vmul.f32 0.3548387, %v7238_v53 }
 0x2cb   :  { %9000 = vst [vmem:[#allocation28_spill] sm:$0xff] %v7415_v54  ;;  %v2487_v52 = vmul.f32 0.6451613, %v7208_v42  ;;  %v7435_v54 = vpop.f32.mrf.mxu0  ;;  %v2488_v41 = vmul.f32 0.6451613, %v7252_v7  ;;  %v9001_v17 = vpack.c.bf16 %v7318_v62, %v7316_v40  ;;  %v2615_v44 = vpack.c.bf16 %v2370_v45, %v2369_v9  ;;  %v9002_v62 = vld [vmem:[#allocation19_spill] sm:$0xff] }
 0x2cc   :  { %v2628_v39 = vpack.c.bf16 %v7428_v51, %v7426_v26  ;;  %v2453_v1 = vadd.f32 %v2449_v14, %v2445_v25  ;;  %v2454_v38 = vadd.f32 %v2450_v11, %v2446_v20  ;;  %v7447_v60 = vadd.f32 %v2437_v57, %v7330_v33 }
 0x2cd   :  { %v2715_v49 = vsel %vm392_vm2, %v9001_v17, 0  ;;  %v7449_v22 = vadd.f32 %v2438_v46, %v2434_v63  ;;  %v2507_v31 = vmul.f32 0.38709676, %v7208_v42  ;;  %v2511_v40 = vmul.f32 0.61290324, %v7263_v16  ;;  %v7459_v63 = vpop.f32.mrf.mxu0  ;;  %v7477_v17 = vpop.f32.mrf.mxu1 }
 0x2ce   :  { %v2781_v9 = vsel %vm392_vm2, %v2630_v59, 0  ;;  %v2637_v25 = vpack.c.bf16 %v2502_v61, %v2501_v58  ;;  %v2491_v14 = vadd.f32 %v2487_v52, %v2483_v28  ;;  %v2543_v45 = vmul.f32 0.9354839, %v7306_v18 }
 0x2cf   :  { %5501 = vmatmul.mubr.msk.bf16.vlgmr.msra.gmra.mxu0 %vm392_vm2, %v9002_v62  ;;  %v2544_v33 = vmul.f32 0.9354839, %v7378_v48  ;;  %v2627_v57 = vpack.c.bf16 %v7449_v22, %v7447_v60  ;;  %v2547_v46 = vmul.f32 0.06451613, %v7410_v4  ;;  %v2548_v20 = vmul.f32 0.06451613, %v7459_v63 }
 0x2d0   :  { %5515 = vmatpush3.bf16.xpose.msra.mxu1 %v2715_v49  ;;  %5521 = vmatpush3.bf16.xpose.msra.mxu0 %v2781_v9  ;;  %v7470_v52 = vadd.f32 %v7375_v50, %v7298_v32  ;;  %v7473_v28 = vadd.f32 %v2428_v3, %v7341_v24  ;;  %v2485_v11 = vmul.f32 0.6451613, %v7227_v8  ;;  %v2505_v58 = vmul.f32 0.38709676, %v7227_v8  ;;  %v7539_v9 = vpop.f32.mrf.mxu1 }
 0x2d1   :  { %5969 = vmatprep.subr.msk.bf16.mxu1 %vm392_vm2, %v2615_v44  ;;  %5536 = vmatprep.mubr.msk.bf16.mxu0 %vm392_vm2, %v9002_v62  ;;  %v2492_v61 = vadd.f32 %v2488_v41, %v2484_v6  ;;  %v2629_v59 = vpack.c.bf16 %v2454_v38, %v2453_v1  ;;  %v2654_v49 = vpack.c.bf16 %v7477_v17, %v7423_v30  ;;  %v2509_v50 = vmul.f32 0.61290324, %v7285_v19 }
 0x2d2   :  { %5971 = vmatprep.subr.msk.bf16.mxu0 %vm392_vm2, %v2637_v25  ;;  %v7485_v32 = vadd.f32 %v7388_v36, %v7312_v43  ;;  %v7488_v24 = vadd.f32 %v2426_v0, %v7357_v21  ;;  %v2508_v3 = vmul.f32 0.38709676, %v7252_v7  ;;  %v9003_v6 = vpack.c.bf16 %v7369_v2, %v7361_v35  ;;  %v7505_v25 = vpop.f32.mrf.mxu0 }
 0x2d3   :  { %v2551_v1 = vadd.f32 %v2547_v46, %v2543_v45  ;;  %v2552_v38 = vadd.f32 %v2548_v20, %v2544_v33  ;;  %v7500_v43 = vadd.f32 %v7294_v34, %v7291_v37  ;;  %v2512_v0 = vmul.f32 0.61290324, %v7323_v29  ;;  %v9005_v20 = vld [vmem:[#allocation27_spill] sm:$0xff] }
 0x2d4   :  { %v2712_v41 = vsel %vm392_vm2, %v9003_v6, 0  ;;  %v2486_v21 = vmul.f32 0.6451613, %v7275_v13  ;;  %v2506_v36 = vmul.f32 0.38709676, %v7275_v13  ;;  %v7509_v35 = vadd.f32 %v7336_v27, %v7333_v23  ;;  %v9004_v27 = vld [vmem:[#allocation25_spill] sm:$0xff] }
 0x2d5   :  { %v2510_v2 = vmul.f32 0.61290324, %v7390_v10  ;;  %v2778_v45 = vsel %vm392_vm2, %v2629_v59, 0  ;;  %v2636_v33 = vpack.c.bf16 %v2492_v61, %v2491_v14  ;;  %v7516_v37 = vadd.f32 %v7309_v5, %v7304_v55  ;;  %v9006_v59 = vld [vmem:[#allocation28_spill] sm:$0xff] }
 0x2d6   :  { %v2541_v34 = vmul.f32 0.9354839, %v7338_v56  ;;  %v2542_v46 = vmul.f32 0.9354839, %v7400_v15  ;;  %v7524_v6 = vadd.f32 %v9005_v20, %v9004_v27  ;;  %v2545_v14 = vmul.f32 0.06451613, %v7435_v54 }
 0x2d7   :  { %v2546_v61 = vmul.f32 0.06451613, %v7505_v25  ;;  %v2646_v55 = vpack.c.bf16 %v2552_v38, %v2551_v1  ;;  %v7529_v5 = vadd.f32 %v2511_v40, %v2507_v31  ;;  %v7535_v23 = vadd.f32 %v2512_v0, %v2508_v3  ;;  %v9007_v0 = vld [vmem:[#allocation31_spill] sm:$0xff] }
 0x2d8   :  { %5517 = vmatpush3.bf16.xpose.msra.mxu1 %v2712_v41  ;;  %5523 = vmatpush3.bf16.xpose.msra.mxu0 %v2778_v45  ;;  %v2490_v41 = vadd.f32 %v2486_v21, %v7432_v47  ;;  %v2579_v27 = vmul.f32 0.48387095, %v7410_v4  ;;  %v2580_v20 = vmul.f32 0.48387095, %v7459_v63  ;;  %v7543_v1 = vadd.f32 %v2510_v2, %v2506_v36  ;;  %v9008_v36 = vld [vmem:[#allocation36_spill] sm:$0xff] }
 0x2d9   :  { %5978 = vmatprep.subr.msk.bf16.mxu1 %vm392_vm2, %v2654_v49  ;;  %5972 = vmatprep.subr.msk.bf16.mxu0 %vm392_vm2, %v2636_v33  ;;  %v2489_v49 = vadd.f32 %v2485_v11, %v9006_v59  ;;  %v7541_v33 = vadd.f32 %v2509_v50, %v2505_v58  ;;  %v2583_v31 = vmul.f32 0.516129, %v7423_v30  ;;  %v2584_v40 = vmul.f32 0.516129, %v7477_v17 }
 0x2da   :  { %v2653_v47 = vpack.c.bf16 %v7539_v9, %v7444_v12  ;;  %v2829_v3 = vsel %vm392_vm2, %v2646_v55, 0  ;;  %v2549_v38 = vadd.f32 %v2545_v14, %v2541_v34  ;;  %v2550_v58 = vadd.f32 %v2546_v61, %v2542_v46 }
 0x2db   :  { %v2471_v21 = vmul.f32 0.83870965, %v9007_v0  ;;  %v2472_v2 = vmul.f32 0.83870965, %v9008_v36  ;;  %v2475_v59 = vmul.f32 0.16129032, %v7208_v42  ;;  %v2635_v46 = vpack.c.bf16 %v2490_v41, %v2489_v49 }
 0x2dc   :  { %v2476_v11 = vmul.f32 0.16129032, %v7252_v7  ;;  %v2775_v34 = vsel %vm392_vm2, %v2628_v39, 0  ;;  %v2531_v14 = vmul.f32 0.41935483, %v7263_v16  ;;  %v2587_v42 = vadd.f32 %v2583_v31, %v2579_v27  ;;  %v9009_v27 = vld [vmem:[#allocation33_spill] sm:$0xff] }
 0x2dd   :  { %v2532_v61 = vmul.f32 0.41935483, %v7323_v29  ;;  %v2535_v55 = vmul.f32 0.58064514, %v7306_v18  ;;  %v2645_v7 = vpack.c.bf16 %v2550_v58, %v2549_v38  ;;  %v2479_v51 = vadd.f32 %v2475_v59, %v2471_v21 }
 0x2de   :  { %v2480_v26 = vadd.f32 %v2476_v11, %v2472_v2  ;;  %v2577_v39 = vmul.f32 0.48387095, %v7435_v54  ;;  %v2581_v49 = vmul.f32 0.516129, %v7444_v12  ;;  %v2578_v41 = vmul.f32 0.48387095, %v7505_v25 }
 0x2df   :  { %5519 = vmatmul.mubr.msk.bf16.vlgmr.msra.gmra.mxu1 %vm392_vm2, %v9002_v62  ;;  %v2826_v50 = vsel %vm392_vm2, %v2645_v7, 0  ;;  %v2539_v45 = vadd.f32 %v2535_v55, %v2531_v14  ;;  %v2470_v31 = vmul.f32 0.83870965, %v7238_v53  ;;  %v2474_v11 = vmul.f32 0.16129032, %v7275_v13 }
 0x2e0   :  { %5539 = vmatpush3.bf16.xpose.msra.mxu1 %v2829_v3  ;;  %5554 = vmatprep.mubr.msk.bf16.mxu1 %vm392_vm2, %v9002_v62  ;;  %v2536_v62 = vmul.f32 0.58064514, %v7378_v48  ;;  %v2588_v3 = vadd.f32 %v2584_v40, %v2580_v20  ;;  %v2469_v20 = vmul.f32 0.83870965, %v9009_v27  ;;  %v2473_v40 = vmul.f32 0.16129032, %v7227_v8 }
 0x2e1   :  { %5979 = vmatprep.subr.msk.bf16.mxu1 %vm392_vm2, %v2653_v47  ;;  %5525 = vmatpush3.bf16.xpose.msra.mxu0 %v2775_v34  ;;  %v2582_v47 = vmul.f32 0.516129, %v7539_v9  ;;  %v2772_v38 = vsel %vm392_vm2, %v2627_v57, 0  ;;  %v2634_v58 = vpack.c.bf16 %v2480_v26, %v2479_v51  ;;  %v2529_v21 = vmul.f32 0.41935483, %v7285_v19  ;;  %v9010_v51 = vld [vmem:[#allocation30_spill] sm:$0xff] }
 0x2e2   :  { %5973 = vmatprep.subr.msk.bf16.mxu0 %vm392_vm2, %v2635_v46  ;;  %v2652_v34 = vpack.c.bf16 %v2588_v3, %v2587_v42  ;;  %v2540_v44 = vadd.f32 %v2536_v62, %v2532_v61  ;;  %v2530_v2 = vmul.f32 0.41935483, %v7390_v10  ;;  %v2533_v59 = vmul.f32 0.58064514, %v7338_v56 }
 0x2e3   :  { %v2585_v8 = vadd.f32 %v2581_v49, %v2577_v39  ;;  %v2586_v46 = vadd.f32 %v2582_v47, %v2578_v41  ;;  %v2477_v60 = vadd.f32 %v2473_v40, %v2469_v20  ;;  %v2478_v22 = vadd.f32 %v2474_v11, %v2470_v31 }
 0x2e4   :  { %v2644_v13 = vpack.c.bf16 %v2540_v44, %v2539_v45  ;;  %v2567_v57 = vmul.f32 0.9677419, %v7410_v4  ;;  %v2568_v14 = vmul.f32 0.9677419, %v7459_v63  ;;  %v2571_v61 = vmul.f32 0.032258064, %v7423_v30 }
 0x2e5   :  { %v2572_v55 = vmul.f32 0.032258064, %v7477_v17  ;;  %v2651_v42 = vpack.c.bf16 %v2586_v46, %v2585_v8  ;;  %v2537_v3 = vadd.f32 %v2533_v59, %v2529_v21  ;;  %v2459_v26 = vmul.f32 0.32258064, %v9010_v51  ;;  %v9011_v44 = vld [vmem:[#allocation32_spill] sm:$0xff]  ;;  %v9013_v59 = vld [vmem:[#allocation35_spill] sm:$0xff] }
 0x2e6   :  { %v2823_v62 = vsel %vm392_vm2, %v2644_v13, 0  ;;  %v2463_v39 = vmul.f32 0.67741936, %v9007_v0  ;;  %v2460_v45 = vmul.f32 0.32258064, %v9011_v44  ;;  %v9012_v41 = vpack.c.bf16 %v7473_v28, %v7470_v52 }
 0x2e7   :  { %v2464_v49 = vmul.f32 0.67741936, %v9008_v36  ;;  %v2633_v17 = vpack.c.bf16 %v2478_v22, %v2477_v60  ;;  %v2519_v47 = vmul.f32 0.9032258, %v7263_v16  ;;  %v2523_v27 = vmul.f32 0.09677419, %v7306_v18 }
 0x2e8   :  { %5541 = vmatpush3.bf16.xpose.msra.mxu1 %v2826_v50  ;;  %v2534_v50 = vmul.f32 0.58064514, %v7400_v15  ;;  %v2769_v30 = vsel %vm392_vm2, %v9012_v41, 0  ;;  %v2524_v0 = vmul.f32 0.09677419, %v7378_v48  ;;  %v2575_v20 = vadd.f32 %v2571_v61, %v2567_v57 }
 0x2e9   :  { %5980 = vmatprep.subr.msk.bf16.mxu1 %vm392_vm2, %v2652_v34  ;;  %5527 = vmatpush3.bf16.xpose.msra.mxu0 %v2772_v38  ;;  %v2520_v34 = vmul.f32 0.9032258, %v7323_v29  ;;  %v2576_v31 = vadd.f32 %v2572_v55, %v2568_v14  ;;  %v2467_v52 = vadd.f32 %v2463_v39, %v2459_v26  ;;  %v2468_v28 = vadd.f32 %v2464_v49, %v2460_v45  ;;  %v9016_v39 = vld [vmem:[#allocation34_spill] sm:$0xff] }
 0x2ea   :  { %5974 = vmatprep.subr.msk.bf16.mxu0 %vm392_vm2, %v2634_v58  ;;  %v2538_v7 = vadd.f32 %v2534_v50, %v2530_v2  ;;  %v2565_v40 = vmul.f32 0.9677419, %v7435_v54  ;;  %v2569_v11 = vmul.f32 0.032258064, %v7444_v12  ;;  %v2566_v16 = vmul.f32 0.9677419, %v7505_v25 }
 0x2eb   :  { %v2570_v29 = vmul.f32 0.032258064, %v7539_v9  ;;  %v2650_v58 = vpack.c.bf16 %v2576_v31, %v2575_v20  ;;  %v2527_v21 = vadd.f32 %v2523_v27, %v2519_v47  ;;  %v2528_v2 = vadd.f32 %v2524_v0, %v2520_v34  ;;  %v9018_v34 = vld [vmem:[#allocation3_spill] sm:$0xff]  ;;  %v6076_v0 = vld [vmem:[%s8895_s4 + $0x8] sm:$0xff]   ;;  %v9022_v20 = vld [vmem:[#allocation6_spill] sm:$0xff] }
 0x2ec   :  { %v2643_v36 = vpack.c.bf16 %v2538_v7, %v2537_v3  ;;  %v2458_v50 = vmul.f32 0.32258064, %v9013_v59  ;;  %v2462_v8 = vmul.f32 0.67741936, %v7238_v53  ;;  %v9014_v46 = vpack.c.bf16 %v7488_v24, %v7485_v32  ;;  %v9023_v31 = vld [vmem:[#allocation5_spill] sm:$0xff] }
 0x2ed   :  { %v2632_v12 = vpack.c.bf16 %v2468_v28, %v2467_v52  ;;  %v2517_v9 = vmul.f32 0.9032258, %v7285_v19  ;;  %v2518_v60 = vmul.f32 0.9032258, %v7390_v10  ;;  %v2521_v22 = vmul.f32 0.09677419, %v7338_v56 }
 0x2ee   :  { %v2820_v38 = vsel %vm392_vm2, %v2643_v36, 0  ;;  %v2766_v13 = vsel %vm392_vm2, %v9014_v46, 0  ;;  %v2522_v57 = vmul.f32 0.09677419, %v7400_v15  ;;  %v2573_v14 = vadd.f32 %v2569_v11, %v2565_v40  ;;  %v9026_v36 = vld [vmem:[#allocation9_spill] sm:$0xff]  ;;  %v9027_v52 = vld [vmem:[#allocation10_spill] sm:$0xff] }
 0x2ef   :  { %v2574_v61 = vadd.f32 %v2570_v29, %v2566_v16  ;;  %v2642_v53 = vpack.c.bf16 %v2528_v2, %v2527_v21  ;;  %v2466_v32 = vadd.f32 %v2462_v8, %v2458_v50  ;;  %v2555_v24 = vmul.f32 0.4516129, %v7306_v18  ;;  %v9028_v28 = vld [vmem:[#allocation11_spill] sm:$0xff]  ;;  %v9029_v40 = vld [vmem:[#allocation12_spill] sm:$0xff]  ;;  %v9030_v11 = vld [vmem:[#allocation13_spill] sm:$0xff] }
 0x2f0   :  { %5543 = vmatpush3.bf16.xpose.msra.mxu1 %v2823_v62  ;;  %v2556_v55 = vmul.f32 0.4516129, %v7378_v48  ;;  %v2559_v62 = vmul.f32 0.5483871, %v7410_v4  ;;  %v2560_v19 = vmul.f32 0.5483871, %v7459_v63  ;;  %v2525_v3 = vadd.f32 %v2521_v22, %v2517_v9 }
 0x2f1   :  { %5981 = vmatprep.subr.msk.bf16.mxu1 %vm392_vm2, %v2651_v42  ;;  %5529 = vmatpush3.bf16.xpose.msra.mxu0 %v2769_v30  ;;  %v2817_v10 = vsel %vm392_vm2, %v2642_v53, 0  ;;  %v2649_v42 = vpack.c.bf16 %v2574_v61, %v2573_v14  ;;  %v2526_v7 = vadd.f32 %v2522_v57, %v2518_v60  ;;  %v9015_v51 = vpack.c.bf16 %v7509_v35, %v7500_v43  ;;  %v9031_v16 = vld [vmem:[#allocation14_spill] sm:$0xff]  ;;  %v9032_v29 = vld [vmem:[#allocation15_spill] sm:$0xff] }
 0x2f2   :  { %5975 = vmatprep.subr.msk.bf16.mxu0 %vm392_vm2, %v2633_v17  ;;  %v2631_v44 = vpack.c.bf16 %v2466_v32, %v9016_v39  ;;  %v2563_v18 = vadd.f32 %v2559_v62, %v2555_v24  ;;  %v2564_v48 = vadd.f32 %v2560_v19, %v2556_v55  ;;  %v2553_v63 = vmul.f32 0.4516129, %v7338_v56  ;;  %v9035_v21 = vld [vmem:[#allocation18_spill] sm:$0xff]  ;;  %v7778_v57 = vld [vmem:[%s8898_s5] sm:$0xff]  }
 0x2f3   :  { %v2763_v26 = vsel %vm392_vm2, %v9015_v51, 0  ;;  %v2641_v4 = vpack.c.bf16 %v2526_v7, %v2525_v3  ;;  %v2554_v45 = vmul.f32 0.4516129, %v7400_v15  ;;  %v2557_v49 = vmul.f32 0.5483871, %v7435_v54  ;;  %9036 = vst [vmem:[#allocation24_spill] sm:$0xff] %v7778_v57 }
 0x2f4   :  { %v2558_v43 = vmul.f32 0.5483871, %v7505_v25  ;;  %v2648_v41 = vpack.c.bf16 %v2564_v48, %v2563_v18  ;;  %v9017_v30 = vpack.c.bf16 %v7524_v6, %v7516_v37  ;;  %v9019_v15 = vpack.c.bf16 %v7535_v23, %v7529_v5  ;;  %v6074_v37 = vld [vmem:[%s8898_s5] sm:$0xff]   ;;  %v9020_v23 = vld [vmem:[#allocation4_spill] sm:$0xff] }
 0x2f5   :  { %v2814_v35 = vsel %vm392_vm2, %v2641_v4, 0  ;;  %v2561_v47 = vadd.f32 %v2557_v49, %v2553_v63  ;;  %v7663_v6 = vld [vmem:[%s8895_s4] sm:$0xff]   ;;  %v9021_v5 = vpack.c.bf16 %v7543_v1, %v7541_v33  ;;  %v9024_v33 = vld [vmem:[#allocation8_spill] sm:$0xff] }
 0x2f6   :  { %v2760_v17 = vsel %vm392_vm2, %v9017_v30, 0  ;;  %v2562_v56 = vadd.f32 %v2558_v43, %v2554_v45  ;;  %v2811_v54 = vsel %vm392_vm2, %v9019_v15, 0  ;;  %v9025_v1 = vld [vmem:[#allocation7_spill] sm:$0xff] }
 0x2f7   :  { %v2808_v27 = vsel %vm392_vm2, %v9021_v5, 0 }
 0x2f8   :  { %5545 = vmatpush3.bf16.xpose.msra.mxu1 %v2820_v38  ;;  %v2647_v25 = vpack.c.bf16 %v2562_v56, %v2561_v47  ;;  %v9033_v38 = vld [vmem:[#allocation16_spill] sm:$0xff] }
 0x2f9   :  { %5982 = vmatprep.subr.msk.bf16.mxu1 %vm392_vm2, %v2650_v58  ;;  %5531 = vmatpush3.bf16.xpose.msra.mxu0 %v2766_v13  ;;  %v9034_v58 = vld [vmem:[#allocation17_spill] sm:$0xff] }
 0x2fa   :  { %5976 = vmatprep.subr.msk.bf16.mxu0 %vm392_vm2, %v2632_v12 }
 0x300   :  { %5547 = vmatpush3.bf16.xpose.msra.mxu1 %v2817_v10 }
 0x301   :  { %5983 = vmatprep.subr.msk.bf16.mxu1 %vm392_vm2, %v2649_v42  ;;  %5533 = vmatpush3.bf16.xpose.msra.mxu0 %v2763_v26 }
 0x302   :  { %5977 = vmatprep.subr.msk.bf16.mxu0 %vm392_vm2, %v2631_v44 }
 0x308   :  { %5549 = vmatpush3.bf16.xpose.msra.mxu1 %v2814_v35 }
 0x309   :  { %5984 = vmatprep.subr.msk.bf16.mxu1 %vm392_vm2, %v2648_v41  ;;  %5535 = vmatpush3.bf16.xpose.msra.mxu0 %v2760_v17 }
 0x30a   :  { %5856 = vmatprep.subr.bf16.mxu0 %v9018_v34 }
 0x310   :  { %5551 = vmatpush3.bf16.xpose.msra.mxu1 %v2811_v54  ;;  %5537 = vmatmul.mubr.msk.bf16.vlgmr.msra.gmra.mxu0 %vm392_vm2, %v6074_v37 }
 0x311   :  { %5985 = vmatprep.subr.msk.bf16.mxu1 %vm392_vm2, %v2647_v25  ;;  %5857 = vmatpush3.bf16.msra.mxu0 %v9018_v34 }
 0x312   :  { %5858 = vmatprep.mubr.msk.bf16.mxu0 %vm1438_vm3, %v7663_v6  ;;  %5868 = vmatprep.subr.bf16.mxu0 %v9020_v23 }
 0x318   :  { %5553 = vmatpush3.bf16.xpose.msra.mxu1 %v2808_v27  ;;  %5859 = vmatmul.mubr.msk.bf16.vlgmr.msra.gmra.mxu0 %vm1438_vm3, %v6076_v0 }
 0x319   :  { %5862 = vmatprep.subr.bf16.mxu1 %v9022_v20  ;;  %5869 = vmatpush3.bf16.msra.mxu0 %v9020_v23 }
 0x31a   :  { %5870 = vmatprep.mubr.msk.bf16.mxu0 %vm1438_vm3, %v7663_v6  ;;  %5880 = vmatprep.subr.bf16.mxu0 %v9023_v31 }
 0x31f   :  { %5555 = vmatmul.mubr.msk.bf16.vlgmr.msra.gmra.mxu1 %vm392_vm2, %v6074_v37 }
 0x320   :  { %5863 = vmatpush3.bf16.msra.mxu1 %v9022_v20  ;;  %5864 = vmatprep.mubr.msk.bf16.mxu1 %vm1438_vm3, %v7663_v6 }
 0x321   :  { %5871 = vmatmul.mubr.msk.bf16.vlgmr.msra.gmra.mxu0 %vm1438_vm3, %v6076_v0  ;;  %5874 = vmatprep.subr.bf16.mxu1 %v9024_v33 }
 0x322   :  { %5881 = vmatpush3.bf16.msra.mxu0 %v9023_v31  ;;  %5882 = vmatprep.mubr.msk.bf16.mxu0 %vm1438_vm3, %v7663_v6 }
 0x323   :  { %5892 = vmatprep.subr.bf16.mxu0 %v9025_v1 }
 0x327   :  { %5865 = vmatmul.mubr.msk.bf16.vlgmr.msra.gmra.mxu1 %vm1438_vm3, %v6076_v0 }
 0x328   :  { %5875 = vmatpush3.bf16.msra.mxu1 %v9024_v33  ;;  %5876 = vmatprep.mubr.msk.bf16.mxu1 %vm1438_vm3, %v7663_v6 }
 0x329   :  { %5883 = vmatmul.mubr.msk.bf16.vlgmr.msra.gmra.mxu0 %vm1438_vm3, %v6076_v0  ;;  %5886 = vmatprep.subr.bf16.mxu1 %v9026_v36 }
 0x32a   :  { %5893 = vmatpush3.bf16.msra.mxu0 %v9025_v1  ;;  %5894 = vmatprep.mubr.msk.bf16.mxu0 %vm1438_vm3, %v7663_v6 }
 0x32b   :  { %5904 = vmatprep.subr.bf16.mxu0 %v9027_v52 }
 0x32f   :  { %5877 = vmatmul.mubr.msk.bf16.vlgmr.msra.gmra.mxu1 %vm1438_vm3, %v6076_v0 }
 0x330   :  { %5887 = vmatpush3.bf16.msra.mxu1 %v9026_v36  ;;  %5888 = vmatprep.mubr.msk.bf16.mxu1 %vm1438_vm3, %v7663_v6 }
 0x331   :  { %5895 = vmatmul.mubr.msk.bf16.vlgmr.msra.gmra.mxu0 %vm1438_vm3, %v6076_v0  ;;  %5898 = vmatprep.subr.bf16.mxu1 %v9028_v28 }
 0x332   :  { %5905 = vmatpush3.bf16.msra.mxu0 %v9027_v52  ;;  %5906 = vmatprep.mubr.msk.bf16.mxu0 %vm1438_vm3, %v7663_v6 }
 0x333   :  { %5916 = vmatprep.subr.bf16.mxu0 %v9029_v40 }
 0x337   :  { %5889 = vmatmul.mubr.msk.bf16.vlgmr.msra.gmra.mxu1 %vm1438_vm3, %v6076_v0 }
 0x338   :  { %5899 = vmatpush3.bf16.msra.mxu1 %v9028_v28  ;;  %5900 = vmatprep.mubr.msk.bf16.mxu1 %vm1438_vm3, %v7663_v6 }
 0x339   :  { %5907 = vmatmul.mubr.msk.bf16.vlgmr.msra.gmra.mxu0 %vm1438_vm3, %v6076_v0  ;;  %5910 = vmatprep.subr.bf16.mxu1 %v9030_v11 }
 0x33a   :  { %5917 = vmatpush3.bf16.msra.mxu0 %v9029_v40  ;;  %5918 = vmatprep.mubr.msk.bf16.mxu0 %vm1438_vm3, %v7663_v6 }
 0x33b   :  { %5928 = vmatprep.subr.bf16.mxu0 %v9031_v16 }
 0x33f   :  { %5901 = vmatmul.mubr.msk.bf16.vlgmr.msra.gmra.mxu1 %vm1438_vm3, %v6076_v0 }
 0x340   :  { %5911 = vmatpush3.bf16.msra.mxu1 %v9030_v11  ;;  %5912 = vmatprep.mubr.msk.bf16.mxu1 %vm1438_vm3, %v7663_v6 }
 0x341   :  { %5919 = vmatmul.mubr.msk.bf16.vlgmr.msra.gmra.mxu0 %vm1438_vm3, %v6076_v0  ;;  %5922 = vmatprep.subr.bf16.mxu1 %v9032_v29 }
 0x342   :  { %5929 = vmatpush3.bf16.msra.mxu0 %v9031_v16  ;;  %5930 = vmatprep.mubr.msk.bf16.mxu0 %vm1438_vm3, %v7663_v6 }
 0x343   :  { %5940 = vmatprep.subr.bf16.mxu0 %v9033_v38 }
 0x347   :  { %5913 = vmatmul.mubr.msk.bf16.vlgmr.msra.gmra.mxu1 %vm1438_vm3, %v6076_v0 }
 0x348   :  { %5923 = vmatpush3.bf16.msra.mxu1 %v9032_v29  ;;  %5924 = vmatprep.mubr.msk.bf16.mxu1 %vm1438_vm3, %v7663_v6 }
 0x349   :  { %5931 = vmatmul.mubr.msk.bf16.vlgmr.msra.gmra.mxu0 %vm1438_vm3, %v6076_v0  ;;  %5934 = vmatprep.subr.bf16.mxu1 %v9034_v58 }
 0x34a   :  { %5941 = vmatpush3.bf16.msra.mxu0 %v9033_v38  ;;  %5942 = vmatprep.mubr.msk.bf16.mxu0 %vm1438_vm3, %v7663_v6 }
 0x34f   :  { %5925 = vmatmul.mubr.msk.bf16.vlgmr.msra.gmra.mxu1 %vm1438_vm3, %v6076_v0 }
 0x350   :  { %5935 = vmatpush3.bf16.msra.mxu1 %v9034_v58  ;;  %5936 = vmatprep.mubr.msk.bf16.mxu1 %vm1438_vm3, %v7663_v6 }
 0x351   :  { %5946 = vmatprep.subr.bf16.mxu1 %v9035_v21  ;;  %5943 = vmatmul.mubr.msk.bf16.vlgmr.msra.gmra.mxu0 %vm1438_vm3, %v6076_v0 }
 0x352   :  { %5620 = vmatprep.mubr.msk.bf16.mxu0 %vm392_vm2, %v7778_v57 }
 0x357   :  { %5937 = vmatmul.mubr.msk.bf16.vlgmr.msra.gmra.mxu1 %vm1438_vm3, %v6076_v0 }
 0x358   :  { %5947 = vmatpush3.bf16.msra.mxu1 %v9035_v21  ;;  %5948 = vmatprep.mubr.msk.bf16.mxu1 %vm1438_vm3, %v7663_v6 }
 0x35f   :  { %5949 = vmatmul.mubr.msk.bf16.vlgmr.msra.gmra.mxu1 %vm1438_vm3, %v6076_v0 }
 0x360   :  { %5638 = vmatprep.mubr.msk.bf16.mxu1 %vm392_vm2, %v7778_v57 }
 0x38f   :  { %v2889_v2 = vpop.f32.mrf.mxu0 }
 0x390   :  { %3027 = vst [vmem:[%s8899_s8] sm:$0xff] %v2889_v2 }
 0x391   :  { %v2891_v59 = vpop.f32.mrf.mxu0 }
 0x392   :  { %3028 = vst [vmem:[%s8899_s8 + $0x8] sm:$0xff] %v2891_v59  ;;  %v3043_v50 = vadd.f32 %v2891_v59, %v2889_v2 }
 0x393   :  { %v2893_v8 = vpop.f32.mrf.mxu0 }
 0x394   :  { %3035 = vst [vmem:[%s8899_s8 + $0x40] sm:$0xff] %v2893_v8 }
 0x395   :  { %v2895_v46 = vpop.f32.mrf.mxu0 }
 0x396   :  { %3036 = vst [vmem:[%s8899_s8 + $0x48] sm:$0xff] %v2895_v46  ;;  %v3052_v13 = vadd.f32 %v2895_v46, %v2893_v8 }
 0x39f   :  { %v2932_v12 = vpop.f32.mrf.mxu1 }
 0x3a0   :  { %3029 = vst [vmem:[%s8899_s8 + $0x10] sm:$0xff] %v2932_v12  ;;  %v3044_v53 = vadd.f32 %v3043_v50, %v2932_v12 }
 0x3a1   :  { %v2934_v9 = vpop.f32.mrf.mxu1 }
 0x3a2   :  { %3030 = vst [vmem:[%s8899_s8 + $0x18] sm:$0xff] %v2934_v9  ;;  %v3045_v55 = vadd.f32 %v3044_v53, %v2934_v9 }
 0x3a3   :  { %v2936_v60 = vpop.f32.mrf.mxu1 }
 0x3a4   :  { %3037 = vst [vmem:[%s8899_s8 + $0x50] sm:$0xff] %v2936_v60  ;;  %v3053_v62 = vadd.f32 %v3052_v13, %v2936_v60 }
 0x3a5   :  { %v2938_v22 = vpop.f32.mrf.mxu1 }
 0x3a6   :  { %3038 = vst [vmem:[%s8899_s8 + $0x58] sm:$0xff] %v2938_v22  ;;  %v3054_v3 = vadd.f32 %v3053_v62, %v2938_v22 }
 0x3d0   :  { %v2975_v14 = vpop.f32.mrf.mxu0 }
 0x3d1   :  { %3031 = vst [vmem:[%s8899_s8 + $0x20] sm:$0xff] %v2975_v14  ;;  %v3046_v10 = vadd.f32 %v3045_v55, %v2975_v14 }
 0x3d2   :  { %v2977_v61 = vpop.f32.mrf.mxu0 }
 0x3d3   :  { %3032 = vst [vmem:[%s8899_s8 + $0x28] sm:$0xff] %v2977_v61  ;;  %v3047_v51 = vadd.f32 %v3046_v10, %v2977_v61 }
 0x3d4   :  { %v2979_v32 = vpop.f32.mrf.mxu0 }
 0x3d5   :  { %3039 = vst [vmem:[%s8899_s8 + $0x60] sm:$0xff] %v2979_v32  ;;  %v3055_v26 = vadd.f32 %v3054_v3, %v2979_v32 }
 0x3d6   :  { %v2981_v24 = vpop.f32.mrf.mxu0 }
 0x3d7   :  { %3040 = vst [vmem:[%s8899_s8 + $0x68] sm:$0xff] %v2981_v24  ;;  %v3056_v49 = vadd.f32 %v3055_v26, %v2981_v24 }
 0x3d8   :  { %v7796_v19 = vpop.f32.mrf.mxu0 }
 0x3da   :  { %v7798_v42 = vpop.f32.mrf.mxu0 }
 0x3dc   :  { %v7800_v7 = vpop.f32.mrf.mxu0 }
 0x3dd   :  { %v4354_v39 = vpack.c.bf16 %v7800_v7, %v7796_v19 }
 0x3de   :  { %v7804_v18 = vpop.f32.mrf.mxu0 }
 0x3df   :  { %v3018_v44 = vpop.f32.mrf.mxu1  ;;  %v4353_v4 = vpack.c.bf16 %v7804_v18, %v7798_v42 }
 0x3e0   :  { %3033 = vst [vmem:[%s8899_s8 + $0x30] sm:$0xff] %v3018_v44  ;;  %v3048_v48 = vadd.f32 %v3047_v51, %v3018_v44  ;;  %v7887_v44 = vmul.f32 0.516129, %v7796_v19 }
 0x3e1   :  { %v3020_v63 = vpop.f32.mrf.mxu1  ;;  %v7811_v45 = vpop.f32.mrf.mxu0 }
 0x3e2   :  { %3034 = vst [vmem:[%s8899_s8 + $0x38] sm:$0xff] %v3020_v63  ;;  %v3049_v43 = vadd.f32 %v3048_v48, %v3020_v63  ;;  %v4021_v21 = vmul.f32 0.4516129, %v7811_v45  ;;  %v4005_v48 = vmul.f32 0.032258064, %v7796_v19 }
 0x3e3   :  { %v3022_v35 = vpop.f32.mrf.mxu1  ;;  %v7816_v41 = vpop.f32.mrf.mxu0  ;;  %v7891_v63 = vmul.f32 0.516129, %v7798_v42 }
 0x3e4   :  { %3041 = vst [vmem:[%s8899_s8 + $0x70] sm:$0xff] %v3022_v35  ;;  %v3057_v30 = vadd.f32 %v3056_v49, %v3022_v35  ;;  %3050 = vadd.xlane.f32.xlu0 %v3049_v43  ;;  %v4031_v6 = vmul.f32 0.9354839, %v7816_v41  ;;  %v7894_v49 = vmul.f32 0.032258064, %v7798_v42 }
 0x3e5   :  { %v3024_v17 = vpop.f32.mrf.mxu1  ;;  %v7821_v47 = vpop.f32.mrf.mxu0  ;;  %9040 = vst [vmem:[#allocation20_spill] sm:$0xff] %v7891_v63 }
 0x3e6   :  { %3042 = vst [vmem:[%s8899_s8 + $0x78] sm:$0xff] %v3024_v17  ;;  %v3058_v56 = vadd.f32 %v3057_v30, %v3024_v17  ;;  %v4022_v50 = vmul.f32 0.4516129, %v7821_v47  ;;  %v7947_v19 = vmul.f32 0.9354839, %v7821_v47 }
 0x3e7   :  { %v7826_v34 = vpop.f32.mrf.mxu1  ;;  %v7828_v15 = vpop.f32.mrf.mxu0 }
 0x3e8   :  { %3059 = vadd.xlane.f32.xlu0 %v3058_v56  ;;  %v4017_v59 = vmul.f32 0.5483871, %v7826_v34  ;;  %v4020_v35 = vmul.f32 0.4516129, %v7828_v15  ;;  %9046 = vst [vmem:[#allocation28_spill] sm:$0xff] %v7947_v19 }
 0x3e9   :  { %v7830_v54 = vpop.f32.mrf.mxu1  ;;  %v7832_v25 = vpop.f32.mrf.mxu0 }
 0x3ea   :  { %v4027_v37 = vmul.f32 0.06451613, %v7830_v54  ;;  %v4069_v38 = vmul.f32 0.38709676, %v7832_v25  ;;  %v4025_v55 = vadd.f32 %v4021_v21, %v4017_v59  ;;  %v4015_v43 = vmul.f32 0.5483871, %v7830_v54 }
 0x3eb   :  { %v7836_v23 = vpop.f32.mrf.mxu1  ;;  %v7838_v5 = vpop.f32.mrf.mxu0  ;;  %v7913_v21 = vmul.f32 0.032258064, %v7804_v18  ;;  %v4054_v59 = vmul.f32 0.09677419, %v7821_v47 }
 0x3ec   :  { %v7840_v27 = vadd.f32 %v4031_v6, %v4027_v37  ;;  %v4018_v40 = vmul.f32 0.5483871, %v7836_v23  ;;  %v4067_v53 = vmul.f32 0.38709676, %v7838_v5  ;;  %v7903_v37 = vmul.f32 0.516129, %v7800_v7 }
 0x3ed   :  { %v7842_v0 = vpop.f32.mrf.mxu1  ;;  %v7844_v20 = vpop.f32.mrf.mxu0  ;;  %v4006_v6 = vmul.f32 0.032258064, %v7800_v7 }
 0x3ee   :  { %9037 = vst [vmem:[#allocation26_spill] sm:$0xff] %v7840_v27  ;;  %v4070_v58 = vmul.f32 0.38709676, %v7844_v20  ;;  %v4026_v14 = vadd.f32 %v4022_v50, %v4018_v40  ;;  %v4016_v3 = vmul.f32 0.5483871, %v7842_v0 }
 0x3ef   :  { %v7846_v31 = vpop.f32.mrf.mxu1  ;;  %v7848_v33 = vpop.f32.mrf.mxu0 }
 0x3f0   :  { %9038 = vst [vmem:[#allocation29_spill] sm:$0xff] %v7848_v33  ;;  %v4065_v29 = vmul.f32 0.61290324, %v7846_v31  ;;  %v4068_v22 = vmul.f32 0.38709676, %v7848_v33  ;;  %v4360_v26 = vpack.c.bf16 %v4026_v14, %v4025_v55  ;;  %v7932_v14 = vsel %vm392_vm2, %v4354_v39, 0 }
 0x3f1   :  { %v7850_v1 = vpop.f32.mrf.mxu1  ;;  %v7852_v36 = vpop.f32.mrf.mxu0  ;;  %v4057_v50 = vmul.f32 0.9032258, %v7846_v31  ;;  %9044 = vst [vmem:[#allocation25_spill] sm:$0xff] %v7932_v14  ;;  %v7942_v55 = vsel %vm392_vm2, %v4353_v4, 0  ;;  %v7950_v39 = vmul.f32 0.48387095, %v7826_v34 }
 0x3f2   :  { %v4073_v9 = vadd.f32 %v4069_v38, %v4065_v29  ;;  %v4063_v60 = vmul.f32 0.61290324, %v7850_v1  ;;  %v4019_v29 = vmul.f32 0.4516129, %v7816_v41  ;;  %v4447_v38 = vsel %vm392_vm2, %v4360_v26, 0  ;;  %9045 = vst [vmem:[#allocation27_spill] sm:$0xff] %v7942_v55 }
 0x3f3   :  { %v7854_v52 = vpop.f32.mrf.mxu1  ;;  %v7856_v28 = vpop.f32.mrf.mxu0  ;;  %v7954_v26 = vmul.f32 0.58064514, %v7821_v47  ;;  %v4007_v4 = vmul.f32 0.9677419, %v7830_v54  ;;  %v4117_v57 = vmul.f32 0.32258064, %v7852_v36 }
 0x3f4   :  { %9039 = vst [vmem:[#allocation22_spill] sm:$0xff] %v7854_v52  ;;  %v4066_v11 = vmul.f32 0.61290324, %v7854_v52  ;;  %v4071_v51 = vadd.f32 %v4067_v53, %v4063_v60  ;;  %v4058_v40 = vmul.f32 0.9032258, %v7854_v52 }
 0x3f5   :  { %v7860_v16 = vpop.f32.mrf.mxu1  ;;  %v7871_v13 = vpop.f32.mrf.mxu0  ;;  %v4053_v53 = vmul.f32 0.09677419, %v7811_v45 }
 0x3f6   :  { %v4074_v8 = vadd.f32 %v4070_v58, %v4066_v11  ;;  %v4064_v46 = vmul.f32 0.61290324, %v7860_v16  ;;  %v7908_v11 = vmul.f32 0.516129, %v7804_v18  ;;  %v4024_v58 = vadd.f32 %v4020_v35, %v4016_v3 }
 0x3f7   :  { %v7866_v2 = vpop.f32.mrf.mxu1  ;;  %v7880_v62 = vpop.f32.mrf.mxu0  ;;  %v4051_v3 = vmul.f32 0.09677419, %v7816_v41  ;;  %v4061_v42 = vadd.f32 %v4057_v50, %v4053_v53  ;;  %v7957_v18 = vmul.f32 0.06451613, %v7826_v34  ;;  %v4056_v47 = vmul.f32 0.9032258, %v7860_v16 }
 0x3f8   :  { %v4072_v32 = vadd.f32 %v4068_v22, %v4064_v46  ;;  %v4368_v24 = vpack.c.bf16 %v4074_v8, %v4073_v9  ;;  %9042 = vst [vmem:[#allocation21_spill] sm:$0xff] %v7908_v11  ;;  %v7918_v8 = vmul.f32 0.9354839, %v7811_v45  ;;  %v7921_v46 = vmul.f32 0.58064514, %v7811_v45 }
 0x3f9   :  { %v7873_v12 = vpop.f32.mrf.mxu1  ;;  %v7900_v17 = vpop.f32.mrf.mxu0  ;;  %v4023_v22 = vadd.f32 %v4019_v29, %v4015_v43  ;;  %v4009_v45 = vmul.f32 0.9677419, %v7826_v34  ;;  %9047 = vst [vmem:[#allocation31_spill] sm:$0xff] %v7957_v18  ;;  %v4055_v50 = vmul.f32 0.9032258, %v7850_v1 }
 0x3fa   :  { %5986 = vmatprep.subr.msk.bf16.mxu0 %vm392_vm2, %v4368_v24  ;;  %9041 = vst [vmem:[#allocation23_spill] sm:$0xff] %v7900_v17  ;;  %v4367_v56 = vpack.c.bf16 %v4072_v32, %v4071_v51  ;;  %9043 = vst [vmem:[#allocation19_spill] sm:$0xff] %v7918_v8  ;;  %v7936_v32 = vmul.f32 0.58064514, %v7816_v41  ;;  %v4062_v24 = vadd.f32 %v4058_v40, %v4054_v59  ;;  %v4010_v51 = vmul.f32 0.9677419, %v7836_v23 }
 0x3fb   :  { %v7877_v61 = vpop.f32.mrf.mxu1  ;;  %5605 = vmatpush3.bf16.xpose.msra.mxu0 %v4447_v38  ;;  %v7925_v60 = vpop.f32.mrf.mxu0  ;;  %v4359_v7 = vpack.c.bf16 %v4024_v58, %v4023_v22  ;;  %v7961_v41 = vmul.f32 0.9354839, %v7828_v15  ;;  %v4052_v40 = vmul.f32 0.09677419, %v7828_v15  ;;  %v4165_v34 = vmul.f32 0.2580645, %v7900_v17 }
 0x3fc   :  { %5987 = vmatprep.subr.msk.bf16.mxu0 %vm392_vm2, %v4367_v56  ;;  %v4008_v56 = vmul.f32 0.9677419, %v7842_v0  ;;  %v4366_v29 = vpack.c.bf16 %v4062_v24, %v4061_v42  ;;  %v4014_v59 = vadd.f32 %v4010_v51, %v4006_v6  ;;  %v4113_v22 = vmul.f32 0.67741936, %v7866_v2 }
 0x3fd   :  { %v7882_v10 = vpop.f32.mrf.mxu1  ;;  %9048 = vst [vmem:[#allocation36_spill] sm:$0xff] %v7961_v41  ;;  %v7965_v35 = vpop.f32.mrf.mxu0  ;;  %v4444_v58 = vsel %vm392_vm2, %v4359_v7, 0  ;;  %v4114_v53 = vmul.f32 0.67741936, %v7877_v61  ;;  %v4013_v6 = vadd.f32 %v4009_v45, %v4005_v48  ;;  %v4046_v51 = vmul.f32 0.41935483, %v7854_v52 }
 0x3fe   :  { %9049 = vst [vmem:[#allocation33_spill] sm:$0xff] %v7965_v35  ;;  %v4166_v24 = vmul.f32 0.2580645, %v7965_v35  ;;  %v4118_v7 = vmul.f32 0.32258064, %v7871_v13  ;;  %v4059_v63 = vadd.f32 %v4055_v50, %v4051_v3  ;;  %v4121_v52 = vadd.f32 %v4117_v57, %v4113_v22 }
 0x3ff   :  { %v7898_v30 = vpop.f32.mrf.mxu1  ;;  %v7982_v14 = vpop.f32.mrf.mxu0  ;;  %v4358_v8 = vpack.c.bf16 %v4014_v59, %v4013_v6  ;;  %v4163_v18 = vmul.f32 0.2580645, %v7925_v60  ;;  %v4112_v48 = vmul.f32 0.67741936, %v7882_v10  ;;  %v4111_v11 = vmul.f32 0.67741936, %v7873_v12 }
 0x400   :  { %v4161_v38 = vmul.f32 0.7419355, %v7898_v30  ;;  %v4122_v19 = vadd.f32 %v4118_v7, %v4114_v53  ;;  %v4116_v33 = vmul.f32 0.32258064, %v7880_v62  ;;  %v4012_v59 = vadd.f32 %v4008_v56, %v7913_v21 }
 0x401   :  { %v7923_v9 = vpop.f32.mrf.mxu1  ;;  %v7999_v3 = vmul.f32 0.48387095, %v7830_v54  ;;  %v4045_v57 = vmul.f32 0.41935483, %v7846_v31  ;;  %v3998_v21 = vmul.f32 0.48387095, %v7836_v23 }
 0x402   :  { %v4159_v27 = vmul.f32 0.7419355, %v7923_v9  ;;  %v4169_v17 = vadd.f32 %v4165_v34, %v4161_v38  ;;  %v4376_v38 = vpack.c.bf16 %v4122_v19, %v4121_v52  ;;  %v4011_v52 = vadd.f32 %v4007_v4, %v7894_v49  ;;  %v8026_v4 = vpop.f32.mrf.mxu0 }
 0x403   :  { %v7963_v43 = vpop.f32.mrf.mxu1  ;;  %5607 = vmatpush3.bf16.xpose.msra.mxu0 %v4444_v58  ;;  %v4060_v58 = vadd.f32 %v4056_v47, %v4052_v40  ;;  %v8009_v54 = vmul.f32 0.06451613, %v7836_v23  ;;  %v4050_v19 = vadd.f32 %v4046_v51, %v7954_v26  ;;  %v4153_v56 = vmul.f32 0.7741935, %v7898_v30  ;;  %9051 = vst [vmem:[#allocation32_spill] sm:$0xff] %v8026_v4 }
 0x404   :  { %v4162_v55 = vmul.f32 0.7419355, %v7963_v43  ;;  %5988 = vmatprep.subr.msk.bf16.mxu0 %vm392_vm2, %v4366_v29  ;;  %v4164_v29 = vmul.f32 0.2580645, %v7982_v14  ;;  %v4167_v40 = vadd.f32 %v4163_v18, %v4159_v27  ;;  %v4154_v18 = vmul.f32 0.7741935, %v7963_v43 }
 0x405   :  { %v7980_v42 = vpop.f32.mrf.mxu1  ;;  %v4365_v34 = vpack.c.bf16 %v4060_v58, %v4059_v63  ;;  %v4120_v63 = vadd.f32 %v4116_v33, %v4112_v48  ;;  %v4357_v50 = vpack.c.bf16 %v4012_v59, %v4011_v52  ;;  %v3996_v33 = vmul.f32 0.48387095, %v7842_v0 }
 0x406   :  { %v4170_v41 = vadd.f32 %v4166_v24, %v4162_v55  ;;  %v4160_v35 = vmul.f32 0.7419355, %v7980_v42  ;;  %v4441_v55 = vsel %vm392_vm2, %v4358_v8, 0  ;;  %v4040_v8 = vmul.f32 0.58064514, %v7828_v15 }
 0x407   :  { %v7996_v53 = vpop.f32.mrf.mxu1  ;;  %v8020_v23 = vmul.f32 0.06451613, %v7842_v0  ;;  %v4049_v15 = vadd.f32 %v4045_v57, %v7921_v46  ;;  %v8024_v26 = vmul.f32 0.87096775, %v7832_v25  ;;  %v4149_v24 = vmul.f32 0.22580644, %v7852_v36 }
 0x408   :  { %v4384_v45 = vpack.c.bf16 %v4170_v41, %v4169_v17  ;;  %v4168_v47 = vadd.f32 %v4164_v29, %v4160_v35  ;;  %9050 = vst [vmem:[#allocation30_spill] sm:$0xff] %v7996_v53  ;;  %v4115_v17 = vmul.f32 0.32258064, %v7856_v28  ;;  %v4495_v41 = vsel %vm392_vm2, %v4376_v38, 0 }
 0x409   :  { %v4150_v35 = vmul.f32 0.22580644, %v7871_v13  ;;  %v8016_v49 = vpop.f32.mrf.mxu1  ;;  %v4106_v6 = vmul.f32 0.83870965, %v7877_v61  ;;  %v4102_v7 = vmul.f32 0.16129032, %v7844_v20  ;;  %v4157_v29 = vadd.f32 %v4153_v56, %v4149_v24 }
 0x40a   :  { %5994 = vmatprep.subr.msk.bf16.mxu1 %vm392_vm2, %v4384_v45  ;;  %v4383_v27 = vpack.c.bf16 %v4168_v47, %v4167_v40  ;;  %v4119_v22 = vadd.f32 %v4115_v17, %v4111_v11  ;;  %v4044_v58 = vmul.f32 0.41935483, %v7860_v16  ;;  %v4105_v0 = vmul.f32 0.83870965, %v7866_v2 }
 0x40b   :  { %5609 = vmatpush3.bf16.xpose.msra.mxu0 %v4441_v55  ;;  %5623 = vmatpush3.bf16.xpose.msra.mxu1 %v4495_v41  ;;  %v4158_v51 = vadd.f32 %v4154_v18, %v4150_v35  ;;  %v4438_v46 = vsel %vm392_vm2, %v4357_v50, 0  ;;  %v4364_v48 = vpack.c.bf16 %v4050_v19, %v4049_v15  ;;  %v4002_v45 = vadd.f32 %v3998_v21, %v7903_v37  ;;  %v8035_v40 = vpop.f32.mrf.mxu1 }
 0x40c   :  { %5989 = vmatprep.subr.msk.bf16.mxu0 %vm392_vm2, %v4365_v34  ;;  %5995 = vmatprep.subr.msk.bf16.mxu1 %vm392_vm2, %v4383_v27  ;;  %v4375_v11 = vpack.c.bf16 %v4120_v63, %v4119_v22  ;;  %v4101_v47 = vmul.f32 0.16129032, %v7832_v25  ;;  %v4043_v55 = vmul.f32 0.41935483, %v7850_v1  ;;  %v4152_v38 = vmul.f32 0.7741935, %v7980_v42  ;;  %v8040_v34 = vpop.f32.mrf.mxu0 }
 0x40d   :  { %v4382_v57 = vpack.c.bf16 %v4158_v51, %v4157_v29  ;;  %v4001_v17 = vadd.f32 %v7950_v39, %v7887_v44  ;;  %v4110_v37 = vadd.f32 %v4106_v6, %v4102_v7  ;;  %v8047_v27 = vmul.f32 0.6451613, %v7832_v25  ;;  %v8054_v56 = vpop.f32.mrf.mxu1 }
 0x40e   :  { %v4492_v59 = vsel %vm392_vm2, %v4375_v11, 0  ;;  %v4048_v18 = vadd.f32 %v4044_v58, %v4040_v8  ;;  %v4148_v41 = vmul.f32 0.22580644, %v7880_v62  ;;  %v4219_v52 = vmul.f32 0.32258064, %v8016_v49  ;;  %v8064_v50 = vpop.f32.mrf.mxu0  ;;  %v9053_v11 = vld [vmem:[#allocation29_spill] sm:$0xff] }
 0x40f   :  { %v4151_v63 = vmul.f32 0.7741935, %v7923_v9  ;;  %v4356_v21 = vpack.c.bf16 %v4002_v45, %v4001_v17  ;;  %v4109_v19 = vadd.f32 %v4105_v0, %v4101_v47  ;;  %v4223_v35 = vmul.f32 0.67741936, %v8040_v34  ;;  %v8069_v51 = vpop.f32.mrf.mxu1 }
 0x410   :  { %v8057_v44 = vmul.f32 0.12903225, %v7846_v31  ;;  %v4047_v25 = vadd.f32 %v4043_v55, %v7936_v32  ;;  %v8061_v39 = vmul.f32 0.87096775, %v7838_v5  ;;  %v4147_v8 = vmul.f32 0.22580644, %v7856_v28 }
 0x411   :  { %v4104_v22 = vmul.f32 0.83870965, %v7882_v10  ;;  %v4156_v15 = vadd.f32 %v4152_v38, %v4148_v41  ;;  %v4374_v24 = vpack.c.bf16 %v4110_v37, %v4109_v19  ;;  %v8067_v6 = vadd.f32 %v4223_v35, %v4219_v52 }
 0x412   :  { %v8072_v31 = vmul.f32 0.12903225, %v7850_v1  ;;  %v4100_v32 = vmul.f32 0.16129032, %v9053_v11  ;;  %v4103_v7 = vmul.f32 0.83870965, %v7873_v12  ;;  %v4155_v58 = vadd.f32 %v4151_v63, %v4147_v8  ;;  %v8083_v1 = vpop.f32.mrf.mxu0 }
 0x413   :  { %5611 = vmatpush3.bf16.xpose.msra.mxu0 %v4438_v46  ;;  %5625 = vmatpush3.bf16.xpose.msra.mxu1 %v4492_v59  ;;  %9052 = vst [vmem:[#allocation35_spill] sm:$0xff] %v8067_v6  ;;  %v4435_v0 = vsel %vm392_vm2, %v4356_v21, 0  ;;  %v4363_v29 = vpack.c.bf16 %v4048_v18, %v4047_v25  ;;  %v9054_v46 = vld [vmem:[#allocation21_spill] sm:$0xff]  ;;  %v8079_v45 = vmul.f32 0.6451613, %v7838_v5  ;;  %v4489_v38 = vsel %vm392_vm2, %v4374_v24, 0 }
 0x414   :  { %5990 = vmatprep.subr.msk.bf16.mxu0 %vm392_vm2, %v4364_v48  ;;  %5996 = vmatprep.subr.msk.bf16.mxu1 %vm392_vm2, %v4382_v57  ;;  %v4000_v48 = vadd.f32 %v3996_v33, %v9054_v46  ;;  %v4099_v47 = vmul.f32 0.16129032, %v7838_v5  ;;  %v4142_v55 = vmul.f32 0.29032257, %v7963_v43  ;;  %v4381_v59 = vpack.c.bf16 %v4156_v15, %v4155_v58  ;;  %v9055_v57 = vld [vmem:[#allocation20_spill] sm:$0xff]  ;;  %v8089_v33 = vpop.f32.mrf.mxu1  ;;  %v9057_v5 = vld [vmem:[#allocation22_spill] sm:$0xff] }
 0x415   :  { %v3999_v17 = vadd.f32 %v7999_v3, %v9055_v57  ;;  %v4108_v37 = vadd.f32 %v4104_v22, %v4100_v32  ;;  %v9056_v18 = vld [vmem:[#allocation28_spill] sm:$0xff]  ;;  %v8094_v52 = vmul.f32 0.12903225, %v9057_v5  ;;  %v8097_v63 = vmul.f32 0.87096775, %v7844_v20  ;;  %v9058_v8 = vld [vmem:[#allocation31_spill] sm:$0xff]  ;;  %v8112_v32 = vpop.f32.mrf.mxu0 }
 0x416   :  { %v4038_v41 = vadd.f32 %v9056_v18, %v8009_v54  ;;  %v4090_v21 = vmul.f32 0.6451613, %v7844_v20  ;;  %v4138_v19 = vmul.f32 0.7096774, %v7871_v13  ;;  %v4141_v35 = vmul.f32 0.29032257, %v7898_v30 }
 0x417   :  { %v4355_v3 = vpack.c.bf16 %v4000_v48, %v3999_v17  ;;  %v4107_v25 = vadd.f32 %v4103_v7, %v4099_v47  ;;  %v9059_v22 = vld [vmem:[#allocation19_spill] sm:$0xff]  ;;  %v8106_v15 = vmul.f32 0.12903225, %v7860_v16  ;;  %v8109_v24 = vmul.f32 0.87096775, %v9053_v11  ;;  %v8116_v7 = vpop.f32.mrf.mxu1 }
 0x418   :  { %v4037_v54 = vadd.f32 %v9059_v22, %v9058_v8  ;;  %v4094_v20 = vmul.f32 0.3548387, %v7877_v61  ;;  %v4088_v58 = vmul.f32 0.6451613, %v9053_v11  ;;  %v4093_v48 = vmul.f32 0.3548387, %v7866_v2 }
 0x419   :  { %v4373_v46 = vpack.c.bf16 %v4108_v37, %v4107_v25  ;;  %v4125_v16 = vmul.f32 0.19354838, %v7866_v2  ;;  %v4129_v47 = vmul.f32 0.8064516, %v7852_v36  ;;  %v4432_v57 = vsel %vm392_vm2, %v4355_v3, 0  ;;  %v8132_v2 = vpop.f32.mrf.mxu0 }
 0x41a   :  { %v4362_v17 = vpack.c.bf16 %v4038_v41, %v4037_v54  ;;  %v8126_v11 = vmul.f32 0.19354838, %v7873_v12  ;;  %v4140_v37 = vmul.f32 0.29032257, %v7980_v42  ;;  %v4098_v18 = vadd.f32 %v4094_v20, %v4090_v21 }
 0x41b   :  { %5613 = vmatpush3.bf16.xpose.msra.mxu0 %v4435_v0  ;;  %5627 = vmatpush3.bf16.xpose.msra.mxu1 %v4489_v38  ;;  %v4137_v0 = vmul.f32 0.7096774, %v7852_v36  ;;  %v8122_v38 = vmul.f32 0.3548387, %v7873_v12  ;;  %v4135_v36 = vmul.f32 0.7096774, %v7856_v28  ;;  %v8138_v12 = vpop.f32.mrf.mxu1  ;;  %v4097_v21 = vadd.f32 %v4093_v48, %v8047_v27 }
 0x41c   :  { %5991 = vmatprep.subr.msk.bf16.mxu0 %vm392_vm2, %v4363_v29  ;;  %5997 = vmatprep.subr.msk.bf16.mxu1 %vm392_vm2, %v4381_v59  ;;  %v4146_v29 = vadd.f32 %v4142_v55, %v4138_v19  ;;  %v8129_v55 = vmul.f32 0.8064516, %v7856_v28  ;;  %v4126_v5 = vmul.f32 0.19354838, %v7877_v61  ;;  %v4486_v19 = vsel %vm392_vm2, %v4373_v46, 0  ;;  %v9060_v28 = vld [vmem:[#allocation36_spill] sm:$0xff] }
 0x41d   :  { %v4145_v59 = vadd.f32 %v4141_v35, %v4137_v0  ;;  %v4130_v35 = vmul.f32 0.8064516, %v7871_v13  ;;  %v4136_v3 = vmul.f32 0.7096774, %v7880_v62  ;;  %v4139_v25 = vmul.f32 0.29032257, %v7923_v9  ;;  %v8166_v48 = vpop.f32.mrf.mxu1 }
 0x41e   :  { %v4036_v8 = vadd.f32 %v9060_v28, %v8020_v23  ;;  %v4092_v61 = vmul.f32 0.3548387, %v7882_v10  ;;  %v8148_v22 = vmul.f32 0.19354838, %v7882_v10  ;;  %v8151_v54 = vmul.f32 0.8064516, %v7880_v62 }
 0x41f   :  { %v4380_v41 = vpack.c.bf16 %v4146_v29, %v4145_v59  ;;  %v4144_v13 = vadd.f32 %v4140_v37, %v4136_v3  ;;  %v4372_v20 = vpack.c.bf16 %v4098_v18, %v4097_v21  ;;  %v4257_v0 = vmul.f32 0.87096775, %v8069_v51  ;;  %v8155_v29 = vpop.f32.mrf.mxu0  ;;  %v9063_v3 = vld [vmem:[#allocation25_spill] sm:$0xff] }
 0x420   :  { %v8159_v27 = vadd.f32 %v8024_v26, %v8057_v44  ;;  %v8161_v23 = vadd.f32 %v4129_v47, %v4125_v16  ;;  %v4261_v10 = vmul.f32 0.12903225, %v8112_v32  ;;  %v4258_v46 = vmul.f32 0.87096775, %v8116_v7  ;;  %v9062_v47 = vld [vmem:[#allocation26_spill] sm:$0xff] }
 0x421   :  { %v4262_v62 = vmul.f32 0.12903225, %v8155_v29  ;;  %v8169_v59 = vmul.f32 0.2580645, %v7898_v30  ;;  %v4143_v26 = vadd.f32 %v4139_v25, %v4135_v36  ;;  %v8181_v16 = vmul.f32 0.2580645, %v7923_v9 }
 0x422   :  { %v4361_v18 = vpack.c.bf16 %v4036_v8, %v9062_v47  ;;  %v8189_v30 = vmul.f32 0.7419355, %v7925_v60  ;;  %v4483_v36 = vsel %vm392_vm2, %v4372_v20, 0  ;;  %v4265_v9 = vadd.f32 %v4261_v10, %v4257_v0 }
 0x423   :  { %5615 = vmatpush3.bf16.xpose.msra.mxu0 %v4432_v57  ;;  %5629 = vmatpush3.bf16.xpose.msra.mxu1 %v4486_v19  ;;  %v9061_v57 = vld [vmem:[#allocation23_spill] sm:$0xff]  ;;  %v8186_v19 = vadd.f32 %v8097_v63, %v8094_v52  ;;  %v4379_v25 = vpack.c.bf16 %v4144_v13, %v4143_v26  ;;  %v4266_v21 = vadd.f32 %v4262_v62, %v4258_v46  ;;  %v8197_v52 = vpop.f32.mrf.mxu1  ;;  %v4210_v47 = vmul.f32 0.8064516, %v8035_v40 }
 0x424   :  { %5992 = vmatprep.subr.msk.bf16.mxu0 %vm392_vm2, %v4362_v17  ;;  %5998 = vmatprep.subr.msk.bf16.mxu1 %vm392_vm2, %v4380_v41  ;;  %v8172_v17 = vmul.f32 0.7419355, %v9061_v57  ;;  %v8175_v37 = vmul.f32 0.7741935, %v9061_v57  ;;  %v8178_v44 = vmul.f32 0.29032257, %v9061_v57  ;;  %v4096_v28 = vadd.f32 %v4092_v61, %v4088_v58 }
 0x425   :  { %v4209_v41 = vmul.f32 0.8064516, %v7996_v53  ;;  %9064 = vst [vmem:[#allocation34_spill] sm:$0xff] %v8197_v52  ;;  %v4134_v63 = vadd.f32 %v4130_v35, %v4126_v5  ;;  %v4213_v57 = vmul.f32 0.19354838, %v8026_v4  ;;  %v4095_v5 = vadd.f32 %v8122_v38, %v8079_v45  ;;  %v8214_v35 = vpop.f32.mrf.mxu0  ;;  %v9065_v61 = vld [vmem:[#allocation33_spill] sm:$0xff] }
 0x426   :  { %v8203_v13 = vmul.f32 0.7741935, %v7925_v60  ;;  %v8206_v20 = vmul.f32 0.29032257, %v7925_v60  ;;  %v8209_v58 = vmul.f32 0.2580645, %v7963_v43  ;;  %v8225_v60 = vadd.f32 %v8061_v39, %v8072_v31 }
 0x427   :  { %v8217_v0 = vmul.f32 0.7419355, %v9065_v61  ;;  %v8220_v10 = vmul.f32 0.7741935, %v9065_v61  ;;  %v4255_v46 = vmul.f32 0.87096775, %v8089_v33  ;;  %v4371_v62 = vpack.c.bf16 %v4096_v28, %v4095_v5 }
 0x428   :  { %v4259_v43 = vmul.f32 0.12903225, %v8132_v2  ;;  %v4400_v26 = vpack.c.bf16 %v4266_v21, %v4265_v9  ;;  %v8232_v45 = vadd.f32 %v8109_v24, %v8106_v15  ;;  %v4256_v38 = vmul.f32 0.87096775, %v8138_v12 }
 0x429   :  { %v4198_v6 = vmul.f32 0.29032257, %v9065_v61  ;;  %v8238_v39 = vmul.f32 0.2580645, %v7980_v42  ;;  %v8241_v31 = vmul.f32 0.7419355, %v7982_v14 }
 0x42a   :  { %v8246_v15 = vmul.f32 0.7741935, %v7982_v14  ;;  %v4196_v24 = vmul.f32 0.29032257, %v7982_v14  ;;  %v8250_v21 = vmul.f32 0.22580644, %v7996_v53  ;;  %v4263_v14 = vadd.f32 %v4259_v43, %v4255_v46  ;;  %v8272_v43 = vpop.f32.mrf.mxu0 }
 0x42b   :  { %5617 = vmatpush3.bf16.xpose.msra.mxu0 %v9063_v3  ;;  %v4214_v3 = vmul.f32 0.19354838, %v8064_v50  ;;  %5631 = vmatpush3.bf16.xpose.msra.mxu1 %v4483_v36  ;;  %v4260_v36 = vmul.f32 0.12903225, %v8214_v35  ;;  %9066 = vst [vmem:[#allocation3_spill] sm:$0xff] %v8238_v39  ;;  %9067 = vst [vmem:[#allocation4_spill] sm:$0xff] %v8241_v31 }
 0x42c   :  { %5993 = vmatprep.subr.msk.bf16.mxu0 %vm392_vm2, %v4361_v18  ;;  %5999 = vmatprep.subr.msk.bf16.mxu1 %vm392_vm2, %v4379_v25  ;;  %v8228_v18 = vpop.f32.mrf.mxu1  ;;  %v4217_v25 = vadd.f32 %v4213_v57, %v4209_v41  ;;  %v9068_v41 = vld [vmem:[#allocation27_spill] sm:$0xff]  ;;  %v4201_v28 = vmul.f32 0.7096774, %v7996_v53  ;;  %v4207_v42 = vmul.f32 0.8064516, %v8016_v49  ;;  %v4480_v57 = vsel %vm392_vm2, %v4371_v62, 0 }
 0x42d   :  { %v4218_v8 = vadd.f32 %v4214_v3, %v4210_v47  ;;  %v4378_v47 = vpack.c.bf16 %v4134_v63, %v8161_v23  ;;  %v4211_v5 = vmul.f32 0.19354838, %v8040_v34  ;;  %v4264_v61 = vadd.f32 %v4260_v36, %v4256_v38 }
 0x42e   :  { %v8258_v3 = vpop.f32.mrf.mxu1  ;;  %v4208_v53 = vmul.f32 0.8064516, %v8054_v56  ;;  %v4212_v31 = vmul.f32 0.19354838, %v8083_v1  ;;  %v4131_v23 = vadd.f32 %v8129_v55, %v8126_v11  ;;  %v8268_v63 = vmul.f32 0.83870965, %v8026_v4 }
 0x42f   :  { %9069 = vst [vmem:[#allocation6_spill] sm:$0xff] %v8258_v3  ;;  %v4392_v9 = vpack.c.bf16 %v4218_v8, %v4217_v25  ;;  %v4245_v62 = vmul.f32 0.3548387, %v8026_v4  ;;  %v4187_v46 = vmul.f32 0.22580644, %v8016_v49  ;;  %v4132_v8 = vadd.f32 %v8151_v54, %v8148_v22  ;;  %v9071_v4 = vld [vmem:[#allocation24_spill] sm:$0xff] }
 0x430   :  { %9070 = vst [vmem:[#allocation5_spill] sm:$0xff] %v8268_v63  ;;  %v4246_v38 = vmul.f32 0.3548387, %v8064_v50  ;;  %v4200_v36 = vmul.f32 0.7096774, %v8054_v56  ;;  %v8279_v25 = vpop.f32.mrf.mxu1  ;;  %v4215_v63 = vadd.f32 %v4211_v5, %v4207_v42  ;;  %v4216_v22 = vadd.f32 %v4212_v31, %v4208_v53 }
 0x431   :  { %v4249_v11 = vmul.f32 0.6451613, %v8069_v51  ;;  %v4250_v55 = vmul.f32 0.6451613, %v8116_v7  ;;  %v4243_v39 = vmul.f32 0.3548387, %v8040_v34  ;;  %v4377_v31 = vpack.c.bf16 %v4132_v8, %v4131_v23 }
 0x432   :  { %v4190_v3 = vmul.f32 0.22580644, %v8035_v40  ;;  %v8294_v52 = vmul.f32 0.83870965, %v8064_v50  ;;  %v4188_v53 = vmul.f32 0.22580644, %v8054_v56  ;;  %v4391_v8 = vpack.c.bf16 %v4216_v22, %v4215_v63 }
 0x433   :  { %5619 = vmatpush3.bf16.xpose.msra.mxu0 %v9068_v41  ;;  %5633 = vmatpush3.bf16.xpose.msra.mxu1 %v4480_v57  ;;  %v4202_v41 = vmul.f32 0.7096774, %v8035_v40  ;;  %v4543_v57 = vsel %vm392_vm2, %v4392_v9, 0  ;;  %v8296_v9 = vpop.f32.mrf.mxu0  ;;  %v4253_v5 = vadd.f32 %v4249_v11, %v4245_v62  ;;  %v4269_v23 = vmul.f32 0.38709676, %v8069_v51 }
 0x434   :  { %6002 = vmatprep.subr.msk.bf16.mxu0 %vm392_vm2, %v4400_v26  ;;  %6000 = vmatprep.subr.msk.bf16.mxu1 %vm392_vm2, %v4378_v47  ;;  %v4199_v26 = vmul.f32 0.7096774, %v8016_v49  ;;  %v4399_v47 = vpack.c.bf16 %v4264_v61, %v4263_v14  ;;  %v8287_v49 = vadd.f32 %v4201_v28, %v8178_v44  ;;  %v9072_v44 = vpack.c.bf16 %v8186_v19, %v8159_v27  ;;  %v8306_v28 = vpop.f32.mrf.mxu1 }
 0x435   :  { %v8289_v54 = vadd.f32 %v4202_v41, %v4198_v6  ;;  %v4254_v14 = vadd.f32 %v4250_v55, %v4246_v38  ;;  %v8313_v41 = vadd.f32 %v4200_v36, %v4196_v24  ;;  %v4244_v27 = vmul.f32 0.3548387, %v8083_v1 }
 0x436   :  { %v4477_v6 = vsel %vm392_vm2, %v9072_v44, 0  ;;  %v8311_v61 = vadd.f32 %v4199_v26, %v8206_v20  ;;  %v8317_v19 = vmul.f32 0.16129032, %v8069_v51  ;;  %v4305_v62 = vmul.f32 0.9354839, %v8166_v48  ;;  %v8324_v20 = vpop.f32.mrf.mxu0  ;;  %v8330_v11 = vpop.f32.mrf.mxu1 }
 0x437   :  { %v4390_v42 = vpack.c.bf16 %v8289_v54, %v8287_v49  ;;  %v4306_v38 = vmul.f32 0.9354839, %v8228_v18  ;;  %v4309_v26 = vmul.f32 0.06451613, %v8272_v43  ;;  %v4310_v36 = vmul.f32 0.06451613, %v8324_v20 }
 0x438   :  { %v8334_v51 = vadd.f32 %v8250_v21, %v8175_v37  ;;  %v8337_v63 = vadd.f32 %v4190_v3, %v8220_v10  ;;  %v4273_v55 = vmul.f32 0.61290324, %v8112_v32  ;;  %v4416_v22 = vpack.c.bf16 %v8330_v11, %v8279_v25 }
 0x439   :  { %v4398_v49 = vpack.c.bf16 %v4254_v14, %v4253_v5  ;;  %v4540_v54 = vsel %vm392_vm2, %v4391_v8, 0  ;;  %v8350_v37 = vadd.f32 %v4188_v53, %v8246_v15  ;;  %v4267_v21 = vmul.f32 0.38709676, %v8089_v33 }
 0x43a   :  { %5621 = vmatmul.mubr.msk.bf16.vlgmr.msra.gmra.mxu0 %vm392_vm2, %v9071_v4  ;;  %v4271_v3 = vmul.f32 0.61290324, %v8132_v2  ;;  %v4313_v14 = vadd.f32 %v4309_v26, %v4305_v62  ;;  %v4314_v8 = vadd.f32 %v4310_v36, %v4306_v38  ;;  %v4238_v15 = vmul.f32 0.16129032, %v8116_v7  ;;  %v9075_v26 = vld [vmem:[#allocation6_spill] sm:$0xff] }
 0x43b   :  { %5641 = vmatpush3.bf16.xpose.msra.mxu0 %v4543_v57  ;;  %5656 = vmatprep.mubr.msk.bf16.mxu0 %vm392_vm2, %v9071_v4  ;;  %v4247_v57 = vmul.f32 0.6451613, %v8089_v33  ;;  %v8372_v53 = vadd.f32 %v8217_v0, %v8209_v58  ;;  %v4268_v62 = vmul.f32 0.38709676, %v8138_v12  ;;  %v4272_v38 = vmul.f32 0.61290324, %v8214_v35 }
 0x43c   :  { %6003 = vmatprep.subr.msk.bf16.mxu0 %vm392_vm2, %v4399_v47  ;;  %5635 = vmatpush3.bf16.xpose.msra.mxu1 %v4477_v6  ;;  %v4248_v47 = vmul.f32 0.6451613, %v8138_v12  ;;  %v8347_v6 = vadd.f32 %v4187_v46, %v8203_v13  ;;  %v4270_v46 = vmul.f32 0.38709676, %v8116_v7  ;;  %v9074_v7 = vld [vmem:[#allocation34_spill] sm:$0xff]  ;;  %v9076_v58 = vld [vmem:[#allocation3_spill] sm:$0xff]  ;;  %v8402_v44 = vadd.f32 %v4271_v3, %v4267_v21 }
 0x43d   :  { %6001 = vmatprep.subr.msk.bf16.mxu1 %vm392_vm2, %v4377_v31  ;;  %v4251_v10 = vadd.f32 %v4247_v57, %v4243_v39  ;;  %v9073_v31 = vpack.c.bf16 %v8232_v45, %v8225_v60  ;;  %v8363_v39 = vadd.f32 %v8172_v17, %v8169_v59  ;;  %v4274_v60 = vmul.f32 0.61290324, %v8155_v29  ;;  %v8368_v45 = vpop.f32.mrf.mxu0  ;;  %v9077_v0 = vld [vmem:[#allocation4_spill] sm:$0xff] }
 0x43e   :  { %v4252_v57 = vadd.f32 %v4248_v47, %v4244_v27  ;;  %v8379_v59 = vadd.f32 %v8189_v30, %v8181_v16  ;;  %v4303_v17 = vmul.f32 0.9354839, %v9074_v7  ;;  %v4304_v36 = vmul.f32 0.9354839, %v9075_v26 }
 0x43f   :  { %v4474_v5 = vsel %vm392_vm2, %v9073_v31, 0  ;;  %v8387_v27 = vadd.f32 %v9077_v0, %v9076_v58  ;;  %v4307_v47 = vmul.f32 0.06451613, %v8296_v9  ;;  %v8391_v31 = vadd.f32 %v4273_v55, %v4269_v23  ;;  %v8400_v58 = vpop.f32.mrf.mxu1 }
 0x440   :  { %v4341_v16 = vmul.f32 0.48387095, %v8272_v43  ;;  %v4342_v30 = vmul.f32 0.48387095, %v8324_v20  ;;  %v8397_v13 = vadd.f32 %v4274_v60, %v4270_v46  ;;  %v4397_v0 = vpack.c.bf16 %v4252_v57, %v4251_v10  ;;  %v9078_v46 = vld [vmem:[#allocation5_spill] sm:$0xff] }
 0x441   :  { %v8404_v24 = vadd.f32 %v4272_v38, %v4268_v62  ;;  %v4345_v23 = vmul.f32 0.516129, %v8279_v25  ;;  %v4346_v55 = vmul.f32 0.516129, %v8330_v11  ;;  %v4311_v10 = vadd.f32 %v4307_v47, %v4303_v17 }
 0x442   :  { %v4241_v60 = vadd.f32 %v8317_v19, %v9078_v46  ;;  %v4242_v57 = vadd.f32 %v4238_v15, %v8294_v52  ;;  %v4293_v62 = vmul.f32 0.41935483, %v8112_v32  ;;  %v4294_v38 = vmul.f32 0.41935483, %v8155_v29 }
 0x443   :  { %5643 = vmatpush3.bf16.xpose.msra.mxu0 %v4540_v54  ;;  %v4308_v54 = vmul.f32 0.06451613, %v8368_v45  ;;  %v4401_v3 = vpack.c.bf16 %v8404_v24, %v8402_v44  ;;  %v4297_v17 = vmul.f32 0.58064514, %v8166_v48  ;;  %v4350_v47 = vadd.f32 %v4346_v55, %v4342_v30 }
 0x444   :  { %6004 = vmatprep.subr.msk.bf16.mxu0 %vm392_vm2, %v4398_v49  ;;  %5637 = vmatpush3.bf16.xpose.msra.mxu1 %v4474_v5  ;;  %v4385_v5 = vpack.c.bf16 %v8387_v27, %v8379_v59  ;;  %v4537_v49 = vsel %vm392_vm2, %v4390_v42, 0  ;;  %v4235_v19 = vmul.f32 0.16129032, %v8089_v33  ;;  %v4236_v52 = vmul.f32 0.16129032, %v8138_v12  ;;  %v6077_v59 = vld [vmem:[%s8898_s5] sm:$0xff]  }
 0x445   :  { %6010 = vmatprep.subr.msk.bf16.mxu1 %vm392_vm2, %v4416_v22  ;;  %v4408_v22 = vpack.c.bf16 %v4314_v8, %v4313_v14  ;;  %v4415_v14 = vpack.c.bf16 %v8400_v58, %v8306_v28  ;;  %v4402_v8 = vpack.c.bf16 %v8397_v13, %v8391_v31  ;;  %v4312_v21 = vadd.f32 %v4308_v54, %v4304_v36 }
 0x446   :  { %v4298_v36 = vmul.f32 0.58064514, %v8228_v18  ;;  %v4339_v15 = vmul.f32 0.48387095, %v8296_v9  ;;  %v4340_v30 = vmul.f32 0.48387095, %v8368_v45  ;;  %v4301_v12 = vadd.f32 %v4297_v17, %v4293_v62 }
 0x447   :  { %v4591_v42 = vsel %vm392_vm2, %v4408_v22, 0  ;;  %v4407_v54 = vpack.c.bf16 %v4312_v21, %v4311_v10  ;;  %v4232_v22 = vmul.f32 0.83870965, %v8083_v1  ;;  %v4292_v21 = vmul.f32 0.41935483, %v8214_v35  ;;  %v9081_v62 = vld [vmem:[#allocation32_spill] sm:$0xff] }
 0x448   :  { %v4302_v55 = vadd.f32 %v4298_v36, %v4294_v38  ;;  %v4295_v46 = vmul.f32 0.58064514, %v9074_v7  ;;  %v4225_v38 = vmul.f32 0.67741936, %v9081_v62  ;;  %v4222_v17 = vmul.f32 0.32258064, %v8035_v40 }
 0x449   :  { %v4226_v36 = vmul.f32 0.67741936, %v8064_v50 }
 0x44b   :  { %5645 = vmatpush3.bf16.xpose.msra.mxu0 %v4537_v49  ;;  %5639 = vmatmul.mubr.msk.bf16.vlgmr.msra.gmra.mxu1 %vm392_vm2, %v9071_v4  ;;  %v4349_v49 = vadd.f32 %v4345_v23, %v4341_v16  ;;  %v4343_v16 = vmul.f32 0.516129, %v8306_v28  ;;  %v4588_v23 = vsel %vm392_vm2, %v4407_v54, 0 }
 0x44c   :  { %6005 = vmatprep.subr.msk.bf16.mxu0 %vm392_vm2, %v4397_v0  ;;  %5659 = vmatpush3.bf16.xpose.msra.mxu1 %v4591_v42  ;;  %v9079_v0 = vpack.c.bf16 %v8313_v41, %v8311_v61  ;;  %v4396_v42 = vpack.c.bf16 %v4242_v57, %v4241_v60  ;;  %v4240_v61 = vadd.f32 %v4236_v52, %v4232_v22  ;;  %v4291_v41 = vmul.f32 0.41935483, %v8132_v2 }
 0x44d   :  { %5674 = vmatprep.mubr.msk.bf16.mxu1 %vm392_vm2, %v9071_v4  ;;  %6011 = vmatprep.subr.msk.bf16.mxu1 %vm392_vm2, %v4415_v14  ;;  %v4231_v4 = vmul.f32 0.83870965, %v8040_v34  ;;  %v4344_v34 = vmul.f32 0.516129, %v8400_v58  ;;  %v4414_v33 = vpack.c.bf16 %v4350_v47, %v4349_v49  ;;  %v4296_v60 = vmul.f32 0.58064514, %v9075_v26 }
 0x44e   :  { %v4534_v14 = vsel %vm392_vm2, %v9079_v0, 0  ;;  %v4347_v57 = vadd.f32 %v4343_v16, %v4339_v15  ;;  %v4406_v0 = vpack.c.bf16 %v4302_v55, %v4301_v12  ;;  %v4329_v47 = vmul.f32 0.9677419, %v8272_v43 }
 0x44f   :  { %v4239_v10 = vadd.f32 %v4235_v19, %v4231_v4  ;;  %v4348_v54 = vadd.f32 %v4344_v34, %v4340_v30  ;;  %v9082_v4 = vpack.c.bf16 %v8337_v63, %v8334_v51  ;;  %v4330_v52 = vmul.f32 0.9677419, %v8324_v20 }
 0x450   :  { %v4333_v15 = vmul.f32 0.032258064, %v8279_v25  ;;  %v4585_v16 = vsel %vm392_vm2, %v4406_v0, 0  ;;  %v4299_v50 = vadd.f32 %v4295_v46, %v4291_v41  ;;  %v4300_v30 = vadd.f32 %v4296_v60, %v4292_v21 }
 0x451   :  { %v4531_v22 = vsel %vm392_vm2, %v9082_v4, 0  ;;  %v4395_v19 = vpack.c.bf16 %v4240_v61, %v4239_v10  ;;  %v4413_v40 = vpack.c.bf16 %v4348_v54, %v4347_v57  ;;  %v4230_v51 = vadd.f32 %v4226_v36, %v4222_v17  ;;  %v9085_v4 = vld [vmem:[#allocation35_spill] sm:$0xff] }
 0x452   :  { %v4281_v63 = vmul.f32 0.9032258, %v8112_v32  ;;  %v4285_v25 = vmul.f32 0.09677419, %v8166_v48  ;;  %v4405_v55 = vpack.c.bf16 %v4300_v30, %v4299_v50  ;;  %v4220_v10 = vmul.f32 0.32258064, %v8054_v56 }
 0x453   :  { %5647 = vmatpush3.bf16.xpose.msra.mxu0 %v4534_v14  ;;  %v9080_v14 = vld [vmem:[#allocation30_spill] sm:$0xff]  ;;  %v4224_v61 = vmul.f32 0.67741936, %v8083_v1  ;;  %v4327_v41 = vmul.f32 0.9677419, %v8296_v9  ;;  %v9083_v21 = vpack.c.bf16 %v8350_v37, %v8347_v6  ;;  %v9084_v36 = vpack.c.bf16 %v8372_v53, %v8363_v39 }
 0x454   :  { %6006 = vmatprep.subr.msk.bf16.mxu0 %vm392_vm2, %v4396_v42  ;;  %5661 = vmatpush3.bf16.xpose.msra.mxu1 %v4588_v23  ;;  %v4221_v49 = vmul.f32 0.32258064, %v9080_v14  ;;  %v4334_v42 = vmul.f32 0.032258064, %v8330_v11  ;;  %v4282_v23 = vmul.f32 0.9032258, %v8155_v29  ;;  %v4289_v1 = vadd.f32 %v4285_v25, %v4281_v63 }
 0x455   :  { %6012 = vmatprep.subr.msk.bf16.mxu1 %vm392_vm2, %v4414_v33  ;;  %v4286_v11 = vmul.f32 0.09677419, %v8228_v18  ;;  %v4337_v33 = vadd.f32 %v4333_v15, %v4329_v47  ;;  %v4528_v32 = vsel %vm392_vm2, %v9083_v21, 0  ;;  %v4331_v29 = vmul.f32 0.032258064, %v8306_v28 }
 0x456   :  { %v4229_v34 = vadd.f32 %v4225_v38, %v4221_v49  ;;  %v4338_v12 = vadd.f32 %v4334_v42, %v4330_v52  ;;  %v4328_v60 = vmul.f32 0.9677419, %v8368_v45  ;;  %v4332_v57 = vmul.f32 0.032258064, %v8400_v58 }
 0x457   :  { %v4582_v54 = vsel %vm392_vm2, %v4405_v55, 0  ;;  %v4290_v0 = vadd.f32 %v4286_v11, %v4282_v23  ;;  %v4228_v14 = vadd.f32 %v4224_v61, %v4220_v10  ;;  %v4279_v6 = vmul.f32 0.9032258, %v8132_v2 }
 0x458   :  { %v4394_v46 = vpack.c.bf16 %v4230_v51, %v4229_v34  ;;  %v4412_v56 = vpack.c.bf16 %v4338_v12, %v4337_v33  ;;  %v4280_v28 = vmul.f32 0.9032258, %v8214_v35  ;;  %v4283_v37 = vmul.f32 0.09677419, %v9074_v7 }
 0x459   :  { %v4284_v58 = vmul.f32 0.09677419, %v9075_v26  ;;  %v4335_v49 = vadd.f32 %v4331_v29, %v4327_v41  ;;  %v4336_v62 = vadd.f32 %v4332_v57, %v4328_v60  ;;  %v4404_v38 = vpack.c.bf16 %v4290_v0, %v4289_v1 }
 0x45a   :  { %v4317_v17 = vmul.f32 0.4516129, %v8166_v48  ;;  %v4525_v47 = vsel %vm392_vm2, %v9084_v36, 0  ;;  %v4318_v2 = vmul.f32 0.4516129, %v8228_v18  ;;  %v4287_v48 = vadd.f32 %v4283_v37, %v4279_v6  ;;  %v8582_v36 = vld [vmem:[%s8899_s8 + $0x10] sm:$0xff] }
 0x45b   :  { %5649 = vmatpush3.bf16.xpose.msra.mxu0 %v4531_v22  ;;  %v4393_v22 = vpack.c.bf16 %v4228_v14, %v9085_v4  ;;  %v4321_v35 = vmul.f32 0.5483871, %v8272_v43  ;;  %v4579_v52 = vsel %vm392_vm2, %v4404_v38, 0  ;;  %v4411_v15 = vpack.c.bf16 %v4336_v62, %v4335_v49  ;;  %v8572_v38 = vld [vmem:[%s8899_s8] sm:$0xff] }
 0x45c   :  { %6007 = vmatprep.subr.msk.bf16.mxu0 %vm392_vm2, %v4395_v19  ;;  %5663 = vmatpush3.bf16.xpose.msra.mxu1 %v4585_v16  ;;  %v4322_v19 = vmul.f32 0.5483871, %v8324_v20  ;;  %v4288_v42 = vadd.f32 %v4284_v58, %v4280_v28  ;;  %v4522_v18 = vsel %vm392_vm2, %v4385_v5, 0  ;;  %v4315_v43 = vmul.f32 0.4516129, %v9074_v7 }
 0x45d   :  { %6013 = vmatprep.subr.msk.bf16.mxu1 %vm392_vm2, %v4413_v40  ;;  %v4325_v39 = vadd.f32 %v4321_v35, %v4317_v17  ;;  %v4316_v20 = vmul.f32 0.4516129, %v9075_v26  ;;  %v4319_v40 = vmul.f32 0.5483871, %v8296_v9  ;;  %v4320_v50 = vmul.f32 0.5483871, %v8368_v45 }
 0x45e   :  { %v4326_v53 = vadd.f32 %v4322_v19, %v4318_v2  ;;  %v4403_v16 = vpack.c.bf16 %v4288_v42, %v4287_v48  ;;  %v4573_v9 = vsel %vm392_vm2, %v4402_v8, 0  ;;  %v4570_v7 = vsel %vm392_vm2, %v4401_v3, 0  ;;  %v8577_v17 = vld [vmem:[%s8899_s8 + $0x8] sm:$0xff]  ;;  %v8593_v19 = vld [vmem:[%s8899_s8 + $0x18] sm:$0xff] }
 0x45f   :  { %v4323_v51 = vadd.f32 %v4319_v40, %v4315_v43  ;;  %v4324_v63 = vadd.f32 %v4320_v50, %v4316_v20  ;;  %v8618_v50 = vld [vmem:[%s8899_s8 + $0x30] sm:$0xff] }
 0x460   :  { %v4576_v30 = vsel %vm392_vm2, %v4403_v16, 0  ;;  %v4410_v34 = vpack.c.bf16 %v4326_v53, %v4325_v39  ;;  %v8605_v39 = vld [vmem:[%s8899_s8 + $0x28] sm:$0xff] }
 0x461   :  { %v4409_v45 = vpack.c.bf16 %v4324_v63, %v4323_v51  ;;  %v8627_v51 = vld [vmem:[%s8899_s8 + $0x38] sm:$0xff] }
 0x463   :  { %5651 = vmatpush3.bf16.xpose.msra.mxu0 %v4528_v32 }
 0x464   :  { %6008 = vmatprep.subr.msk.bf16.mxu0 %vm392_vm2, %v4394_v46  ;;  %5665 = vmatpush3.bf16.xpose.msra.mxu1 %v4582_v54 }
 0x465   :  { %6014 = vmatprep.subr.msk.bf16.mxu1 %vm392_vm2, %v4412_v56 }
 0x46b   :  { %5653 = vmatpush3.bf16.xpose.msra.mxu0 %v4525_v47 }
 0x46c   :  { %6009 = vmatprep.subr.msk.bf16.mxu0 %vm392_vm2, %v4393_v22  ;;  %5667 = vmatpush3.bf16.xpose.msra.mxu1 %v4579_v52  ;;  %v8598_v52 = vld [vmem:[%s8899_s8 + $0x20] sm:$0xff] }
 0x46d   :  { %6015 = vmatprep.subr.msk.bf16.mxu1 %vm392_vm2, %v4411_v15  ;;  %v3051_v28 = vpop.xlane.xlu0 %3050 }
 0x471   :  { %v3060_v47 = vpop.xlane.xlu0 %3059 }
 0x473   :  { %5655 = vmatpush3.bf16.xpose.msra.mxu0 %v4522_v18 }
 0x474   :  { %5669 = vmatpush3.bf16.xpose.msra.mxu1 %v4576_v30 }
 0x475   :  { %6016 = vmatprep.subr.msk.bf16.mxu1 %vm392_vm2, %v4410_v34 }
 0x47a   :  { %5657 = vmatmul.mubr.msk.bf16.vlgmr.msra.gmra.mxu0 %vm392_vm2, %v6077_v59 }
 0x47c   :  { %5671 = vmatpush3.bf16.xpose.msra.mxu1 %v4573_v9 }
 0x47d   :  { %6017 = vmatprep.subr.msk.bf16.mxu1 %vm392_vm2, %v4409_v45 }
 0x484   :  { %5673 = vmatpush3.bf16.xpose.msra.mxu1 %v4570_v7 }
 0x48b   :  { %5675 = vmatmul.mubr.msk.bf16.vlgmr.msra.gmra.mxu1 %vm392_vm2, %v6077_v59 }
 0x4fa   :  { %v8519_v26 = vpop.f32.mrf.mxu0 }
 0x4fc   :  { %v8521_v27 = vpop.f32.mrf.mxu0 }
 0x4fd   :  { %v4806_v31 = vadd.f32 %v8521_v27, %v8519_v26 }
 0x4fe   :  { %v8523_v5 = vpop.f32.mrf.mxu0 }
 0x500   :  { %v8529_v8 = vpop.f32.mrf.mxu0 }
 0x501   :  { %v4815_v25 = vadd.f32 %v8529_v8, %v8523_v5 }
 0x50b   :  { %v8525_v13 = vpop.f32.mrf.mxu1 }
 0x50c   :  { %v4807_v44 = vadd.f32 %v4806_v31, %v8525_v13 }
 0x50d   :  { %v8531_v23 = vpop.f32.mrf.mxu1 }
 0x50e   :  { %v4808_v33 = vadd.f32 %v4807_v44, %v8531_v23 }
 0x50f   :  { %v8536_v3 = vpop.f32.mrf.mxu1 }
 0x510   :  { %v4816_v12 = vadd.f32 %v4815_v25, %v8536_v3 }
 0x511   :  { %v8544_v55 = vpop.f32.mrf.mxu1 }
 0x512   :  { %v4817_v41 = vadd.f32 %v4816_v12, %v8544_v55 }
 0x53a   :  { %v8533_v24 = vpop.f32.mrf.mxu0 }
 0x53b   :  { %v4809_v10 = vadd.f32 %v4808_v33, %v8533_v24 }
 0x53c   :  { %v8540_v11 = vpop.f32.mrf.mxu0 }
 0x53d   :  { %v4810_v21 = vadd.f32 %v4809_v10, %v8540_v11 }
 0x53e   :  { %v8547_v61 = vpop.f32.mrf.mxu0 }
 0x53f   :  { %v4818_v32 = vadd.f32 %v4817_v41, %v8547_v61  ;;  %v8640_v41 = vld [vmem:[%s8899_s8 + $0x40] sm:$0xff] }
 0x540   :  { %v8554_v29 = vpop.f32.mrf.mxu0 }
 0x541   :  { %v4819_v54 = vadd.f32 %v4818_v32, %v8554_v29 }
 0x54b   :  { %v8552_v46 = vpop.f32.mrf.mxu1 }
 0x54c   :  { %v4811_v60 = vadd.f32 %v4810_v21, %v8552_v46  ;;  %v8645_v21 = vld [vmem:[%s8899_s8 + $0x48] sm:$0xff] }
 0x54d   :  { %v8557_v57 = vpop.f32.mrf.mxu1 }
 0x54e   :  { %v4812_v56 = vadd.f32 %v4811_v60, %v8557_v57 }
 0x54f   :  { %v8561_v1 = vpop.f32.mrf.mxu1 }
 0x550   :  { %v4820_v0 = vadd.f32 %v4819_v54, %v8561_v1  ;;  %4813 = vadd.xlane.f32.xlu1 %v4812_v56  ;;  %v8650_v54 = vld [vmem:[%s8899_s8 + $0x50] sm:$0xff] }
 0x551   :  { %v8564_v14 = vpop.f32.mrf.mxu1 }
 0x552   :  { %v4821_v6 = vadd.f32 %v4820_v0, %v8564_v14 }
 0x554   :  { %4822 = vadd.xlane.f32.xlu1 %v4821_v6 }
 0x5d9   :  { %v4814_v37 = vpop.xlane.xlu1 %4813 }
 0x5da   :  { %v4824_v58 = vadd.f32 %v4814_v37, %v3051_v28 }
 0x5dc   :  { %v8567_v49 = vmul.f32 0.00048828125, %v4824_v58 }
 0x5dd   :  { %v4823_v62 = vpop.xlane.xlu1 %4822 }
 0x5de   :  { %v4844_v4 = vsub.f32 %v8572_v38, %v8567_v49  ;;  %v4845_v22 = vsub.f32 %v8577_v17, %v8567_v49  ;;  %v4846_v2 = vsub.f32 %v8582_v36, %v8567_v49  ;;  %v4825_v35 = vadd.f32 %v4823_v62, %v3060_v47 }
 0x5df   :  { %v4847_v15 = vsub.f32 %v8593_v19, %v8567_v49  ;;  %v4848_v53 = vsub.f32 %v8598_v52, %v8567_v49  ;;  %v4849_v16 = vsub.f32 %v8605_v39, %v8567_v49  ;;  %v4912_v20 = vsub.f32 %v8519_v26, %v8567_v49 }
 0x5e0   :  { %v4860_v48 = vmul.f32 %v4844_v4, %v4844_v4  ;;  %v4861_v42 = vmul.f32 %v4845_v22, %v4845_v22  ;;  %v4862_v18 = vmul.f32 %v4846_v2, %v4846_v2  ;;  %v8613_v40 = vmul.f32 0.00048828125, %v4825_v35  ;;  %v8665_v2 = vld [vmem:[%s8899_s8 + $0x58] sm:$0xff] }
 0x5e1   :  { %v4913_v30 = vsub.f32 %v8521_v27, %v8567_v49  ;;  %v4914_v34 = vsub.f32 %v8525_v13, %v8567_v49  ;;  %v4850_v63 = vsub.f32 %v8618_v50, %v8567_v49  ;;  %v4863_v59 = vmul.f32 %v4847_v15, %v4847_v15  ;;  %v8670_v15 = vld [vmem:[%s8899_s8 + $0x60] sm:$0xff] }
 0x5e2   :  { %v4876_v43 = vadd.f32 %v4861_v42, %v4860_v48  ;;  %v4851_v45 = vsub.f32 %v8627_v51, %v8567_v49  ;;  %v4915_v7 = vsub.f32 %v8531_v23, %v8567_v49  ;;  %v4928_v31 = vmul.f32 %v4912_v20, %v4912_v20 }
 0x5e3   :  { %v4929_v44 = vmul.f32 %v4913_v30, %v4913_v30  ;;  %v4864_v25 = vmul.f32 %v4848_v53, %v4848_v53  ;;  %v4865_v33 = vmul.f32 %v4849_v16, %v4849_v16  ;;  %v4916_v10 = vsub.f32 %v8533_v24, %v8567_v49 }
 0x5e4   :  { %v4877_v9 = vadd.f32 %v4876_v43, %v4862_v18  ;;  %v4930_v32 = vmul.f32 %v4914_v34, %v4914_v34  ;;  %v4852_v56 = vsub.f32 %v8640_v41, %v8613_v40  ;;  %v4853_v0 = vsub.f32 %v8645_v21, %v8613_v40 }
 0x5e5   :  { %v4944_v60 = vadd.f32 %v4929_v44, %v4928_v31  ;;  %v4866_v6 = vmul.f32 %v4850_v63, %v4850_v63  ;;  %v4917_v37 = vsub.f32 %v8540_v11, %v8567_v49  ;;  %v4854_v58 = vsub.f32 %v8650_v54, %v8613_v40  ;;  %v8681_v63 = vld [vmem:[%s8899_s8 + $0x68] sm:$0xff] }
 0x5e6   :  { %v4878_v12 = vadd.f32 %v4877_v9, %v4863_v59  ;;  %v4867_v62 = vmul.f32 %v4851_v45, %v4851_v45  ;;  %v4918_v47 = vsub.f32 %v8552_v46, %v8567_v49  ;;  %v4931_v4 = vmul.f32 %v4915_v7, %v4915_v7 }
 0x5e7   :  { %v4945_v22 = vadd.f32 %v4944_v60, %v4930_v32  ;;  %v4855_v48 = vsub.f32 %v8665_v2, %v8613_v40  ;;  %v4868_v42 = vmul.f32 %v4852_v56, %v4852_v56  ;;  %v4869_v53 = vmul.f32 %v4853_v0, %v4853_v0 }
 0x5e8   :  { %v4879_v28 = vadd.f32 %v4878_v12, %v4864_v25  ;;  %v4919_v16 = vsub.f32 %v8557_v57, %v8567_v49  ;;  %v4932_v18 = vmul.f32 %v4916_v10, %v4916_v10  ;;  %v4856_v20 = vsub.f32 %v8670_v15, %v8613_v40 }
 0x5e9   :  { %v4946_v43 = vadd.f32 %v4945_v22, %v4931_v4  ;;  %v4933_v34 = vmul.f32 %v4917_v37, %v4917_v37  ;;  %v4870_v59 = vmul.f32 %v4854_v58, %v4854_v58  ;;  %v4885_v9 = vadd.f32 %v4869_v53, %v4868_v42 }
 0x5ea   :  { %v4880_v35 = vadd.f32 %v4879_v28, %v4865_v33  ;;  %v4857_v7 = vsub.f32 %v8681_v63, %v8613_v40  ;;  %v4920_v31 = vsub.f32 %v8523_v5, %v8613_v40  ;;  %v4921_v44 = vsub.f32 %v8529_v8, %v8613_v40  ;;  %v8692_v33 = vld [vmem:[%s8899_s8 + $0x70] sm:$0xff]  ;;  %v8701_v28 = vld [vmem:[%s8899_s8 + $0x78] sm:$0xff] }
 0x5eb   :  { %v4947_v45 = vadd.f32 %v4946_v43, %v4932_v18  ;;  %v4871_v12 = vmul.f32 %v4855_v48, %v4855_v48  ;;  %v4886_v10 = vadd.f32 %v4885_v9, %v4870_v59  ;;  %v4922_v32 = vsub.f32 %v8536_v3, %v8613_v40 }
 0x5ec   :  { %v4881_v30 = vadd.f32 %v4880_v35, %v4866_v6  ;;  %v4934_v60 = vmul.f32 %v4918_v47, %v4918_v47  ;;  %v4858_v0 = vsub.f32 %v8692_v33, %v8613_v40  ;;  %v4872_v6 = vmul.f32 %v4856_v20, %v4856_v20 }
 0x5ed   :  { %v4948_v56 = vadd.f32 %v4947_v45, %v4933_v34  ;;  %v4887_v37 = vadd.f32 %v4886_v10, %v4871_v12  ;;  %v4923_v58 = vsub.f32 %v8544_v55, %v8613_v40  ;;  %v4937_v4 = vmul.f32 %v4921_v44, %v4921_v44 }
 0x5ee   :  { %v4882_v25 = vadd.f32 %v4881_v30, %v4867_v62  ;;  %v4936_v62 = vmul.f32 %v4920_v31, %v4920_v31  ;;  %v4935_v22 = vmul.f32 %v4919_v16, %v4919_v16  ;;  %v4859_v47 = vsub.f32 %v8701_v28, %v8613_v40 }
 0x5ef   :  { %v4949_v35 = vadd.f32 %v4948_v56, %v4934_v60  ;;  %v4873_v48 = vmul.f32 %v4857_v7, %v4857_v7  ;;  %v4888_v42 = vadd.f32 %v4887_v37, %v4872_v6  ;;  %v4924_v53 = vsub.f32 %v8547_v61, %v8613_v40 }
 0x5f0   :  { %4883 = vadd.xlane.f32.xlu0 %v4882_v25  ;;  %v4938_v18 = vmul.f32 %v4922_v32, %v4922_v32  ;;  %v4953_v43 = vadd.f32 %v4937_v4, %v4936_v62  ;;  %v4874_v30 = vmul.f32 %v4858_v0, %v4858_v0  ;;  %v4925_v59 = vsub.f32 %v8554_v29, %v8613_v40 }
 0x5f1   :  { %v4950_v20 = vadd.f32 %v4949_v35, %v4935_v22  ;;  %v4889_v34 = vadd.f32 %v4888_v42, %v4873_v48  ;;  %v4939_v9 = vmul.f32 %v4923_v58, %v4923_v58  ;;  %v4875_v16 = vmul.f32 %v4859_v47, %v4859_v47 }
 0x5f2   :  { %v4954_v45 = vadd.f32 %v4953_v43, %v4938_v18  ;;  %v4926_v7 = vsub.f32 %v8561_v1, %v8613_v40  ;;  %v4940_v44 = vmul.f32 %v4924_v53, %v4924_v53  ;;  %v4927_v10 = vsub.f32 %v8564_v14, %v8613_v40 }
 0x5f3   :  { %v4890_v31 = vadd.f32 %v4889_v34, %v4874_v30  ;;  %v4941_v32 = vmul.f32 %v4925_v59, %v4925_v59  ;;  %v6078_v62 = vmov 0   ;;  %v4964_v30 = vld [vmem:[%s8900_s6] sm:$0xff] }
 0x5f4   :  { %4951 = vadd.xlane.f32.xlu0 %v4950_v20  ;;  %v4955_v25 = vadd.f32 %v4954_v45, %v4939_v9  ;;  %v4942_v56 = vmul.f32 %v4926_v7, %v4926_v7  ;;  %v4943_v6 = vmul.f32 %v4927_v10, %v4927_v10  ;;  %6020 = vset.pattern.permute.xlu1 %v6078_v62  ;;  %v4965_v9 = vld [vmem:[%s8900_s6 + $0x8] sm:$0xff]  ;;  %v4974_v7 = vld [vmem:[%s8901_s7] sm:$0xff] }
 0x5f5   :  { %v4891_v12 = vadd.f32 %v4890_v31, %v4875_v16  ;;  %6019 = vset.pattern.permute.xlu0 %v6078_v62 }
 0x5f6   :  { %v4956_v60 = vadd.f32 %v4955_v25, %v4940_v44 }
 0x5f7   :  { %4892 = vadd.xlane.f32.xlu1 %v4891_v12  ;;  %v4975_v12 = vld [vmem:[%s8901_s7 + $0x8] sm:$0xff] }
 0x5f8   :  { %v4957_v0 = vadd.f32 %v4956_v60, %v4941_v32 }
 0x5fa   :  { %v4958_v37 = vadd.f32 %v4957_v0, %v4942_v56 }
 0x5fc   :  { %v4959_v58 = vadd.f32 %v4958_v37, %v4943_v6 }
 0x5fe   :  { %4960 = vadd.xlane.f32.xlu1 %v4959_v58 }
 0x679   :  { %v4884_v4 = vpop.xlane.xlu0 %4883 }
 0x67d   :  { %v4952_v22 = vpop.xlane.xlu0 %4951 }
 0x67e   :  { %v4962_v35 = vadd.f32 %v4952_v22, %v4884_v4 }
 0x680   :  { %v4966_v47 = vmul.f32 0.00048828125, %v4962_v35  ;;  %v4893_v42 = vpop.xlane.xlu1 %4892 }
 0x682   :  { %v4968_v48 = vadd.f32 1e-05, %v4966_v47 }
 0x684   :  { %6069 = vrsqrt.f32 %v4968_v48 }
 0x687   :  { %v4961_v53 = vpop.xlane.xlu1 %4960 }
 0x688   :  { %v4963_v18 = vadd.f32 %v4961_v53, %v4893_v42 }
 0x68a   :  { %v4967_v43 = vmul.f32 0.00048828125, %v4963_v18 }
 0x68c   :  { %v4969_v20 = vadd.f32 1e-05, %v4967_v43 }
 0x68e   :  { %6071 = vrsqrt.f32 %v4969_v20 }
 0x691   :  { %v6070_v34 = vpop.eup %6069 }
 0x692   :  { %v4972_v59 = vmul.f32 %v6070_v34, %v4964_v30 }
 0x694   :  { %4982 = vperm.xlu0 %6019, %v4972_v59   ;;  %v4976_v31 = vmul.f32 %v4972_v59, %v8567_v49 }
 0x696   :  { %v4978_v44 = vsub.f32 %v4974_v7, %v4976_v31 }
 0x69b   :  { %v6072_v45 = vpop.eup %6071 }
 0x69c   :  { %v4973_v16 = vmul.f32 %v6072_v45, %v4965_v9 }
 0x69e   :  { %4987 = vperm.xlu1 %6020, %v4973_v16   ;;  %v4977_v25 = vmul.f32 %v4973_v16, %v8613_v40 }
 0x6a0   :  { %v4979_v10 = vsub.f32 %v4975_v12, %v4977_v25 }
 0x6a2   :  { %5008 = vperm.xlu1 %6020, %v4978_v44  }
 0x6a6   :  { %5013 = vperm.xlu1 %6020, %v4979_v10  }
 0x70f   :  { %v4983_v32 = vpop.permute.xlu0 %4982 }
 0x710   :  { %v4990_v60 = vmul.f32 %v4983_v32, %v8572_v38  ;;  %v4991_v49 = vmul.f32 %v4983_v32, %v8577_v17  ;;  %v4992_v56 = vmul.f32 %v4983_v32, %v8582_v36  ;;  %v4993_v0 = vmul.f32 %v4983_v32, %v8593_v19 }
 0x711   :  { %v4994_v6 = vmul.f32 %v4983_v32, %v8598_v52  ;;  %v4995_v40 = vmul.f32 %v4983_v32, %v8605_v39  ;;  %v4996_v37 = vmul.f32 %v4983_v32, %v8618_v50  ;;  %v4997_v58 = vmul.f32 %v4983_v32, %v8627_v51 }
 0x712   :  { %v5080_v62 = vmul.f32 %v4983_v32, %v8519_v26  ;;  %v5081_v4 = vmul.f32 %v4983_v32, %v8521_v27  ;;  %v5082_v38 = vmul.f32 %v4983_v32, %v8525_v13  ;;  %v5083_v17 = vmul.f32 %v4983_v32, %v8531_v23 }
 0x713   :  { %v5084_v36 = vmul.f32 %v4983_v32, %v8533_v24  ;;  %v5085_v19 = vmul.f32 %v4983_v32, %v8540_v11  ;;  %v5086_v52 = vmul.f32 %v4983_v32, %v8552_v46  ;;  %v5087_v39 = vmul.f32 %v4983_v32, %v8557_v57 }
 0x719   :  { %v4988_v22 = vpop.permute.xlu1 %4987 }
 0x71a   :  { %v4998_v50 = vmul.f32 %v4988_v22, %v8640_v41  ;;  %v4999_v51 = vmul.f32 %v4988_v22, %v8645_v21  ;;  %v5000_v26 = vmul.f32 %v4988_v22, %v8650_v54  ;;  %v5001_v27 = vmul.f32 %v4988_v22, %v8665_v2 }
 0x71b   :  { %v8750_v13 = vmul.f32 %v4988_v22, %v8670_v15  ;;  %v8753_v23 = vmul.f32 %v4988_v22, %v8681_v63  ;;  %v8756_v24 = vmul.f32 %v4988_v22, %v8692_v33  ;;  %v8759_v11 = vmul.f32 %v4988_v22, %v8701_v28 }
 0x71c   :  { %v8762_v46 = vmul.f32 %v4988_v22, %v8523_v5  ;;  %v8765_v57 = vmul.f32 %v4988_v22, %v8529_v8  ;;  %v8768_v41 = vmul.f32 %v4988_v22, %v8536_v3  ;;  %v8771_v21 = vmul.f32 %v4988_v22, %v8544_v55 }
 0x71d   :  { %v5009_v54 = vpop.permute.xlu1 %5008  ;;  %v8774_v2 = vmul.f32 %v4988_v22, %v8547_v61  ;;  %v8777_v15 = vmul.f32 %v4988_v22, %v8554_v29  ;;  %v8780_v63 = vmul.f32 %v4988_v22, %v8561_v1  ;;  %v8783_v5 = vmul.f32 %v4988_v22, %v8564_v14 }
 0x71e   :  { %v5016_v8 = vadd.f32 %v5009_v54, %v4990_v60  ;;  %v5017_v33 = vadd.f32 %v5009_v54, %v4991_v49  ;;  %v5018_v3 = vadd.f32 %v5009_v54, %v4992_v56  ;;  %v5019_v28 = vadd.f32 %v5009_v54, %v4993_v0 }
 0x71f   :  { %v5020_v35 = vadd.f32 %v5009_v54, %v4994_v6  ;;  %v5021_v55 = vadd.f32 %v5009_v54, %v4995_v40  ;;  %v5022_v47 = vadd.f32 %v5009_v54, %v4996_v37  ;;  %v5023_v48 = vadd.f32 %v5009_v54, %v4997_v58 }
 0x720   :  { %v5032_v42 = vmax.f32 %v5016_v8, 0.0  ;;  %v5033_v61 = vmax.f32 %v5017_v33, 0.0  ;;  %v5034_v53 = vmax.f32 %v5018_v3, 0.0  ;;  %v5035_v18 = vmax.f32 %v5019_v28, 0.0 }
 0x721   :  { %v5036_v29 = vmax.f32 %v5020_v35, 0.0  ;;  %v5037_v43 = vmax.f32 %v5021_v55, 0.0  ;;  %v5038_v20 = vmax.f32 %v5022_v47, 0.0  ;;  %v5039_v1 = vmax.f32 %v5023_v48, 0.0  ;;  %v5014_v7 = vpop.permute.xlu1 %5013 }
 0x722   :  { %5048 = vst [vmem:[%s8899_s8] sm:$0xff] %v5032_v42  ;;  %5049 = vst [vmem:[%s8899_s8 + $0x8] sm:$0xff] %v5033_v61  ;;  %v5096_v14 = vadd.f32 %v5080_v62, %v5009_v54  ;;  %v5097_v30 = vadd.f32 %v5081_v4, %v5009_v54  ;;  %v5098_v34 = vadd.f32 %v5082_v38, %v5009_v54 }
 0x723   :  { %5050 = vst [vmem:[%s8899_s8 + $0x10] sm:$0xff] %v5034_v53  ;;  %5051 = vst [vmem:[%s8899_s8 + $0x18] sm:$0xff] %v5035_v18  ;;  %v5099_v59 = vadd.f32 %v5083_v17, %v5009_v54  ;;  %v5100_v9 = vadd.f32 %v5084_v36, %v5009_v54  ;;  %v5101_v45 = vadd.f32 %v5085_v19, %v5009_v54 }
 0x724   :  { %5052 = vst [vmem:[%s8899_s8 + $0x20] sm:$0xff] %v5036_v29  ;;  %5053 = vst [vmem:[%s8899_s8 + $0x28] sm:$0xff] %v5037_v43  ;;  %v5102_v16 = vadd.f32 %v5086_v52, %v5009_v54  ;;  %v5103_v31 = vadd.f32 %v5087_v39, %v5009_v54  ;;  %v5112_v44 = vmax.f32 %v5096_v14, 0.0  ;;  %v5113_v25 = vmax.f32 %v5097_v30, 0.0 }
 0x725   :  { %5054 = vst [vmem:[%s8899_s8 + $0x30] sm:$0xff] %v5038_v20  ;;  %5055 = vst [vmem:[%s8899_s8 + $0x38] sm:$0xff] %v5039_v1  ;;  %v5114_v12 = vmax.f32 %v5098_v34, 0.0  ;;  %v5115_v10 = vmax.f32 %v5099_v59, 0.0  ;;  %v5116_v32 = vmax.f32 %v5100_v9, 0.0  ;;  %v5117_v60 = vmax.f32 %v5101_v45, 0.0 }
 0x726   :  { %v5118_v49 = vmax.f32 %v5102_v16, 0.0  ;;  %v5119_v56 = vmax.f32 %v5103_v31, 0.0  ;;  %5378 = vst [vmem:[%s8899_s8 + $0x80] sm:$0xff] %v5112_v44  ;;  %5379 = vst [vmem:[%s8899_s8 + $0x88] sm:$0xff] %v5113_v25  ;;  %v5024_v0 = vadd.f32 %v5014_v7, %v4998_v50  ;;  %v5025_v6 = vadd.f32 %v5014_v7, %v4999_v51 }
 0x727   :  { %5380 = vst [vmem:[%s8899_s8 + $0x90] sm:$0xff] %v5114_v12  ;;  %5381 = vst [vmem:[%s8899_s8 + $0x98] sm:$0xff] %v5115_v10  ;;  %v5026_v40 = vadd.f32 %v5014_v7, %v5000_v26  ;;  %v5027_v37 = vadd.f32 %v5014_v7, %v5001_v27  ;;  %v5028_v58 = vadd.f32 %v5014_v7, %v8750_v13 }
 0x728   :  { %5382 = vst [vmem:[%s8899_s8 + $0xa0] sm:$0xff] %v5116_v32  ;;  %5383 = vst [vmem:[%s8899_s8 + $0xa8] sm:$0xff] %v5117_v60  ;;  %v5029_v62 = vadd.f32 %v5014_v7, %v8753_v23  ;;  %v5030_v4 = vadd.f32 %v5014_v7, %v8756_v24  ;;  %v5031_v38 = vadd.f32 %v5014_v7, %v8759_v11  ;;  %v5040_v17 = vmax.f32 %v5024_v0, 0.0 }
 0x729   :  { %5384 = vst [vmem:[%s8899_s8 + $0xb0] sm:$0xff] %v5118_v49  ;;  %5385 = vst [vmem:[%s8899_s8 + $0xb8] sm:$0xff] %v5119_v56  ;;  %v5041_v36 = vmax.f32 %v5025_v6, 0.0  ;;  %v5042_v19 = vmax.f32 %v5026_v40, 0.0  ;;  %v5043_v52 = vmax.f32 %v5027_v37, 0.0  ;;  %v5044_v39 = vmax.f32 %v5028_v58, 0.0 }
 0x72a   :  { %v5045_v22 = vmax.f32 %v5029_v62, 0.0  ;;  %v5046_v50 = vmax.f32 %v5030_v4, 0.0  ;;  %v5047_v51 = vmax.f32 %v5031_v38, 0.0  ;;  %5056 = vst [vmem:[%s8899_s8 + $0x40] sm:$0xff] %v5040_v17  ;;  %v5104_v26 = vadd.f32 %v8762_v46, %v5014_v7 }
 0x72b   :  { %5057 = vst [vmem:[%s8899_s8 + $0x48] sm:$0xff] %v5041_v36  ;;  %5058 = vst [vmem:[%s8899_s8 + $0x50] sm:$0xff] %v5042_v19  ;;  %v5105_v27 = vadd.f32 %v8765_v57, %v5014_v7  ;;  %v5106_v13 = vadd.f32 %v8768_v41, %v5014_v7  ;;  %v5107_v23 = vadd.f32 %v8771_v21, %v5014_v7 }
 0x72c   :  { %5059 = vst [vmem:[%s8899_s8 + $0x58] sm:$0xff] %v5043_v52  ;;  %5060 = vst [vmem:[%s8899_s8 + $0x60] sm:$0xff] %v5044_v39  ;;  %v5108_v24 = vadd.f32 %v8774_v2, %v5014_v7  ;;  %v5109_v11 = vadd.f32 %v8777_v15, %v5014_v7  ;;  %v5110_v46 = vadd.f32 %v8780_v63, %v5014_v7  ;;  %v5120_v41 = vmax.f32 %v5104_v26, 0.0 }
 0x72d   :  { %5061 = vst [vmem:[%s8899_s8 + $0x68] sm:$0xff] %v5045_v22  ;;  %5062 = vst [vmem:[%s8899_s8 + $0x70] sm:$0xff] %v5046_v50  ;;  %v5111_v57 = vadd.f32 %v8783_v5, %v5014_v7  ;;  %v5121_v21 = vmax.f32 %v5105_v27, 0.0  ;;  %v5122_v54 = vmax.f32 %v5106_v13, 0.0  ;;  %v5123_v8 = vmax.f32 %v5107_v23, 0.0 }
 0x72e   :  { %5063 = vst [vmem:[%s8899_s8 + $0x78] sm:$0xff] %v5047_v51  ;;  %v5124_v33 = vmax.f32 %v5108_v24, 0.0  ;;  %v5125_v3 = vmax.f32 %v5109_v11, 0.0  ;;  %v5126_v28 = vmax.f32 %v5110_v46, 0.0  ;;  %5386 = vst [vmem:[%s8899_s8 + $0xc0] sm:$0xff] %v5120_v41 }
 0x72f   :  { %v5127_v35 = vmax.f32 %v5111_v57, 0.0  ;;  %5387 = vst [vmem:[%s8899_s8 + $0xc8] sm:$0xff] %v5121_v21  ;;  %5388 = vst [vmem:[%s8899_s8 + $0xd0] sm:$0xff] %v5122_v54 }
 0x730   :  { %5389 = vst [vmem:[%s8899_s8 + $0xd8] sm:$0xff] %v5123_v8  ;;  %5390 = vst [vmem:[%s8899_s8 + $0xe0] sm:$0xff] %v5124_v33 }
 0x731   :  { %5391 = vst [vmem:[%s8899_s8 + $0xe8] sm:$0xff] %v5125_v3  ;;  %5392 = vst [vmem:[%s8899_s8 + $0xf0] sm:$0xff] %v5126_v28 }
 0x732   :  { %5393 = vst [vmem:[%s8899_s8 + $0xf8] sm:$0xff] %v5127_v35 }

</bundles_post_ra>
